<compile_context>
chip_gen: v6e
topology: v6e:2x2x1
jax: 0.10.0
libtpu: 0.0.40
codegen_flags: <defaults>
</compile_context>

<pallas_src>
import jax
import jax.numpy as jnp
from jax import lax
from jax.experimental import pallas as pl
from jax.experimental.pallas import tpu as pltpu


def _masked_softmax(x, mask_row):
    # AllenNLP-0.x masked_softmax semantics used by last_dim_softmax:
    #   softmax(x * mask) -> re-mask -> renormalize (+1e-13)
    xm = x * mask_row
    m = jnp.max(xm, axis=-1, keepdims=True)
    e = jnp.exp(xm - m)
    p = e * pl.reciprocal(jnp.sum(e, axis=-1, keepdims=True), approx=True)
    p = p * mask_row
    return p * pl.reciprocal(jnp.sum(p, axis=-1, keepdims=True) + 1e-13, approx=True)


def decomposable_attention_kernel(
    emb_p_ref, emb_h_ref,
    mask_p_row_ref, mask_h_row_ref, mask_p_col_ref, mask_h_col_ref,
    w_att_ref, b_att_ref,
    w_cmp_a_ref, w_cmp_b_ref, b_cmp_ref,
    w_agg_a_ref, w_agg_b_ref, b_agg_ref,
    logits_ref, p2h_ref, h2p_ref,
):
    Bt, Sp, D = emb_p_ref.shape
    Sh = emb_h_ref.shape[1]
    H = w_att_ref.shape[1]

    ep = emb_p_ref[...]                      # (Bt, Sp, D) bf16 (shipped as bf16)
    eh = emb_h_ref[...]                      # (Bt, Sh, D) bf16
    mp_row = mask_p_row_ref[...]             # (Bt, 1, Sp) f32
    mh_row = mask_h_row_ref[...]             # (Bt, 1, Sh) f32
    mp_col = mask_p_col_ref[...]             # (Bt, Sp, 1) f32
    mh_col = mask_h_col_ref[...]             # (Bt, Sh, 1) f32

    # Layout-trivial flattening (Sp/Sh padded to a multiple of 16 by the wrapper).
    ep_flat = ep.reshape(Bt * Sp, D)
    eh_flat = eh.reshape(Bt * Sh, D)

    # --- attend feedforward (TimeDistributed Linear + ReLU), M = Bt*S on the MXU ---
    w_att = w_att_ref[...]                   # (D, H) bf16
    b_att = b_att_ref[...]                   # (1, H) f32
    proj_p = jnp.maximum(
        jnp.dot(ep_flat, w_att, preferred_element_type=jnp.float32) + b_att, 0.0)
    proj_h = jnp.maximum(
        jnp.dot(eh_flat, w_att, preferred_element_type=jnp.float32) + b_att, 0.0)
    proj_p3 = proj_p.reshape(Bt, Sp, H).astype(jnp.bfloat16)
    proj_h3 = proj_h.reshape(Bt, Sh, H).astype(jnp.bfloat16)

    w_cmp_a = w_cmp_a_ref[...]               # (D, H) bf16
    w_cmp_b = w_cmp_b_ref[...]               # (D, H) bf16
    b_cmp = b_cmp_ref[...]                   # (1, H) f32

    # ------- premise -> hypothesis branch (finished & stored before the other
    # branch starts so its large intermediates can die; caps peak VMEM on v7x) ----
    sim = jnp.einsum('bph,bqh->bpq', proj_p3, proj_h3,
                     preferred_element_type=jnp.float32)         # (Bt, Sp, Sh)
    p2h = _masked_softmax(sim, mh_row)                           # (Bt, Sp, Sh)
    p2h_ref[...] = p2h.astype(p2h_ref.dtype)                     # write early (bf16)
    attended_h = jnp.einsum('bpq,bqd->bpd', p2h.astype(jnp.bfloat16), eh,
                            preferred_element_type=jnp.float32)  # (Bt, Sp, D)
    cmp_p = jnp.maximum(
        jnp.dot(ep_flat, w_cmp_a, preferred_element_type=jnp.float32)
        + jnp.dot(attended_h.reshape(Bt * Sp, D).astype(jnp.bfloat16), w_cmp_b,
                  preferred_element_type=jnp.float32)
        + b_cmp, 0.0).reshape(Bt, Sp, H)
    # masked sum over the sequence: VPU multiply + sublane reduction (MXU stays free)
    agg_p = jnp.sum(cmp_p * mp_col, axis=1)                      # (Bt, H)

    # ------- hypothesis -> premise branch ----------------------------------------
    if H >= 64:
        # One batched matmul + per-tile XLU transpose beats a second matmul for
        # realistic hidden sizes; softmax still reduces on the lane axis.
        sim_t = jnp.swapaxes(sim, 1, 2)                          # (Bt, Sh, Sp)
    else:
        sim_t = jnp.einsum('bqh,bph->bqp', proj_h3, proj_p3,
                           preferred_element_type=jnp.float32)   # (Bt, Sh, Sp)
    h2p = _masked_softmax(sim_t, mp_row)
    h2p_ref[...] = h2p.astype(h2p_ref.dtype)
    attended_p = jnp.einsum('bqp,bpd->bqd', h2p.astype(jnp.bfloat16), ep,
                            preferred_element_type=jnp.float32)  # (Bt, Sh, D)
    cmp_h = jnp.maximum(
        jnp.dot(eh_flat, w_cmp_a, preferred_element_type=jnp.float32)
        + jnp.dot(attended_p.reshape(Bt * Sh, D).astype(jnp.bfloat16), w_cmp_b,
                  preferred_element_type=jnp.float32)
        + b_cmp, 0.0).reshape(Bt, Sh, H)
    agg_h = jnp.sum(cmp_h * mh_col, axis=1)                      # (Bt, H)

    # --- aggregate feedforward: Linear(2H -> L) via pre-split weights (tiny, f32) ---
    logits_ref[...] = (
        jnp.dot(agg_p, w_agg_a_ref[...], preferred_element_type=jnp.float32)
        + jnp.dot(agg_h, w_agg_b_ref[...], preferred_element_type=jnp.float32)
        + b_agg_ref[...])                                        # (Bt, L)


def _tpu_hw():
    """Generation-aware (physical VMEM, has-2-TensorCores) query with safe fallbacks."""
    phys_vmem = None
    try:
        phys_vmem = int(pltpu.get_tpu_info().vmem_capacity_bytes)
    except Exception:
        phys_vmem = None
    kind = ""
    try:
        kind = jax.devices()[0].device_kind.lower()
    except Exception:
        pass
    two_tc = any(t in kind for t in ("v7", "7x", "v4", "v5p"))
    if phys_vmem is None:
        phys_vmem = (64 if ("v7" in kind or "7x" in kind) else 128) * 1024 * 1024
    # Conservative compiler limit with headroom inside the physical capacity:
    #   128-MiB parts (v5e/v6e) -> 96 MiB, 64-MiB parts (v7x) -> 40 MiB.
    vmem_limit = 40 * 1024 * 1024 if phys_vmem <= 64 * 1024 * 1024 else 96 * 1024 * 1024
    return vmem_limit, two_tc


def _block_bytes(bt, sp, sh, d, h, lbl):
    """Approximate per-step VMEM use: pipelined blocks double-buffered, in-kernel
    intermediates (sequential-branch schedule) counted once."""
    BF16, F32 = 2, 4
    in_b = bt * (sp + sh) * d * BF16                 # bf16 embedding blocks
    in_b += bt * (sp + sh) * 2 * F32                 # row + column masks
    w_b = 3 * d * h * BF16 + (2 * h * lbl + 2 * h + lbl) * F32   # resident weights/biases
    out_b = 2 * bt * sp * sh * BF16 + bt * max(lbl, 8) * F32     # p2h/h2p (bf16) + logits
    pipelined = 2 * (in_b + out_b + w_b)             # double-buffered by the pipeline
    smax = max(sp, sh)
    inter = bt * (sp + sh) * h * (F32 + BF16)        # proj f32 + bf16 copies
    inter += 2 * bt * sp * sh * F32                  # sim + softmax probs (one branch live)
    inter += bt * smax * d * (F32 + BF16)            # attended + bf16 copy
    inter += bt * smax * h * F32                     # compared
    inter += bt * smax * max(d, h) * F32             # relayout / temp slack
    return pipelined + inter


def _choose_block_b(batch, sp, sh, d, h, lbl, vmem_limit_bytes, *, two_tc,
                    max_block_b=128):
    """Largest batch-divisor Bt whose working set fits ~70% of the compiler VMEM
    limit.  On 2-TensorCore parts prefer an even grid length so ('parallel',)
    shards both cores evenly; on 1-TC parts just take the biggest Bt that fits."""
    budget = int(vmem_limit_bytes * 0.7)
    limit = max(1, min(batch, max_block_b))
    cands = [bt for bt in range(1, limit + 1)
             if batch % bt == 0 and _block_bytes(bt, sp, sh, d, h, lbl) <= budget]
    if not cands:
        return 1
    if two_tc:
        even = [bt for bt in cands if (batch // bt) % 2 == 0]
        if even:
            return max(even)
    return max(cands)


def decomposable_attention(tok_p, tok_h, embedding,
                           w_att, b_att, w_cmp, b_cmp, w_agg, b_agg,
                           *, block_b=None):
    B, Sp = tok_p.shape
    _, Sh = tok_h.shape
    D = embedding.shape[1]
    H = w_att.shape[1]
    L = w_agg.shape[1]

    # Pad sequences to a multiple of 16 with padding tokens (id 0): keeps the
    # in-kernel bf16 reshapes layout-trivial; extra masked columns are a no-op under
    # the masked-softmax renormalization and padded rows are mask-zeroed / sliced.
    def pad_to(tok, mult=16):
        s = tok.shape[1]
        s_pad = -(-s // mult) * mult
        if s_pad != s:
            tok = jnp.pad(tok, ((0, 0), (0, s_pad - s)))
        return tok, s_pad

    tok_p_pad, Sp_pad = pad_to(tok_p)
    tok_h_pad, Sh_pad = pad_to(tok_h)

    vmem_limit, two_tc = _tpu_hw()
    Bt = block_b if block_b is not None else _choose_block_b(
        B, Sp_pad, Sh_pad, D, H, L, vmem_limit, two_tc=two_tc)
    if B % Bt != 0:
        raise ValueError(f"block_b={Bt} must divide batch={B}")
    nb = B // Bt

    # Glue: embedding lookup + TextField masks (token id 0 == padding); bf16 feed.
    # TODO(synk): the gather could be fused in-kernel via scalar-prefetched token ids
    # and a row-gather BlockSpec over the HBM embedding table; kept in XLA here.
    emb_p = jnp.take(embedding, tok_p_pad, axis=0).astype(jnp.bfloat16)  # (B,Sp',D)
    emb_h = jnp.take(embedding, tok_h_pad, axis=0).astype(jnp.bfloat16)  # (B,Sh',D)
    mask_p = (tok_p_pad != 0).astype(jnp.float32)
    mask_h = (tok_h_pad != 0).astype(jnp.float32)
    mask_p_row = mask_p[:, None, :]          # (B, 1, Sp')  for h2p softmax
    mask_h_row = mask_h[:, None, :]          # (B, 1, Sh')  for p2h softmax
    mask_p_col = mask_p[:, :, None]          # (B, Sp', 1)  for premise aggregation
    mask_h_col = mask_h[:, :, None]          # (B, Sh', 1)  for hypothesis aggregation

    # Pre-split the concat weights (no in-kernel slicing across (8,128) tiles); bf16 MXU.
    w_att_b = w_att.astype(jnp.bfloat16)
    w_cmp_a = w_cmp[:D].astype(jnp.bfloat16)
    w_cmp_b = w_cmp[D:].astype(jnp.bfloat16)
    w_agg_a = w_agg[:H].astype(jnp.float32)
    w_agg_b = w_agg[H:].astype(jnp.float32)
    b_att32 = b_att.astype(jnp.float32)
    b_cmp32 = b_cmp.astype(jnp.float32)
    b_agg32 = b_agg.astype(jnp.float32)

    out_shapes = (
        jax.ShapeDtypeStruct((nb, Bt, L), jnp.float32),           # label_logits (packed)
        jax.ShapeDtypeStruct((B, Sp_pad, Sh_pad), jnp.bfloat16),  # p2h_attention
        jax.ShapeDtypeStruct((B, Sh_pad, Sp_pad), jnp.bfloat16),  # h2p_attention
    )

    grid_spec = pltpu.PrefetchScalarGridSpec(
        num_scalar_prefetch=0,
        grid=(nb,),
        in_specs=[
            pl.BlockSpec((Bt, Sp_pad, D), lambda b: (b, 0, 0)),
            pl.BlockSpec((Bt, Sh_pad, D), lambda b: (b, 0, 0)),
            pl.BlockSpec((Bt, 1, Sp_pad), lambda b: (b, 0, 0)),
            pl.BlockSpec((Bt, 1, Sh_pad), lambda b: (b, 0, 0)),
            pl.BlockSpec((Bt, Sp_pad, 1), lambda b: (b, 0, 0)),
            pl.BlockSpec((Bt, Sh_pad, 1), lambda b: (b, 0, 0)),
            pl.BlockSpec((D, H), lambda b: (0, 0)),
            pl.BlockSpec((1, H), lambda b: (0, 0)),
            pl.BlockSpec((D, H), lambda b: (0, 0)),
            pl.BlockSpec((D, H), lambda b: (0, 0)),
            pl.BlockSpec((1, H), lambda b: (0, 0)),
            pl.BlockSpec((H, L), lambda b: (0, 0)),
            pl.BlockSpec((H, L), lambda b: (0, 0)),
            pl.BlockSpec((1, L), lambda b: (0, 0)),
        ],
        out_specs=[
            pl.BlockSpec((None, Bt, L), lambda b: (b, 0, 0)),
            pl.BlockSpec((Bt, Sp_pad, Sh_pad), lambda b: (b, 0, 0)),
            pl.BlockSpec((Bt, Sh_pad, Sp_pad), lambda b: (b, 0, 0)),
        ],
    )

    logits, p2h, h2p = pl.pallas_call(
        decomposable_attention_kernel,
        out_shape=out_shapes,
        grid_spec=grid_spec,
        compiler_params=pltpu.CompilerParams(
            dimension_semantics=("parallel",),
            vmem_limit_bytes=vmem_limit,
        ),
    )(emb_p, emb_h, mask_p_row, mask_h_row, mask_p_col, mask_h_col,
      w_att_b, b_att32, w_cmp_a, w_cmp_b, b_cmp32, w_agg_a, w_agg_b, b_agg32)

    logits = logits.reshape(B, L)
    probs = jax.nn.softmax(logits, axis=-1)   # tiny (B, L) softmax kept outside the kernel
    p2h = p2h[:, :Sp, :Sh].astype(jnp.float32)
    h2p = h2p[:, :Sh, :Sp].astype(jnp.float32)
    return logits, probs, p2h, h2p


def _reference(tok_p, tok_h, embedding, w_att, b_att, w_cmp, b_cmp, w_agg, b_agg):
    # pure-JAX f32 reference with identical semantics, for correctness checking
    hi = lax.Precision.HIGHEST
    emb_p = jnp.take(embedding, tok_p, axis=0)
    emb_h = jnp.take(embedding, tok_h, axis=0)
    mp = (tok_p != 0).astype(jnp.float32)
    mh = (tok_h != 0).astype(jnp.float32)

    def msm(x, mask):
        xm = x * mask[:, None, :]
        p = jax.nn.softmax(xm, axis=-1) * mask[:, None, :]
        return p / (p.sum(-1, keepdims=True) + 1e-13)

    pp = jax.nn.relu(jnp.einsum('bsd,dh->bsh', emb_p, w_att, precision=hi) + b_att)
    ph = jax.nn.relu(jnp.einsum('bsd,dh->bsh', emb_h, w_att, precision=hi) + b_att)
    sim = jnp.einsum('bph,bqh->bpq', pp, ph, precision=hi)
    p2h = msm(sim, mh)
    h2p = msm(jnp.swapaxes(sim, 1, 2), mp)
    att_h = jnp.einsum('bpq,bqd->bpd', p2h, emb_h, precision=hi)
    att_p = jnp.einsum('bqp,bpd->bqd', h2p, emb_p, precision=hi)
    cin_p = jnp.concatenate([emb_p, att_h], -1)
    cin_h = jnp.concatenate([emb_h, att_p], -1)
    cp = jax.nn.relu(jnp.einsum('bsd,dh->bsh', cin_p, w_cmp, precision=hi) + b_cmp)
    ch = jax.nn.relu(jnp.einsum('bsd,dh->bsh', cin_h, w_cmp, precision=hi) + b_cmp)
    ap = (cp * mp[:, :, None]).sum(1)
    ah = (ch * mh[:, :, None]).sum(1)
    logits = jnp.concatenate([ap, ah], -1) @ w_agg + b_agg
    probs = jax.nn.softmax(logits, axis=-1)
    return logits, probs, p2h, h2p


if __name__ == "__main__":
    key = jax.random.PRNGKey(0)
    B, Sp, Sh, D, H, L, V = 8, 8, 8, 32, 32, 4, 50
    ks = jax.random.split(key, 9)

    embedding = 0.1 * jax.random.normal(ks[0], (V, D), jnp.float32)
    w_att = 0.1 * jax.random.normal(ks[1], (D, H), jnp.float32)
    b_att = 0.05 * jax.random.normal(ks[2], (1, H), jnp.float32)
    w_cmp = 0.1 * jax.random.normal(ks[3], (2 * D, H), jnp.float32)
    b_cmp = 0.05 * jax.random.normal(ks[4], (1, H), jnp.float32)
    w_agg = 0.1 * jax.random.normal(ks[5], (2 * H, L), jnp.float32)
    b_agg = 0.05 * jax.random.normal(ks[6], (1, L), jnp.float32)

    tok_p = jax.random.randint(ks[7], (B, Sp), 1, V, dtype=jnp.int32)
    tok_h = jax.random.randint(ks[8], (B, Sh), 1, V, dtype=jnp.int32)
    # introduce padding (token id 0) so the masking path is exercised
    tok_p = tok_p.at[0, 6:].set(0)
    tok_h = tok_h.at[1, 5:].set(0)
    tok_p = tok_p.at[5, 4:].set(0)
    tok_h = tok_h.at[7, 3:].set(0)

    logits, probs, p2h, h2p = decomposable_attention(
        tok_p, tok_h, embedding, w_att, b_att, w_cmp, b_cmp, w_agg, b_agg)
    jax.block_until_ready((logits, probs, p2h, h2p))

    ref_logits, ref_probs, ref_p2h, ref_h2p = _reference(
        tok_p, tok_h, embedding, w_att, b_att, w_cmp, b_cmp, w_agg, b_agg)

    assert logits.shape == (B, L) and probs.shape == (B, L)
    assert p2h.shape == (B, Sp, Sh) and h2p.shape == (B, Sh, Sp)
    # bf16 embeddings / MXU operands / attention-map outputs (f32 accumulation)
    # => slightly looser tolerances than pure f32
    assert jnp.allclose(logits, ref_logits, atol=2e-2, rtol=2e-2)
    assert jnp.allclose(probs, ref_probs, atol=2e-2, rtol=2e-2)
    assert jnp.allclose(p2h, ref_p2h, atol=2e-2, rtol=2e-2)
    assert jnp.allclose(h2p, ref_h2p, atol=2e-2, rtol=2e-2)

    print("KERNEL_OK")
</pallas_src>

<mosaic_0001>
module attributes {stable_mosaic.version = 11 : i64} {
  func.func @decomposable_attention_kernel(%arg0: i32, %arg1: memref<8x16x32xbf16, #tpu.memory_space<vmem>>, %arg2: memref<8x16x32xbf16, #tpu.memory_space<vmem>>, %arg3: memref<8x1x16xf32, #tpu.memory_space<vmem>>, %arg4: memref<8x1x16xf32, #tpu.memory_space<vmem>>, %arg5: memref<8x16x1xf32, #tpu.memory_space<vmem>>, %arg6: memref<8x16x1xf32, #tpu.memory_space<vmem>>, %arg7: memref<32x32xbf16, #tpu.memory_space<vmem>>, %arg8: memref<1x32xf32, #tpu.memory_space<vmem>>, %arg9: memref<32x32xbf16, #tpu.memory_space<vmem>>, %arg10: memref<32x32xbf16, #tpu.memory_space<vmem>>, %arg11: memref<1x32xf32, #tpu.memory_space<vmem>>, %arg12: memref<32x4xf32, #tpu.memory_space<vmem>>, %arg13: memref<32x4xf32, #tpu.memory_space<vmem>>, %arg14: memref<1x4xf32, #tpu.memory_space<vmem>>, %arg15: memref<1x8x4xf32, #tpu.memory_space<vmem>>, %arg16: memref<8x16x16xbf16, #tpu.memory_space<vmem>>, %arg17: memref<8x16x16xbf16, #tpu.memory_space<vmem>>) attributes {dimension_semantics = [#tpu.dimension_semantics<parallel>], iteration_bounds = array<i64: 1>, scalar_prefetch = 0 : i64, scratch_operands = 0 : i64, tpu.core_type = #tpu.core_type<tc>, window_params = [{transform_indices = @transform_0, window_bounds = array<i64: 8, 16, 32>}, {transform_indices = @transform_1, window_bounds = array<i64: 8, 16, 32>}, {transform_indices = @transform_2, window_bounds = array<i64: 8, 1, 16>}, {transform_indices = @transform_3, window_bounds = array<i64: 8, 1, 16>}, {transform_indices = @transform_4, window_bounds = array<i64: 8, 16, 1>}, {transform_indices = @transform_5, window_bounds = array<i64: 8, 16, 1>}, {pipeline_mode = #tpu.pipeline_mode<synchronous>, transform_indices = @transform_6, window_bounds = array<i64: 32, 32>}, {pipeline_mode = #tpu.pipeline_mode<synchronous>, transform_indices = @transform_7, window_bounds = array<i64: 1, 32>}, {pipeline_mode = #tpu.pipeline_mode<synchronous>, transform_indices = @transform_8, window_bounds = array<i64: 32, 32>}, {pipeline_mode = #tpu.pipeline_mode<synchronous>, transform_indices = @transform_9, window_bounds = array<i64: 32, 32>}, {pipeline_mode = #tpu.pipeline_mode<synchronous>, transform_indices = @transform_10, window_bounds = array<i64: 1, 32>}, {pipeline_mode = #tpu.pipeline_mode<synchronous>, transform_indices = @transform_11, window_bounds = array<i64: 32, 4>}, {pipeline_mode = #tpu.pipeline_mode<synchronous>, transform_indices = @transform_12, window_bounds = array<i64: 32, 4>}, {pipeline_mode = #tpu.pipeline_mode<synchronous>, transform_indices = @transform_13, window_bounds = array<i64: 1, 4>}, {transform_indices = @transform_14, window_bounds = array<i64: 1, 8, 4>}, {transform_indices = @transform_15, window_bounds = array<i64: 8, 16, 16>}, {transform_indices = @transform_16, window_bounds = array<i64: 8, 16, 16>}]} {
    %c0 = arith.constant 0 : index
    %c0_0 = arith.constant 0 : index
    %c0_1 = arith.constant 0 : index
    %0 = vector.load %arg1[%c0, %c0_0, %c0_1] : memref<8x16x32xbf16, #tpu.memory_space<vmem>>, vector<8x16x32xbf16>
    %c0_2 = arith.constant 0 : index
    %c0_3 = arith.constant 0 : index
    %c0_4 = arith.constant 0 : index
    %1 = vector.load %arg2[%c0_2, %c0_3, %c0_4] : memref<8x16x32xbf16, #tpu.memory_space<vmem>>, vector<8x16x32xbf16>
    %c0_5 = arith.constant 0 : index
    %c0_6 = arith.constant 0 : index
    %c0_7 = arith.constant 0 : index
    %2 = vector.load %arg3[%c0_5, %c0_6, %c0_7] : memref<8x1x16xf32, #tpu.memory_space<vmem>>, vector<8x1x16xf32>
    %c0_8 = arith.constant 0 : index
    %c0_9 = arith.constant 0 : index
    %c0_10 = arith.constant 0 : index
    %3 = vector.load %arg4[%c0_8, %c0_9, %c0_10] : memref<8x1x16xf32, #tpu.memory_space<vmem>>, vector<8x1x16xf32>
    %c0_11 = arith.constant 0 : index
    %c0_12 = arith.constant 0 : index
    %c0_13 = arith.constant 0 : index
    %4 = vector.load %arg5[%c0_11, %c0_12, %c0_13] : memref<8x16x1xf32, #tpu.memory_space<vmem>>, vector<8x16x1xf32>
    %c0_14 = arith.constant 0 : index
    %c0_15 = arith.constant 0 : index
    %c0_16 = arith.constant 0 : index
    %5 = vector.load %arg6[%c0_14, %c0_15, %c0_16] : memref<8x16x1xf32, #tpu.memory_space<vmem>>, vector<8x16x1xf32>
    %6 = vector.shape_cast %0 : vector<8x16x32xbf16> to vector<128x32xbf16>
    %7 = vector.shape_cast %1 : vector<8x16x32xbf16> to vector<128x32xbf16>
    %c0_17 = arith.constant 0 : index
    %c0_18 = arith.constant 0 : index
    %8 = vector.load %arg7[%c0_17, %c0_18] : memref<32x32xbf16, #tpu.memory_space<vmem>>, vector<32x32xbf16>
    %c0_19 = arith.constant 0 : index
    %c0_20 = arith.constant 0 : index
    %9 = vector.load %arg8[%c0_19, %c0_20] : memref<1x32xf32, #tpu.memory_space<vmem>>, vector<1x32xf32>
    %cst = arith.constant dense<0.000000e+00> : vector<128x32xf32>
    %10 = tpu.matmul %6, %8, %cst {dimension_numbers = #tpu.dot_dimension_numbers<[1], [0], [0], [1], [0, 0, 1, 1], [], []>} : vector<128x32xbf16>, vector<32x32xbf16>, vector<128x32xf32> -> vector<128x32xf32>
    %11 = vector.broadcast %9 : vector<1x32xf32> to vector<128x32xf32>
    %12 = arith.addf %10, %11 : vector<128x32xf32>
    %cst_21 = arith.constant 0.000000e+00 : f32
    %13 = vector.broadcast %cst_21 : f32 to vector<128x32xf32>
    %14 = arith.maximumf %12, %13 : vector<128x32xf32>
    %cst_22 = arith.constant dense<0.000000e+00> : vector<128x32xf32>
    %15 = tpu.matmul %7, %8, %cst_22 {dimension_numbers = #tpu.dot_dimension_numbers<[1], [0], [0], [1], [0, 0, 1, 1], [], []>} : vector<128x32xbf16>, vector<32x32xbf16>, vector<128x32xf32> -> vector<128x32xf32>
    %16 = vector.broadcast %9 : vector<1x32xf32> to vector<128x32xf32>
    %17 = arith.addf %15, %16 : vector<128x32xf32>
    %cst_23 = arith.constant 0.000000e+00 : f32
    %18 = vector.broadcast %cst_23 : f32 to vector<128x32xf32>
    %19 = arith.maximumf %17, %18 : vector<128x32xf32>
    %20 = vector.shape_cast %14 : vector<128x32xf32> to vector<8x16x32xf32>
    %21 = arith.truncf %20 : vector<8x16x32xf32> to vector<8x16x32xbf16>
    %22 = vector.shape_cast %19 : vector<128x32xf32> to vector<8x16x32xf32>
    %23 = arith.truncf %22 : vector<8x16x32xf32> to vector<8x16x32xbf16>
    %c0_24 = arith.constant 0 : index
    %c0_25 = arith.constant 0 : index
    %24 = vector.load %arg9[%c0_24, %c0_25] : memref<32x32xbf16, #tpu.memory_space<vmem>>, vector<32x32xbf16>
    %c0_26 = arith.constant 0 : index
    %c0_27 = arith.constant 0 : index
    %25 = vector.load %arg10[%c0_26, %c0_27] : memref<32x32xbf16, #tpu.memory_space<vmem>>, vector<32x32xbf16>
    %c0_28 = arith.constant 0 : index
    %c0_29 = arith.constant 0 : index
    %26 = vector.load %arg11[%c0_28, %c0_29] : memref<1x32xf32, #tpu.memory_space<vmem>>, vector<1x32xf32>
    "tpu.trace_start"() <{level = 10 : i32, message = "bph,bqh->bpq"}> : () -> ()
    %cst_30 = arith.constant dense<0.000000e+00> : vector<8x16x16xf32>
    %27 = tpu.matmul %21, %23, %cst_30 {dimension_numbers = #tpu.dot_dimension_numbers<[2], [2], [1], [1], [0, 0, 0, 1, 1, 1], [0], [0]>} : vector<8x16x32xbf16>, vector<8x16x32xbf16>, vector<8x16x16xf32> -> vector<8x16x16xf32>
    "tpu.trace_stop"() : () -> ()
    %28 = vector.broadcast %3 : vector<8x1x16xf32> to vector<8x16x16xf32>
    %29 = arith.mulf %27, %28 : vector<8x16x16xf32>
    %cst_31 = arith.constant dense<0xFF800000> : vector<8x16xf32>
    %30 = vector.multi_reduction <maximumf>, %29, %cst_31 [2] : vector<8x16x16xf32> to vector<8x16xf32>
    %31 = vector.shape_cast %30 : vector<8x16xf32> to vector<8x16x1xf32>
    %32 = vector.broadcast %31 : vector<8x16x1xf32> to vector<8x16x16xf32>
    %33 = arith.subf %29, %32 : vector<8x16x16xf32>
    %34 = math.exp %33 : vector<8x16x16xf32>
    %cst_32 = arith.constant dense<0.000000e+00> : vector<8x16xf32>
    %35 = vector.multi_reduction <add>, %34, %cst_32 [2] : vector<8x16x16xf32> to vector<8x16xf32>
    %36 = vector.shape_cast %35 : vector<8x16xf32> to vector<8x16x1xf32>
    %37 = tpu.reciprocal %36 {approx = true} : vector<8x16x1xf32> -> vector<8x16x1xf32>
    %38 = vector.broadcast %37 : vector<8x16x1xf32> to vector<8x16x16xf32>
    %39 = arith.mulf %34, %38 : vector<8x16x16xf32>
    %40 = vector.broadcast %3 : vector<8x1x16xf32> to vector<8x16x16xf32>
    %41 = arith.mulf %39, %40 : vector<8x16x16xf32>
    %cst_33 = arith.constant dense<0.000000e+00> : vector<8x16xf32>
    %42 = vector.multi_reduction <add>, %41, %cst_33 [2] : vector<8x16x16xf32> to vector<8x16xf32>
    %43 = vector.shape_cast %42 : vector<8x16xf32> to vector<8x16x1xf32>
    %cst_34 = arith.constant 9.99999982E-14 : f32
    %44 = vector.broadcast %cst_34 : f32 to vector<8x16x1xf32>
    %45 = arith.addf %43, %44 : vector<8x16x1xf32>
    %46 = tpu.reciprocal %45 {approx = true} : vector<8x16x1xf32> -> vector<8x16x1xf32>
    %47 = vector.broadcast %46 : vector<8x16x1xf32> to vector<8x16x16xf32>
    %48 = arith.mulf %41, %47 : vector<8x16x16xf32>
    %49 = arith.truncf %48 : vector<8x16x16xf32> to vector<8x16x16xbf16>
    %c0_35 = arith.constant 0 : index
    %c0_36 = arith.constant 0 : index
    %c0_37 = arith.constant 0 : index
    %50 = vector.load %arg16[%c0_35, %c0_36, %c0_37] : memref<8x16x16xbf16, #tpu.memory_space<vmem>>, vector<8x16x16xbf16>
    tpu.vector_store %arg16[%c0_35, %c0_36, %c0_37], %49 {strides = array<i32>} : memref<8x16x16xbf16, #tpu.memory_space<vmem>>, vector<8x16x16xbf16>,
    %51 = arith.truncf %48 : vector<8x16x16xf32> to vector<8x16x16xbf16>
    "tpu.trace_start"() <{level = 10 : i32, message = "bpq,bqd->bpd"}> : () -> ()
    %cst_38 = arith.constant dense<0.000000e+00> : vector<8x16x32xf32>
    %52 = tpu.matmul %51, %1, %cst_38 {dimension_numbers = #tpu.dot_dimension_numbers<[2], [1], [1], [2], [0, 0, 0, 1, 1, 2], [0], [0]>} : vector<8x16x16xbf16>, vector<8x16x32xbf16>, vector<8x16x32xf32> -> vector<8x16x32xf32>
    "tpu.trace_stop"() : () -> ()
    %cst_39 = arith.constant dense<0.000000e+00> : vector<128x32xf32>
    %53 = tpu.matmul %6, %24, %cst_39 {dimension_numbers = #tpu.dot_dimension_numbers<[1], [0], [0], [1], [0, 0, 1, 1], [], []>} : vector<128x32xbf16>, vector<32x32xbf16>, vector<128x32xf32> -> vector<128x32xf32>
    %54 = vector.shape_cast %52 : vector<8x16x32xf32> to vector<128x32xf32>
    %55 = arith.truncf %54 : vector<128x32xf32> to vector<128x32xbf16>
    %cst_40 = arith.constant dense<0.000000e+00> : vector<128x32xf32>
    %56 = tpu.matmul %55, %25, %cst_40 {dimension_numbers = #tpu.dot_dimension_numbers<[1], [0], [0], [1], [0, 0, 1, 1], [], []>} : vector<128x32xbf16>, vector<32x32xbf16>, vector<128x32xf32> -> vector<128x32xf32>
    %57 = arith.addf %53, %56 : vector<128x32xf32>
    %58 = vector.broadcast %26 : vector<1x32xf32> to vector<128x32xf32>
    %59 = arith.addf %57, %58 : vector<128x32xf32>
    %cst_41 = arith.constant 0.000000e+00 : f32
    %60 = vector.broadcast %cst_41 : f32 to vector<128x32xf32>
    %61 = arith.maximumf %59, %60 : vector<128x32xf32>
    %62 = vector.shape_cast %61 : vector<128x32xf32> to vector<8x16x32xf32>
    %63 = vector.broadcast %4 : vector<8x16x1xf32> to vector<8x16x32xf32>
    %64 = arith.mulf %62, %63 : vector<8x16x32xf32>
    %cst_42 = arith.constant dense<0.000000e+00> : vector<8x32xf32>
    %65 = vector.multi_reduction <add>, %64, %cst_42 [1] : vector<8x16x32xf32> to vector<8x32xf32>
    "tpu.trace_start"() <{level = 10 : i32, message = "bqh,bph->bqp"}> : () -> ()
    %cst_43 = arith.constant dense<0.000000e+00> : vector<8x16x16xf32>
    %66 = tpu.matmul %23, %21, %cst_43 {dimension_numbers = #tpu.dot_dimension_numbers<[2], [2], [1], [1], [0, 0, 0, 1, 1, 1], [0], [0]>} : vector<8x16x32xbf16>, vector<8x16x32xbf16>, vector<8x16x16xf32> -> vector<8x16x16xf32>
    "tpu.trace_stop"() : () -> ()
    %67 = vector.broadcast %2 : vector<8x1x16xf32> to vector<8x16x16xf32>
    %68 = arith.mulf %66, %67 : vector<8x16x16xf32>
    %cst_44 = arith.constant dense<0xFF800000> : vector<8x16xf32>
    %69 = vector.multi_reduction <maximumf>, %68, %cst_44 [2] : vector<8x16x16xf32> to vector<8x16xf32>
    %70 = vector.shape_cast %69 : vector<8x16xf32> to vector<8x16x1xf32>
    %71 = vector.broadcast %70 : vector<8x16x1xf32> to vector<8x16x16xf32>
    %72 = arith.subf %68, %71 : vector<8x16x16xf32>
    %73 = math.exp %72 : vector<8x16x16xf32>
    %cst_45 = arith.constant dense<0.000000e+00> : vector<8x16xf32>
    %74 = vector.multi_reduction <add>, %73, %cst_45 [2] : vector<8x16x16xf32> to vector<8x16xf32>
    %75 = vector.shape_cast %74 : vector<8x16xf32> to vector<8x16x1xf32>
    %76 = tpu.reciprocal %75 {approx = true} : vector<8x16x1xf32> -> vector<8x16x1xf32>
    %77 = vector.broadcast %76 : vector<8x16x1xf32> to vector<8x16x16xf32>
    %78 = arith.mulf %73, %77 : vector<8x16x16xf32>
    %79 = vector.broadcast %2 : vector<8x1x16xf32> to vector<8x16x16xf32>
    %80 = arith.mulf %78, %79 : vector<8x16x16xf32>
    %cst_46 = arith.constant dense<0.000000e+00> : vector<8x16xf32>
    %81 = vector.multi_reduction <add>, %80, %cst_46 [2] : vector<8x16x16xf32> to vector<8x16xf32>
    %82 = vector.shape_cast %81 : vector<8x16xf32> to vector<8x16x1xf32>
    %cst_47 = arith.constant 9.99999982E-14 : f32
    %83 = vector.broadcast %cst_47 : f32 to vector<8x16x1xf32>
    %84 = arith.addf %82, %83 : vector<8x16x1xf32>
    %85 = tpu.reciprocal %84 {approx = true} : vector<8x16x1xf32> -> vector<8x16x1xf32>
    %86 = vector.broadcast %85 : vector<8x16x1xf32> to vector<8x16x16xf32>
    %87 = arith.mulf %80, %86 : vector<8x16x16xf32>
    %88 = arith.truncf %87 : vector<8x16x16xf32> to vector<8x16x16xbf16>
    %c0_48 = arith.constant 0 : index
    %c0_49 = arith.constant 0 : index
    %c0_50 = arith.constant 0 : index
    %89 = vector.load %arg17[%c0_48, %c0_49, %c0_50] : memref<8x16x16xbf16, #tpu.memory_space<vmem>>, vector<8x16x16xbf16>
    tpu.vector_store %arg17[%c0_48, %c0_49, %c0_50], %88 {strides = array<i32>} : memref<8x16x16xbf16, #tpu.memory_space<vmem>>, vector<8x16x16xbf16>,
    %90 = arith.truncf %87 : vector<8x16x16xf32> to vector<8x16x16xbf16>
    "tpu.trace_start"() <{level = 10 : i32, message = "bqp,bpd->bqd"}> : () -> ()
    %cst_51 = arith.constant dense<0.000000e+00> : vector<8x16x32xf32>
    %91 = tpu.matmul %90, %0, %cst_51 {dimension_numbers = #tpu.dot_dimension_numbers<[2], [1], [1], [2], [0, 0, 0, 1, 1, 2], [0], [0]>} : vector<8x16x16xbf16>, vector<8x16x32xbf16>, vector<8x16x32xf32> -> vector<8x16x32xf32>
    "tpu.trace_stop"() : () -> ()
    %cst_52 = arith.constant dense<0.000000e+00> : vector<128x32xf32>
    %92 = tpu.matmul %7, %24, %cst_52 {dimension_numbers = #tpu.dot_dimension_numbers<[1], [0], [0], [1], [0, 0, 1, 1], [], []>} : vector<128x32xbf16>, vector<32x32xbf16>, vector<128x32xf32> -> vector<128x32xf32>
    %93 = vector.shape_cast %91 : vector<8x16x32xf32> to vector<128x32xf32>
    %94 = arith.truncf %93 : vector<128x32xf32> to vector<128x32xbf16>
    %cst_53 = arith.constant dense<0.000000e+00> : vector<128x32xf32>
    %95 = tpu.matmul %94, %25, %cst_53 {dimension_numbers = #tpu.dot_dimension_numbers<[1], [0], [0], [1], [0, 0, 1, 1], [], []>} : vector<128x32xbf16>, vector<32x32xbf16>, vector<128x32xf32> -> vector<128x32xf32>
    %96 = arith.addf %92, %95 : vector<128x32xf32>
    %97 = vector.broadcast %26 : vector<1x32xf32> to vector<128x32xf32>
    %98 = arith.addf %96, %97 : vector<128x32xf32>
    %cst_54 = arith.constant 0.000000e+00 : f32
    %99 = vector.broadcast %cst_54 : f32 to vector<128x32xf32>
    %100 = arith.maximumf %98, %99 : vector<128x32xf32>
    %101 = vector.shape_cast %100 : vector<128x32xf32> to vector<8x16x32xf32>
    %102 = vector.broadcast %5 : vector<8x16x1xf32> to vector<8x16x32xf32>
    %103 = arith.mulf %101, %102 : vector<8x16x32xf32>
    %cst_55 = arith.constant dense<0.000000e+00> : vector<8x32xf32>
    %104 = vector.multi_reduction <add>, %103, %cst_55 [1] : vector<8x16x32xf32> to vector<8x32xf32>
    %c0_56 = arith.constant 0 : index
    %c0_57 = arith.constant 0 : index
    %105 = vector.load %arg12[%c0_56, %c0_57] : memref<32x4xf32, #tpu.memory_space<vmem>>, vector<32x4xf32>
    %cst_58 = arith.constant dense<0.000000e+00> : vector<8x4xf32>
    %106 = tpu.matmul %65, %105, %cst_58 {dimension_numbers = #tpu.dot_dimension_numbers<[1], [0], [0], [1], [0, 0, 1, 1], [], []>} : vector<8x32xf32>, vector<32x4xf32>, vector<8x4xf32> -> vector<8x4xf32>
    %c0_59 = arith.constant 0 : index
    %c0_60 = arith.constant 0 : index
    %107 = vector.load %arg13[%c0_59, %c0_60] : memref<32x4xf32, #tpu.memory_space<vmem>>, vector<32x4xf32>
    %cst_61 = arith.constant dense<0.000000e+00> : vector<8x4xf32>
    %108 = tpu.matmul %104, %107, %cst_61 {dimension_numbers = #tpu.dot_dimension_numbers<[1], [0], [0], [1], [0, 0, 1, 1], [], []>} : vector<8x32xf32>, vector<32x4xf32>, vector<8x4xf32> -> vector<8x4xf32>
    %109 = arith.addf %106, %108 : vector<8x4xf32>
    %c0_62 = arith.constant 0 : index
    %c0_63 = arith.constant 0 : index
    %110 = vector.load %arg14[%c0_62, %c0_63] : memref<1x4xf32, #tpu.memory_space<vmem>>, vector<1x4xf32>
    %111 = vector.broadcast %110 : vector<1x4xf32> to vector<8x4xf32>
    %112 = arith.addf %109, %111 : vector<8x4xf32>
    %c0_64 = arith.constant 0 : index
    %c0_65 = arith.constant 0 : index
    %c0_66 = arith.constant 0 : index
    %113 = vector.load %arg15[%c0_64, %c0_65, %c0_66] : memref<1x8x4xf32, #tpu.memory_space<vmem>>, vector<1x8x4xf32>
    %114 = vector.shape_cast %113 : vector<1x8x4xf32> to vector<8x4xf32>
    %115 = vector.shape_cast %112 : vector<8x4xf32> to vector<1x8x4xf32>
    tpu.vector_store %arg15[%c0_64, %c0_65, %c0_66], %115 {strides = array<i32>} : memref<1x8x4xf32, #tpu.memory_space<vmem>>, vector<1x8x4xf32>,
    return
  }
  func.func @transform_0(%arg0: i32) -> (i32, i32, i32) {
    %c0_i32 = arith.constant 0 : i32
    %c0_i32_0 = arith.constant 0 : i32
    %c0_i32_1 = arith.constant 0 : i32
    return %arg0, %c0_i32, %c0_i32_0 : i32, i32, i32
  }
  func.func @transform_1(%arg0: i32) -> (i32, i32, i32) {
    %c0_i32 = arith.constant 0 : i32
    %c0_i32_0 = arith.constant 0 : i32
    %c0_i32_1 = arith.constant 0 : i32
    return %arg0, %c0_i32, %c0_i32_0 : i32, i32, i32
  }
  func.func @transform_2(%arg0: i32) -> (i32, i32, i32) {
    %c0_i32 = arith.constant 0 : i32
    %c0_i32_0 = arith.constant 0 : i32
    %c0_i32_1 = arith.constant 0 : i32
    return %arg0, %c0_i32, %c0_i32_0 : i32, i32, i32
  }
  func.func @transform_3(%arg0: i32) -> (i32, i32, i32) {
    %c0_i32 = arith.constant 0 : i32
    %c0_i32_0 = arith.constant 0 : i32
    %c0_i32_1 = arith.constant 0 : i32
    return %arg0, %c0_i32, %c0_i32_0 : i32, i32, i32
  }
  func.func @transform_4(%arg0: i32) -> (i32, i32, i32) {
    %c0_i32 = arith.constant 0 : i32
    %c0_i32_0 = arith.constant 0 : i32
    %c0_i32_1 = arith.constant 0 : i32
    return %arg0, %c0_i32, %c0_i32_0 : i32, i32, i32
  }
  func.func @transform_5(%arg0: i32) -> (i32, i32, i32) {
    %c0_i32 = arith.constant 0 : i32
    %c0_i32_0 = arith.constant 0 : i32
    %c0_i32_1 = arith.constant 0 : i32
    return %arg0, %c0_i32, %c0_i32_0 : i32, i32, i32
  }
  func.func @transform_6(%arg0: i32) -> (i32, i32) {
    %c0_i32 = arith.constant 0 : i32
    %c0_i32_0 = arith.constant 0 : i32
    %c0_i32_1 = arith.constant 0 : i32
    return %c0_i32, %c0_i32_0 : i32, i32
  }
  func.func @transform_7(%arg0: i32) -> (i32, i32) {
    %c0_i32 = arith.constant 0 : i32
    %c0_i32_0 = arith.constant 0 : i32
    %c0_i32_1 = arith.constant 0 : i32
    return %c0_i32, %c0_i32_0 : i32, i32
  }
  func.func @transform_8(%arg0: i32) -> (i32, i32) {
    %c0_i32 = arith.constant 0 : i32
    %c0_i32_0 = arith.constant 0 : i32
    %c0_i32_1 = arith.constant 0 : i32
    return %c0_i32, %c0_i32_0 : i32, i32
  }
  func.func @transform_9(%arg0: i32) -> (i32, i32) {
    %c0_i32 = arith.constant 0 : i32
    %c0_i32_0 = arith.constant 0 : i32
    %c0_i32_1 = arith.constant 0 : i32
    return %c0_i32, %c0_i32_0 : i32, i32
  }
  func.func @transform_10(%arg0: i32) -> (i32, i32) {
    %c0_i32 = arith.constant 0 : i32
    %c0_i32_0 = arith.constant 0 : i32
    %c0_i32_1 = arith.constant 0 : i32
    return %c0_i32, %c0_i32_0 : i32, i32
  }
  func.func @transform_11(%arg0: i32) -> (i32, i32) {
    %c0_i32 = arith.constant 0 : i32
    %c0_i32_0 = arith.constant 0 : i32
    %c0_i32_1 = arith.constant 0 : i32
    return %c0_i32, %c0_i32_0 : i32, i32
  }
  func.func @transform_12(%arg0: i32) -> (i32, i32) {
    %c0_i32 = arith.constant 0 : i32
    %c0_i32_0 = arith.constant 0 : i32
    %c0_i32_1 = arith.constant 0 : i32
    return %c0_i32, %c0_i32_0 : i32, i32
  }
  func.func @transform_13(%arg0: i32) -> (i32, i32) {
    %c0_i32 = arith.constant 0 : i32
    %c0_i32_0 = arith.constant 0 : i32
    %c0_i32_1 = arith.constant 0 : i32
    return %c0_i32, %c0_i32_0 : i32, i32
  }
  func.func @transform_14(%arg0: i32) -> (i32, i32, i32) {
    %c0_i32 = arith.constant 0 : i32
    %c0_i32_0 = arith.constant 0 : i32
    %c0_i32_1 = arith.constant 0 : i32
    return %arg0, %c0_i32, %c0_i32_0 : i32, i32, i32
  }
  func.func @transform_15(%arg0: i32) -> (i32, i32, i32) {
    %c0_i32 = arith.constant 0 : i32
    %c0_i32_0 = arith.constant 0 : i32
    %c0_i32_1 = arith.constant 0 : i32
    return %arg0, %c0_i32, %c0_i32_0 : i32, i32, i32
  }
  func.func @transform_16(%arg0: i32) -> (i32, i32, i32) {
    %c0_i32 = arith.constant 0 : i32
    %c0_i32_0 = arith.constant 0 : i32
    %c0_i32_1 = arith.constant 0 : i32
    return %arg0, %c0_i32, %c0_i32_0 : i32, i32, i32
  }
}

</mosaic_0001>

<bundles_post_ra>
// kernel: tpu_custom_call.1
= control target key start
LH: loop header
LB: loop body
LE: loop exit
PB: predicated region body
PF: predicated region fallthrough
CT: control target
= control target key end

     0   :  { %s6524_s0 = inlined_call_operand.vmem [shape: bf16[8,16,32], index: 0, kind: input, shape index: {}]   ;;  %s6525_s1 = inlined_call_operand.vmem [shape: bf16[8,16,32], index: 1, kind: input, shape index: {}]   ;;  %s6526_s2 = inlined_call_operand.vmem [shape: f32[8,1,16], index: 2, kind: input, shape index: {}]   ;;  %s6527_s3 = inlined_call_operand.vmem [shape: f32[8,1,16], index: 3, kind: input, shape index: {}]   ;;  %s6528_s4 = inlined_call_operand.vmem [shape: f32[8,16,1], index: 4, kind: input, shape index: {}]   ;;  %s6529_s5 = inlined_call_operand.vmem [shape: f32[8,16,1], index: 5, kind: input, shape index: {}]   ;;  %s6530_s6 = inlined_call_operand.vmem [shape: bf16[32,32], index: 6, kind: input, shape index: {}]   ;;  %s6531_s7 = inlined_call_operand.vmem [shape: f32[1,32], index: 7, kind: input, shape index: {}]   ;;  %s6532_s8 = inlined_call_operand.vmem [shape: bf16[32,32], index: 8, kind: input, shape index: {}]   ;;  %s6533_s9 = inlined_call_operand.vmem [shape: bf16[32,32], index: 9, kind: input, shape index: {}]   ;;  %s6534_s10 = inlined_call_operand.vmem [shape: f32[1,32], index: 10, kind: input, shape index: {}]   ;;  %s6535_s11 = inlined_call_operand.vmem [shape: f32[32,4], index: 11, kind: input, shape index: {}]   ;;  %s6536_s12 = inlined_call_operand.vmem [shape: f32[32,4], index: 12, kind: input, shape index: {}]   ;;  %s6537_s13 = inlined_call_operand.vmem [shape: f32[1,4], index: 13, kind: input, shape index: {}]   ;;  %s6538_s14 = inlined_call_operand.vmem [shape: f32[1,8,4], index: 14, kind: output, shape index: {0}]   ;;  %s6539_s15 = inlined_call_operand.hbm [shape: bf16[8,16,16], index: 15, kind: output, shape index: {1}]   ;;  %s6540_s16 = inlined_call_operand.hbm [shape: bf16[8,16,16], index: 16, kind: output, shape index: {2}]  }
   0x1   :  { %6544 = sst [smem:[#allocation14_spill]] %s6524_s0 }
   0x2   :  { %22 = vsyncpa [#allocation3], 0  ;;  %v4607_v0 = vld [vmem:[%s6530_s6 + $0x8] sm:$0xff]   ;;  %v4608_v1 = vld [vmem:[%s6530_s6] sm:$0xff]   ;;  %vm196_vm0 = vcmask 261120   ;;  %s6545_s29 = sld [smem:[#allocation14_spill]] }
   0x3   :  { %4284 = vmatprep.subr.bf16.mxu1 %v4607_v0  ;;  %v4998_v2 = vld [vmem:[%s6525_s1] sm:$0xff]   ;;  %4264 = vmatprep.subr.bf16.mxu0 %v4607_v0  ;;  %v5008_v4 = vld [vmem:[%s6525_s1 + $0x8] sm:$0xff]   ;;  %v4612_v6 = vld [vmem:[%s6525_s1 + $0x10] sm:$0xff]  }
   0x4   :  { %4285 = vmatpush3.bf16.msra.mxu1 %v4607_v0  ;;  %4265 = vmatpush3.bf16.msra.mxu0 %v4607_v0  ;;  %v4614_v8 = vld [vmem:[%s6525_s1 + $0x18] sm:$0xff]   ;;  %v4616_v9 = vld [vmem:[%s6525_s1 + $0x20] sm:$0xff]  }
   0x5   :  { %4286 = vmatprep.subr.bf16.mxu1 %v4608_v1  ;;  %4288 = vmatprep.mubr.msk.bf16.mxu1 %vm196_vm0, %v4998_v2 }
   0x6   :  { %4266 = vmatprep.subr.bf16.mxu0 %v4608_v1 }
   0x8   :  { %v4611_v3 = vld [vmem:[%s6545_s29] sm:$0xff]   ;;  %v4613_v5 = vld [vmem:[%s6545_s29 + $0x8] sm:$0xff]   ;;  %4287 = vmatpush3.bf16.msra.mxu1 %v4608_v1  ;;  %4267 = vmatpush3.bf16.msra.mxu0 %v4608_v1  ;;  %v4615_v7 = vld [vmem:[%s6545_s29 + $0x10] sm:$0xff]  }
   0x9   :  { %4268 = vmatprep.mubr.msk.bf16.mxu0 %vm196_vm0, %v4611_v3  ;;  %v4617_v10 = vld [vmem:[%s6545_s29 + $0x18] sm:$0xff]   ;;  %v4619_v11 = vld [vmem:[%s6545_s29 + $0x20] sm:$0xff]  }
   0xb   :  { %4289 = vmatmul.mubr.msk.bf16.vlgmr.msra.gmra.mxu1 %vm196_vm0, %v5008_v4  ;;  %4269 = vmatmul.mubr.msk.bf16.vlgmr.msra.gmra.mxu0 %vm196_vm0, %v4613_v5 }
   0xc   :  { %4292 = vmatprep.mubr.msk.bf16.mxu1 %vm196_vm0, %v4612_v6  ;;  %4272 = vmatprep.mubr.msk.bf16.mxu0 %vm196_vm0, %v4615_v7 }
  0x13   :  { %4293 = vmatmul.mubr.msk.bf16.gmra.mxu1 %vm196_vm0, %v4614_v8  ;;  %4273 = vmatmul.mubr.msk.bf16.gmra.mxu0 %vm196_vm0, %v4617_v10 }
  0x14   :  { %4296 = vmatprep.mubr.msk.bf16.mxu1 %vm196_vm0, %v4616_v9  ;;  %4276 = vmatprep.mubr.msk.bf16.mxu0 %vm196_vm0, %v4619_v11 }
  0x15   :  { %23 = vsyncpa [#allocation5], 0  ;;  %v4618_v12 = vld [vmem:[%s6525_s1 + $0x28] sm:$0xff]   ;;  %v4620_v14 = vld [vmem:[%s6525_s1 + $0x30] sm:$0xff]   ;;  %v6542_v18 = vmov 0.0   ;;  %vm4898_vm1 = vmmov 0  }
  0x16   :  { %v4621_v13 = vld [vmem:[%s6545_s29 + $0x28] sm:$0xff]   ;;  %v4623_v15 = vld [vmem:[%s6545_s29 + $0x30] sm:$0xff]   ;;  %v4622_v16 = vld [vmem:[%s6525_s1 + $0x38] sm:$0xff]   ;;  %4310 = vmatprep.subr.bf16.mxu1 %v6542_v18  ;;  %4304 = vmatprep.subr.bf16.mxu0 %v6542_v18  ;;  %vm976_vm2 = vcmask 130048   ;;  %vm1329_vm3 = vcmask 125952   ;;  %vm3724_vm4 = vcmask 1041409  }
  0x17   :  { %v4624_v17 = vld [vmem:[%s6545_s29 + $0x38] sm:$0xff]   ;;  %v5074_v19 = vld [vmem:[%s6531_s7] ss:$0 sm:$0xff]  ;;  %vm3726_vm5 = vcmask 1042434   ;;  %vm3728_vm6 = vcmask 1043459   ;;  %vm3730_vm7 = vcmask 1044484  }
  0x18   :  { %vm3732_vm8 = vcmask 1045509   ;;  %vm3734_vm9 = vcmask 1046534   ;;  %vm3736_vm10 = vcmask 1047559   ;;  %s4901_s26 = smov [#allocation4]  }
  0x19   :  { %s3926_s27 = sshll.u32 %s4901_s26, 4  ;;  %s3927_s27 = int_to_ptr.vmem [resolvable:$true] %s3926_s27 }
  0x1b   :  { %4297 = vmatmul.mubr.msk.bf16.gmra.mxu1 %vm196_vm0, %v4618_v12  ;;  %4277 = vmatmul.mubr.msk.bf16.gmra.mxu0 %vm196_vm0, %v4621_v13 }
  0x1c   :  { %4300 = vmatprep.mubr.msk.bf16.mxu1 %vm196_vm0, %v4620_v14  ;;  %4280 = vmatprep.mubr.msk.bf16.mxu0 %vm196_vm0, %v4623_v15 }
  0x23   :  { %4301 = vmatmul.mubr.msk.bf16.gmra.mxu1 %vm196_vm0, %v4622_v16  ;;  %4281 = vmatmul.mubr.msk.bf16.gmra.mxu0 %vm196_vm0, %v4624_v17 }
  0x24   :  { %4312 = vmatprep.mubr.msk.bf16.mxu1 %vm4898_vm1, %v6542_v18  ;;  %4306 = vmatprep.mubr.msk.bf16.mxu0 %vm4898_vm1, %v6542_v18 }
  0xcb   :  { %v4290_v20 = vpop.f32.mrf.mxu1  ;;  %v4270_v21 = vpop.f32.mrf.mxu0 }
  0xcc   :  { %v441_v24 = vadd.f32 %v4290_v20, %v5074_v19  ;;  %v264_v34 = vadd.f32 %v4270_v21, %v5074_v19 }
  0xcd   :  { %v432_v22 = vpop.f32.mrf.mxu1  ;;  %v255_v23 = vpop.f32.mrf.mxu0 }
  0xce   :  { %v433_v27 = vadd.f32 %v5074_v19, %v432_v22  ;;  %v497_v31 = vmax.f32 %v441_v24, 0.0  ;;  %v256_v41 = vadd.f32 %v5074_v19, %v255_v23  ;;  %v320_v48 = vmax.f32 %v264_v34, 0.0 }
  0xcf   :  { %v4291_v25 = vpop.f32.mrf.mxu1  ;;  %v4271_v26 = vpop.f32.mrf.mxu0 }
  0xd0   :  { %v444_v28 = vadd.f32 %v4291_v25, %v5074_v19  ;;  %v267_v36 = vadd.f32 %v4271_v26, %v5074_v19  ;;  %v495_v38 = vmax.f32 %v433_v27, 0.0  ;;  %v318_v55 = vmax.f32 %v256_v41, 0.0 }
  0xd1   :  { %v435_v29 = vpop.f32.mrf.mxu1  ;;  %v258_v30 = vpop.f32.mrf.mxu0 }
  0xd2   :  { %v498_v32 = vmax.f32 %v444_v28, 0.0  ;;  %v436_v33 = vadd.f32 %v5074_v19, %v435_v29  ;;  %v259_v47 = vadd.f32 %v5074_v19, %v258_v30  ;;  %v321_v49 = vmax.f32 %v267_v36, 0.0 }
  0xd3   :  { %v4294_v35 = vpop.f32.mrf.mxu1  ;;  %v4274_v37 = vpop.f32.mrf.mxu0 }
  0xd4   :  { %v5082_v39 = vpack.c.bf16 %v498_v32, %v497_v31  ;;  %v496_v40 = vmax.f32 %v436_v33, 0.0  ;;  %v457_v45 = vadd.f32 %v4294_v35, %v5074_v19  ;;  %v319_v60 = vmax.f32 %v259_v47, 0.0 }
  0xd5   :  { %v448_v42 = vpop.f32.mrf.mxu1  ;;  %v271_v43 = vpop.f32.mrf.mxu0  ;;  %v5098_v62 = vpack.c.bf16 %v321_v49, %v320_v48  ;;  %v280_v63 = vadd.f32 %v4274_v37, %v5074_v19 }
  0xd6   :  { %v5085_v44 = vpack.c.bf16 %v496_v40, %v495_v38  ;;  %v587_v46 = vsel %vm196_vm0, %v5082_v39, 0  ;;  %v449_v52 = vadd.f32 %v5074_v19, %v448_v42  ;;  %v501_v58 = vmax.f32 %v457_v45, 0.0 }
  0xd7   :  { %v4295_v50 = vpop.f32.mrf.mxu1  ;;  %4311 = vmatpush3.bf16.xpose.msra.mxu1 %v587_v46  ;;  %v4275_v51 = vpop.f32.mrf.mxu0  ;;  %v272_v8 = vadd.f32 %v5074_v19, %v271_v43  ;;  %v5105_v11 = vpack.c.bf16 %v319_v60, %v318_v55  ;;  %v324_v15 = vmax.f32 %v280_v63, 0.0 }
  0xd8   :  { %v460_v53 = vadd.f32 %v4295_v50, %v5074_v19  ;;  %v540_v54 = vsel %vm196_vm0, %v5085_v44, 0  ;;  %4322 = vmatprep.subr.bf16.mxu1 %v6542_v18  ;;  %v499_v3 = vmax.f32 %v449_v52, 0.0  ;;  %v283_v7 = vadd.f32 %v4275_v51, %v5074_v19 }
  0xd9   :  { %v451_v56 = vpop.f32.mrf.mxu1  ;;  %4305 = vmatpush3.bf16.xpose.msra.mxu0 %v540_v54  ;;  %v274_v57 = vpop.f32.mrf.mxu0  ;;  %v322_v25 = vmax.f32 %v272_v8, 0.0 }
  0xda   :  { %v502_v59 = vmax.f32 %v460_v53, 0.0  ;;  %v452_v61 = vadd.f32 %v5074_v19, %v451_v56  ;;  %4316 = vmatprep.subr.bf16.mxu0 %v6542_v18  ;;  %v275_v14 = vadd.f32 %v5074_v19, %v274_v57  ;;  %v325_v22 = vmax.f32 %v283_v7, 0.0 }
  0xdb   :  { %v4298_v0 = vpop.f32.mrf.mxu1  ;;  %v4278_v1 = vpop.f32.mrf.mxu0 }
  0xdc   :  { %v5101_v5 = vpack.c.bf16 %v502_v59, %v501_v58  ;;  %v500_v6 = vmax.f32 %v452_v61, 0.0  ;;  %v473_v13 = vadd.f32 %v4298_v0, %v5074_v19  ;;  %v323_v30 = vmax.f32 %v275_v14, 0.0 }
  0xdd   :  { %v464_v9 = vpop.f32.mrf.mxu1  ;;  %v287_v10 = vpop.f32.mrf.mxu0  ;;  %v5128_v35 = vpack.c.bf16 %v325_v22, %v324_v15  ;;  %v296_v38 = vadd.f32 %v4278_v1, %v5074_v19 }
  0xde   :  { %v5107_v12 = vpack.c.bf16 %v500_v6, %v499_v3  ;;  %4313 = vmatmul.mubr.msk.bf16.vlgmr.msra.gmra.mxu1 %vm196_vm0, %v5098_v62  ;;  %v681_v17 = vsel %vm196_vm0, %v5101_v5, 0  ;;  %v465_v21 = vadd.f32 %v5074_v19, %v464_v9  ;;  %v505_v28 = vmax.f32 %v473_v13, 0.0 }
  0xdf   :  { %v4299_v16 = vpop.f32.mrf.mxu1  ;;  %v4279_v20 = vpop.f32.mrf.mxu0  ;;  %4324 = vmatprep.mubr.msk.bf16.mxu1 %vm4898_vm1, %v6542_v18  ;;  %4323 = vmatpush3.bf16.xpose.msra.mxu1 %v681_v17  ;;  %v288_v40 = vadd.f32 %v5074_v19, %v287_v10  ;;  %v5136_v46 = vpack.c.bf16 %v323_v30, %v322_v25  ;;  %v328_v55 = vmax.f32 %v296_v38, 0.0  ;;  %v5203_v25 = vld [vmem:[%s6527_s3 + $0x1] ss:$0 sm:$0xff] }
  0xe0   :  { %v476_v23 = vadd.f32 %v4299_v16, %v5074_v19  ;;  %4307 = vmatmul.mubr.msk.bf16.vlgmr.msra.gmra.mxu0 %vm196_vm0, %v5105_v11  ;;  %v634_v24 = vsel %vm196_vm0, %v5107_v12, 0  ;;  %4334 = vmatprep.subr.bf16.mxu1 %v6542_v18  ;;  %v503_v34 = vmax.f32 %v465_v21, 0.0  ;;  %v299_v42 = vadd.f32 %v4279_v20, %v5074_v19 }
  0xe1   :  { %v467_v26 = vpop.f32.mrf.mxu1  ;;  %4317 = vmatpush3.bf16.xpose.msra.mxu0 %v634_v24  ;;  %4318 = vmatprep.mubr.msk.bf16.mxu0 %vm4898_vm1, %v6542_v18  ;;  %v290_v27 = vpop.f32.mrf.mxu0  ;;  %v326_v56 = vmax.f32 %v288_v40, 0.0 }
  0xe2   :  { %v506_v29 = vmax.f32 %v476_v23, 0.0  ;;  %v468_v31 = vadd.f32 %v5074_v19, %v467_v26  ;;  %4328 = vmatprep.subr.bf16.mxu0 %v6542_v18  ;;  %v291_v43 = vadd.f32 %v5074_v19, %v290_v27  ;;  %v329_v57 = vmax.f32 %v299_v42, 0.0 }
  0xe3   :  { %v4302_v32 = vpop.f32.mrf.mxu1  ;;  %v4282_v33 = vpop.f32.mrf.mxu0 }
  0xe4   :  { %v5130_v36 = vpack.c.bf16 %v506_v29, %v505_v28  ;;  %v504_v37 = vmax.f32 %v468_v31, 0.0  ;;  %v489_v48 = vadd.f32 %v4302_v32, %v5074_v19  ;;  %v327_v58 = vmax.f32 %v291_v43, 0.0  ;;  %v5231_v43 = vld [vmem:[%s6527_s3 + $0x2] ss:$0 sm:$0xff] }
  0xe5   :  { %v480_v41 = vpop.f32.mrf.mxu1  ;;  %v303_v45 = vpop.f32.mrf.mxu0  ;;  %v5160_v7 = vpack.c.bf16 %v329_v57, %v328_v55  ;;  %v312_v9 = vadd.f32 %v4282_v33, %v5074_v19 }
  0xe6   :  { %v5138_v47 = vpack.c.bf16 %v504_v37, %v503_v34  ;;  %4325 = vmatmul.mubr.msk.bf16.vlgmr.msra.gmra.mxu1 %vm196_vm0, %v5128_v35  ;;  %v775_v50 = vsel %vm196_vm0, %v5130_v36, 0  ;;  %v481_v52 = vadd.f32 %v5074_v19, %v480_v41  ;;  %v509_v60 = vmax.f32 %v489_v48, 0.0 }
  0xe7   :  { %v4303_v49 = vpop.f32.mrf.mxu1  ;;  %v4283_v51 = vpop.f32.mrf.mxu0  ;;  %4335 = vmatpush3.bf16.xpose.msra.mxu1 %v775_v50  ;;  %4336 = vmatprep.mubr.msk.bf16.mxu1 %vm4898_vm1, %v6542_v18  ;;  %v5162_v8 = vpack.c.bf16 %v327_v58, %v326_v56  ;;  %v304_v14 = vadd.f32 %v5074_v19, %v303_v45  ;;  %v332_v20 = vmax.f32 %v312_v9, 0.0  ;;  %v5238_v50 = vld [vmem:[%s6527_s3 + $0x3] ss:$0 sm:$0xff] }
  0xe8   :  { %v492_v53 = vadd.f32 %v4303_v49, %v5074_v19  ;;  %4319 = vmatmul.mubr.msk.bf16.vlgmr.msra.gmra.mxu0 %vm196_vm0, %v5136_v46  ;;  %v728_v54 = vsel %vm196_vm0, %v5138_v47, 0  ;;  %4346 = vmatprep.subr.bf16.mxu1 %v6542_v18  ;;  %v507_v1 = vmax.f32 %v481_v52, 0.0  ;;  %v315_v10 = vadd.f32 %v4283_v51, %v5074_v19 }
  0xe9   :  { %v483_v59 = vpop.f32.mrf.mxu1  ;;  %4329 = vmatpush3.bf16.xpose.msra.mxu0 %v728_v54  ;;  %4330 = vmatprep.mubr.msk.bf16.mxu0 %vm4898_vm1, %v6542_v18  ;;  %v306_v0 = vpop.f32.mrf.mxu0 }
  0xea   :  { %v510_v61 = vmax.f32 %v492_v53, 0.0  ;;  %v484_v63 = vadd.f32 %v5074_v19, %v483_v59  ;;  %4340 = vmatprep.subr.bf16.mxu0 %v6542_v18  ;;  %v307_v15 = vadd.f32 %v5074_v19, %v306_v0  ;;  %v333_v21 = vmax.f32 %v315_v10, 0.0  ;;  %v5266_v10 = vld [vmem:[%s6527_s3 + $0x5] ss:$0 sm:$0xff] }
  0xeb   :  { %v330_v19 = vmax.f32 %v304_v14, 0.0 }
  0xec   :  { %v5158_v3 = vpack.c.bf16 %v510_v61, %v509_v60  ;;  %v508_v6 = vmax.f32 %v484_v63, 0.0  ;;  %v331_v22 = vmax.f32 %v307_v15, 0.0  ;;  %v5184_v23 = vpack.c.bf16 %v333_v21, %v332_v20  ;;  %v5254_v61 = vld [vmem:[%s6527_s3 + $0x4] ss:$0 sm:$0xff] }
  0xee   :  { %v5166_v13 = vpack.c.bf16 %v508_v6, %v507_v1  ;;  %v869_v16 = vsel %vm196_vm0, %v5158_v3, 0  ;;  %4337 = vmatmul.mubr.msk.bf16.vlgmr.msra.gmra.mxu1 %vm196_vm0, %v5160_v7  ;;  %v5186_v24 = vpack.c.bf16 %v331_v22, %v330_v19 }
  0xef   :  { %4347 = vmatpush3.bf16.xpose.msra.mxu1 %v869_v16  ;;  %4348 = vmatprep.mubr.msk.bf16.mxu1 %vm4898_vm1, %v6542_v18 }
  0xf0   :  { %4331 = vmatmul.mubr.msk.bf16.vlgmr.msra.gmra.mxu0 %vm196_vm0, %v5162_v8  ;;  %v822_v17 = vsel %vm196_vm0, %v5166_v13, 0  ;;  %4358 = vmatprep.subr.bf16.mxu1 %v6542_v18 }
  0xf1   :  { %4341 = vmatpush3.bf16.xpose.msra.mxu0 %v822_v17  ;;  %4342 = vmatprep.mubr.msk.bf16.mxu0 %vm4898_vm1, %v6542_v18 }
  0xf2   :  { %4352 = vmatprep.subr.bf16.mxu0 %v6542_v18 }
  0xf6   :  { %4349 = vmatmul.mubr.msk.bf16.vlgmr.msra.gmra.mxu1 %vm196_vm0, %v5184_v23 }
  0xf7   :  { %4359 = vmatpush3.bf16.msra.mxu1 %v5008_v4  ;;  %4360 = vmatprep.mubr.msk.bf16.mxu1 %vm4898_vm1, %v6542_v18 }
  0xf8   :  { %4343 = vmatmul.mubr.msk.bf16.vlgmr.msra.gmra.mxu0 %vm196_vm0, %v5186_v24  ;;  %4370 = vmatprep.subr.bf16.mxu1 %v6542_v18 }
  0xf9   :  { %4353 = vmatpush3.bf16.msra.mxu0 %v4998_v2  ;;  %4354 = vmatprep.mubr.msk.bf16.mxu0 %vm4898_vm1, %v6542_v18  ;;  %v5208_v2 = vld [vmem:[%s6527_s3] ss:$0 sm:$0xff] }
  0xfa   :  { %4364 = vmatprep.subr.bf16.mxu0 %v6542_v18 }
 0x19e   :  { %v623_v26 = vpop.f32.mrf.mxu1 }
 0x19f   :  { %v5211_v4 = vmul.f32 %v5203_v25, %v623_v26 }
 0x1a0   :  { %v576_v27 = vpop.f32.mrf.mxu0  ;;  %v4314_v28 = vpop.f32.mrf.mxu1 }
 0x1a1   :  { %v5214_v29 = vmul.f32 %v5208_v2, %v576_v27  ;;  %v983_v30 = vsel %vm976_vm2, %v5211_v4, -inf }
 0x1a2   :  { %984 = vmax.xlane.f32.xlu1 %v983_v30  ;;  %v4308_v31 = vpop.f32.mrf.mxu0  ;;  %v626_v32 = vpop.f32.mrf.mxu1  ;;  %v5284_v30 = vld [vmem:[%s6527_s3 + $0x6] ss:$0 sm:$0xff] }
 0x1a3   :  { %v5219_v33 = vmul.f32 %v5203_v25, %v626_v32  ;;  %v977_v34 = vsel %vm976_vm2, %v5214_v29, -inf }
 0x1a4   :  { %978 = vmax.xlane.f32.xlu0 %v977_v34  ;;  %v579_v37 = vpop.f32.mrf.mxu0  ;;  %v4315_v38 = vpop.f32.mrf.mxu1 }
 0x1a5   :  { %v5224_v40 = vmul.f32 %v5208_v2, %v579_v37  ;;  %v986_v41 = vsel %vm976_vm2, %v5219_v33, -inf }
 0x1a6   :  { %987 = vmax.xlane.f32.xlu1 %v986_v41  ;;  %v4309_v42 = vpop.f32.mrf.mxu0  ;;  %v717_v48 = vpop.f32.mrf.mxu1  ;;  %v5296_v41 = vld [vmem:[%s6527_s3 + $0x7] ss:$0 sm:$0xff] }
 0x1a7   :  { %v980_v45 = vsel %vm976_vm2, %v5224_v40, -inf  ;;  %v5244_v54 = vmul.f32 %v5238_v50, %v717_v48 }
 0x1a8   :  { %981 = vmax.xlane.f32.xlu0 %v980_v45  ;;  %v670_v49 = vpop.f32.mrf.mxu0  ;;  %v4326_v52 = vpop.f32.mrf.mxu1 }
 0x1a9   :  { %v5241_v51 = vmul.f32 %v5231_v43, %v670_v49  ;;  %v995_v0 = vsel %vm976_vm2, %v5244_v54, -inf }
 0x1aa   :  { %v4320_v53 = vpop.f32.mrf.mxu0  ;;  %v720_v56 = vpop.f32.mrf.mxu1 }
 0x1ab   :  { %v989_v55 = vsel %vm976_vm2, %v5241_v51, -inf  ;;  %v5257_v63 = vmul.f32 %v5238_v50, %v720_v56 }
 0x1ac   :  { %990 = vmax.xlane.f32.xlu0 %v989_v55  ;;  %v673_v57 = vpop.f32.mrf.mxu0  ;;  %v4327_v59 = vpop.f32.mrf.mxu1 }
 0x1ad   :  { %v5249_v58 = vmul.f32 %v5231_v43, %v673_v57  ;;  %v998_v20 = vsel %vm976_vm2, %v5257_v63, -inf }
 0x1ae   :  { %v4321_v60 = vpop.f32.mrf.mxu0  ;;  %v811_v6 = vpop.f32.mrf.mxu1 }
 0x1af   :  { %v992_v1 = vsel %vm976_vm2, %v5249_v58, -inf  ;;  %v5272_v17 = vmul.f32 %v5266_v10, %v811_v6 }
 0x1b0   :  { %996 = vmax.xlane.f32.xlu0 %v995_v0  ;;  %993 = vmax.xlane.f32.xlu1 %v992_v1  ;;  %v764_v9 = vpop.f32.mrf.mxu0  ;;  %v4338_v15 = vpop.f32.mrf.mxu1 }
 0x1b1   :  { %v5269_v14 = vmul.f32 %v5254_v61, %v764_v9  ;;  %v1007_v32 = vsel %vm976_vm2, %v5272_v17, -inf }
 0x1b2   :  { %v4332_v16 = vpop.f32.mrf.mxu0  ;;  %v814_v19 = vpop.f32.mrf.mxu1 }
 0x1b3   :  { %v1001_v21 = vsel %vm976_vm2, %v5269_v14, -inf  ;;  %v5287_v31 = vmul.f32 %v5266_v10, %v814_v19 }
 0x1b4   :  { %999 = vmax.xlane.f32.xlu1 %v998_v20  ;;  %1002 = vmax.xlane.f32.xlu0 %v1001_v21  ;;  %v767_v22 = vpop.f32.mrf.mxu0  ;;  %v4339_v27 = vpop.f32.mrf.mxu1 }
 0x1b5   :  { %v5279_v26 = vmul.f32 %v5254_v61, %v767_v22  ;;  %v1010_v52 = vsel %vm976_vm2, %v5287_v31, -inf }
 0x1b6   :  { %v4333_v28 = vpop.f32.mrf.mxu0  ;;  %v905_v37 = vpop.f32.mrf.mxu1 }
 0x1b7   :  { %v1004_v34 = vsel %vm976_vm2, %v5279_v26, -inf  ;;  %v5302_v49 = vmul.f32 %v5296_v41, %v905_v37 }
 0x1b8   :  { %1008 = vmax.xlane.f32.xlu0 %v1007_v32  ;;  %1005 = vmax.xlane.f32.xlu1 %v1004_v34  ;;  %v858_v38 = vpop.f32.mrf.mxu0  ;;  %v4350_v45 = vpop.f32.mrf.mxu1 }
 0x1b9   :  { %v5299_v42 = vmul.f32 %v5284_v30, %v858_v38  ;;  %v1019_v1 = vsel %vm976_vm2, %v5302_v49, -inf }
 0x1ba   :  { %v4344_v48 = vpop.f32.mrf.mxu0  ;;  %v908_v55 = vpop.f32.mrf.mxu1 }
 0x1bb   :  { %v1013_v53 = vsel %vm976_vm2, %v5299_v42, -inf  ;;  %v5312_v0 = vmul.f32 %v5296_v41, %v908_v55 }
 0x1bc   :  { %1011 = vmax.xlane.f32.xlu1 %v1010_v52  ;;  %1014 = vmax.xlane.f32.xlu0 %v1013_v53  ;;  %v861_v56 = vpop.f32.mrf.mxu0  ;;  %v4351_v59 = vpop.f32.mrf.mxu1 }
 0x1bd   :  { %v5309_v57 = vmul.f32 %v5284_v30, %v861_v56  ;;  %v1022_v9 = vsel %vm976_vm2, %v5312_v0, -inf }
 0x1be   :  { %v4345_v60 = vpop.f32.mrf.mxu0 }
 0x1bf   :  { %v1016_v6 = vsel %vm976_vm2, %v5309_v57, -inf }
 0x1c0   :  { %1020 = vmax.xlane.f32.xlu0 %v1019_v1  ;;  %1017 = vmax.xlane.f32.xlu1 %v1016_v6 }
 0x1c4   :  { %1023 = vmax.xlane.f32.xlu1 %v1022_v9 }
 0x22b   :  { %v985_v15 = vpop.xlane.xlu1 %984 }
 0x22c   :  { %v1027_v16 = vsub.f32 %v5211_v4, %v985_v15 }
 0x22d   :  { %v979_v20 = vpop.xlane.xlu0 %978 }
 0x22e   :  { %v1025_v21 = vsub.f32 %v5214_v29, %v979_v20  ;;  %v1045_v22 = vmul.f32 1.442695, %v1027_v16 }
 0x22f   :  { %v988_v19 = vpop.xlane.xlu1 %987 }
 0x230   :  { %v1041_v27 = vmul.f32 1.442695, %v1025_v21  ;;  %v1028_v28 = vsub.f32 %v5219_v33, %v988_v19 }
 0x231   :  { %v982_v32 = vpop.xlane.xlu0 %981 }
 0x232   :  { %4629 = vpow2.f32 %v1041_v27  ;;  %v1026_v34 = vsub.f32 %v5224_v40, %v982_v32  ;;  %v1047_v37 = vmul.f32 1.442695, %v1028_v28 }
 0x233   :  { %4631 = vpow2.f32 %v1045_v22 }
 0x234   :  { %v1043_v38 = vmul.f32 1.442695, %v1026_v34 }
 0x235   :  { %v991_v45 = vpop.xlane.xlu0 %990 }
 0x236   :  { %4633 = vpow2.f32 %v1043_v38  ;;  %v1029_v48 = vsub.f32 %v5241_v51, %v991_v45 }
 0x237   :  { %4635 = vpow2.f32 %v1047_v37 }
 0x238   :  { %v1049_v4 = vmul.f32 1.442695, %v1029_v48 }
 0x239   :  { %v997_v52 = vpop.xlane.xlu0 %996  ;;  %v994_v29 = vpop.xlane.xlu1 %993 }
 0x23a   :  { %4637 = vpow2.f32 %v1049_v4  ;;  %v1031_v53 = vsub.f32 %v5244_v54, %v997_v52  ;;  %v1030_v33 = vsub.f32 %v5249_v58, %v994_v29 }
 0x23c   :  { %v1053_v55 = vmul.f32 1.442695, %v1031_v53  ;;  %v1051_v56 = vmul.f32 1.442695, %v1030_v33 }
 0x23d   :  { %v1000_v59 = vpop.xlane.xlu1 %999  ;;  %v1003_v40 = vpop.xlane.xlu0 %1002 }
 0x23e   :  { %4639 = vpow2.f32 %v1053_v55  ;;  %v1032_v60 = vsub.f32 %v5257_v63, %v1000_v59  ;;  %v1033_v1 = vsub.f32 %v5269_v14, %v1003_v40 }
 0x23f   :  { %v5329_v6 = vpop.eup %4629  ;;  %4641 = vpow2.f32 %v1051_v56 }
 0x240   :  { %v1055_v51 = vmul.f32 1.442695, %v1032_v60  ;;  %v1057_v9 = vmul.f32 1.442695, %v1033_v1  ;;  %v1073_v15 = vsel %vm976_vm2, %v5329_v6, 0.0  ;;  %v5333_v54 = vpop.eup %4631 }
 0x241   :  { %v1009_v58 = vpop.xlane.xlu0 %1008  ;;  %v1006_v16 = vpop.xlane.xlu1 %1005  ;;  %1074 = vadd.xlane.f32.xlu0 %v1073_v15  ;;  %v1079_v22 = vsel %vm976_vm2, %v5333_v54, 0.0 }
 0x242   :  { %4643 = vpow2.f32 %v1055_v51  ;;  %v1035_v20 = vsub.f32 %v5272_v17, %v1009_v58  ;;  %v1034_v63 = vsub.f32 %v5279_v26, %v1006_v16 }
 0x243   :  { %v5337_v21 = vpop.eup %4633  ;;  %4645 = vpow2.f32 %v1057_v9 }
 0x244   :  { %v1061_v14 = vmul.f32 1.442695, %v1035_v20  ;;  %v1059_v19 = vmul.f32 1.442695, %v1034_v63  ;;  %v1076_v27 = vsel %vm976_vm2, %v5337_v21, 0.0  ;;  %v5343_v28 = vpop.eup %4635 }
 0x245   :  { %v1012_v32 = vpop.xlane.xlu1 %1011  ;;  %1080 = vadd.xlane.f32.xlu0 %v1079_v22  ;;  %v1015_v34 = vpop.xlane.xlu0 %1014  ;;  %1077 = vadd.xlane.f32.xlu1 %v1076_v27  ;;  %v1082_v4 = vsel %vm976_vm2, %v5343_v28, 0.0 }
 0x246   :  { %4647 = vpow2.f32 %v1061_v14  ;;  %v1036_v17 = vsub.f32 %v5287_v31, %v1012_v32  ;;  %v1037_v26 = vsub.f32 %v5299_v42, %v1015_v34 }
 0x247   :  { %v5347_v37 = vpop.eup %4637  ;;  %4649 = vpow2.f32 %v1059_v19 }
 0x248   :  { %v1063_v38 = vmul.f32 1.442695, %v1036_v17  ;;  %v1065_v45 = vmul.f32 1.442695, %v1037_v26  ;;  %v1085_v48 = vsel %vm976_vm2, %v5347_v37, 0.0 }
 0x249   :  { %1086 = vadd.xlane.f32.xlu0 %v1085_v48  ;;  %v1021_v52 = vpop.xlane.xlu0 %1020  ;;  %1083 = vadd.xlane.f32.xlu1 %v1082_v4  ;;  %v1018_v29 = vpop.xlane.xlu1 %1017 }
 0x24a   :  { %4651 = vpow2.f32 %v1063_v38  ;;  %v1039_v31 = vsub.f32 %v5302_v49, %v1021_v52  ;;  %v1038_v42 = vsub.f32 %v5309_v57, %v1018_v29 }
 0x24b   :  { %v5355_v53 = vpop.eup %4639  ;;  %4653 = vpow2.f32 %v1065_v45 }
 0x24c   :  { %v5357_v33 = vpop.eup %4641  ;;  %v1069_v55 = vmul.f32 1.442695, %v1039_v31  ;;  %v1067_v56 = vmul.f32 1.442695, %v1038_v42  ;;  %v1091_v59 = vsel %vm976_vm2, %v5355_v53, 0.0 }
 0x24d   :  { %1092 = vadd.xlane.f32.xlu0 %v1091_v59  ;;  %v1088_v40 = vsel %vm976_vm2, %v5357_v33, 0.0  ;;  %v1024_v60 = vpop.xlane.xlu1 %1023 }
 0x24e   :  { %4655 = vpow2.f32 %v1069_v55  ;;  %1089 = vadd.xlane.f32.xlu1 %v1088_v40  ;;  %v1040_v49 = vsub.f32 %v5312_v0, %v1024_v60 }
 0x24f   :  { %v5364_v57 = vpop.eup %4643  ;;  %4657 = vpow2.f32 %v1067_v56 }
 0x250   :  { %v5366_v1 = vpop.eup %4645  ;;  %v1071_v51 = vmul.f32 1.442695, %v1040_v49  ;;  %v1094_v9 = vsel %vm976_vm2, %v5364_v57, 0.0 }
 0x251   :  { %v1097_v15 = vsel %vm976_vm2, %v5366_v1, 0.0 }
 0x252   :  { %4659 = vpow2.f32 %v1071_v51  ;;  %1098 = vadd.xlane.f32.xlu0 %v1097_v15  ;;  %1095 = vadd.xlane.f32.xlu1 %v1094_v9 }
 0x253   :  { %v5372_v58 = vpop.eup %4647 }
 0x254   :  { %v5374_v16 = vpop.eup %4649  ;;  %v1103_v0 = vsel %vm976_vm2, %v5372_v58, 0.0 }
 0x255   :  { %v1100_v20 = vsel %vm976_vm2, %v5374_v16, 0.0 }
 0x256   :  { %1104 = vadd.xlane.f32.xlu0 %v1103_v0  ;;  %1101 = vadd.xlane.f32.xlu1 %v1100_v20 }
 0x257   :  { %v5380_v63 = vpop.eup %4651 }
 0x258   :  { %v5382_v14 = vpop.eup %4653  ;;  %v1106_v19 = vsel %vm976_vm2, %v5380_v63, 0.0 }
 0x259   :  { %v1109_v22 = vsel %vm976_vm2, %v5382_v14, 0.0 }
 0x25a   :  { %1110 = vadd.xlane.f32.xlu0 %v1109_v22  ;;  %1107 = vadd.xlane.f32.xlu1 %v1106_v19 }
 0x25b   :  { %v5388_v27 = vpop.eup %4655 }
 0x25c   :  { %v5390_v32 = vpop.eup %4657  ;;  %v1115_v34 = vsel %vm976_vm2, %v5388_v27, 0.0 }
 0x25d   :  { %v1112_v17 = vsel %vm976_vm2, %v5390_v32, 0.0 }
 0x25e   :  { %1116 = vadd.xlane.f32.xlu0 %v1115_v34  ;;  %1113 = vadd.xlane.f32.xlu1 %v1112_v17 }
 0x25f   :  { %v5396_v26 = vpop.eup %4659 }
 0x260   :  { %v1118_v38 = vsel %vm976_vm2, %v5396_v26, 0.0 }
 0x262   :  { %1119 = vadd.xlane.f32.xlu1 %v1118_v38 }
 0x2ca   :  { %v1075_v45 = vpop.xlane.xlu0 %1074 }
 0x2cb   :  { %4661 = vrcp.f32 %v1075_v45 }
 0x2ce   :  { %v1081_v48 = vpop.xlane.xlu0 %1080  ;;  %v1078_v4 = vpop.xlane.xlu1 %1077 }
 0x2cf   :  { %4663 = vrcp.f32 %v1081_v48 }
 0x2d0   :  { %4665 = vrcp.f32 %v1078_v4 }
 0x2d2   :  { %v1087_v52 = vpop.xlane.xlu0 %1086  ;;  %v1084_v29 = vpop.xlane.xlu1 %1083 }
 0x2d3   :  { %4667 = vrcp.f32 %v1087_v52 }
 0x2d4   :  { %4669 = vrcp.f32 %v1084_v29 }
 0x2d6   :  { %v1093_v31 = vpop.xlane.xlu0 %1092 }
 0x2d7   :  { %4671 = vrcp.f32 %v1093_v31  ;;  %v1090_v42 = vpop.xlane.xlu1 %1089 }
 0x2d8   :  { %v4662_v55 = vpop.eup %4661  ;;  %4673 = vrcp.f32 %v1090_v42 }
 0x2d9   :  { %v1137_v56 = vmul.f32 %v4662_v55, %v5329_v6 }
 0x2db   :  { %v1099_v59 = vpop.xlane.xlu0 %1098  ;;  %v1096_v40 = vpop.xlane.xlu1 %1095  ;;  %v5402_v60 = vmul.f32 %v5208_v2, %v1137_v56 }
 0x2dc   :  { %v4664_v49 = vpop.eup %4663  ;;  %4675 = vrcp.f32 %v1099_v59 }
 0x2dd   :  { %v4666_v51 = vpop.eup %4665  ;;  %4677 = vrcp.f32 %v1096_v40  ;;  %v1169_v9 = vsel %vm976_vm2, %v5402_v60, 0.0  ;;  %v1139_v15 = vmul.f32 %v4664_v49, %v5333_v54 }
 0x2de   :  { %1170 = vadd.xlane.f32.xlu0 %v1169_v9  ;;  %v1138_v0 = vmul.f32 %v4666_v51, %v5337_v21 }
 0x2df   :  { %v1105_v20 = vpop.xlane.xlu0 %1104  ;;  %v1102_v19 = vpop.xlane.xlu1 %1101  ;;  %v5409_v6 = vmul.f32 %v5203_v25, %v1139_v15 }
 0x2e0   :  { %v4668_v22 = vpop.eup %4667  ;;  %4679 = vrcp.f32 %v1105_v20  ;;  %v5412_v34 = vmul.f32 %v5208_v2, %v1138_v0 }
 0x2e1   :  { %v4670_v17 = vpop.eup %4669  ;;  %4681 = vrcp.f32 %v1102_v19  ;;  %v1175_v38 = vsel %vm976_vm2, %v5409_v6, 0.0  ;;  %v1141_v54 = vmul.f32 %v4668_v22, %v5347_v37 }
 0x2e2   :  { %1176 = vadd.xlane.f32.xlu0 %v1175_v38  ;;  %v1172_v21 = vsel %vm976_vm2, %v5412_v34, 0.0  ;;  %v1140_v45 = vmul.f32 %v4670_v17, %v5343_v28 }
 0x2e3   :  { %v1111_v48 = vpop.xlane.xlu0 %1110  ;;  %1173 = vadd.xlane.f32.xlu1 %v1172_v21  ;;  %v1108_v4 = vpop.xlane.xlu1 %1107  ;;  %v5421_v52 = vmul.f32 %v5231_v43, %v1141_v54 }
 0x2e4   :  { %v4672_v2 = vpop.eup %4671  ;;  %4683 = vrcp.f32 %v1111_v48  ;;  %v5424_v29 = vmul.f32 %v5203_v25, %v1140_v45 }
 0x2e5   :  { %v4674_v31 = vpop.eup %4673  ;;  %4685 = vrcp.f32 %v1108_v4  ;;  %v1181_v37 = vsel %vm976_vm2, %v5421_v52, 0.0  ;;  %v1143_v42 = vmul.f32 %v4672_v2, %v5355_v53 }
 0x2e6   :  { %1182 = vadd.xlane.f32.xlu0 %v1181_v37  ;;  %v1178_v28 = vsel %vm976_vm2, %v5424_v29, 0.0  ;;  %v1142_v55 = vmul.f32 %v4674_v31, %v5357_v33 }
 0x2e7   :  { %v1117_v56 = vpop.xlane.xlu0 %1116  ;;  %1179 = vadd.xlane.f32.xlu1 %v1178_v28  ;;  %v1114_v59 = vpop.xlane.xlu1 %1113  ;;  %v5433_v40 = vmul.f32 %v5238_v50, %v1143_v42 }
 0x2e8   :  { %4687 = vrcp.f32 %v1117_v56  ;;  %v5436_v25 = vmul.f32 %v5231_v43, %v1142_v55 }
 0x2e9   :  { %v4676_v49 = vpop.eup %4675  ;;  %4689 = vrcp.f32 %v1114_v59  ;;  %v1187_v53 = vsel %vm976_vm2, %v5433_v40, 0.0 }
 0x2ea   :  { %v4678_v51 = vpop.eup %4677  ;;  %1188 = vadd.xlane.f32.xlu0 %v1187_v53  ;;  %v1184_v33 = vsel %vm976_vm2, %v5436_v25, 0.0  ;;  %v1145_v9 = vmul.f32 %v4676_v49, %v5366_v1 }
 0x2eb   :  { %1185 = vadd.xlane.f32.xlu1 %v1184_v33  ;;  %v1120_v15 = vpop.xlane.xlu1 %1119  ;;  %v1144_v0 = vmul.f32 %v4678_v51, %v5364_v57 }
 0x2ec   :  { %4691 = vrcp.f32 %v1120_v15  ;;  %v5445_v43 = vmul.f32 %v5254_v61, %v1145_v9 }
 0x2ed   :  { %v4680_v20 = vpop.eup %4679  ;;  %v5448_v19 = vmul.f32 %v5238_v50, %v1144_v0 }
 0x2ee   :  { %v4682_v22 = vpop.eup %4681  ;;  %v1193_v17 = vsel %vm976_vm2, %v5445_v43, 0.0  ;;  %v1147_v38 = vmul.f32 %v4680_v20, %v5372_v58 }
 0x2ef   :  { %1194 = vadd.xlane.f32.xlu0 %v1193_v17  ;;  %v1190_v1 = vsel %vm976_vm2, %v5448_v19, 0.0  ;;  %v1146_v57 = vmul.f32 %v4682_v22, %v5374_v16 }
 0x2f0   :  { %1191 = vadd.xlane.f32.xlu1 %v1190_v1  ;;  %v5457_v54 = vmul.f32 %v5266_v10, %v1147_v38 }
 0x2f1   :  { %v4684_v21 = vpop.eup %4683  ;;  %v5460_v50 = vmul.f32 %v5254_v61, %v1146_v57 }
 0x2f2   :  { %v4686_v45 = vpop.eup %4685  ;;  %v1199_v48 = vsel %vm976_vm2, %v5457_v54, 0.0  ;;  %v1149_v58 = vmul.f32 %v4684_v21, %v5382_v14 }
 0x2f3   :  { %1200 = vadd.xlane.f32.xlu0 %v1199_v48  ;;  %v1196_v4 = vsel %vm976_vm2, %v5460_v50, 0.0  ;;  %v1148_v16 = vmul.f32 %v4686_v45, %v5380_v63 }
 0x2f4   :  { %1197 = vadd.xlane.f32.xlu1 %v1196_v4  ;;  %v5469_v2 = vmul.f32 %v5284_v30, %v1149_v58 }
 0x2f5   :  { %v4688_v31 = vpop.eup %4687  ;;  %v5472_v61 = vmul.f32 %v5266_v10, %v1148_v16 }
 0x2f6   :  { %v4690_v37 = vpop.eup %4689  ;;  %v1205_v42 = vsel %vm976_vm2, %v5469_v2, 0.0  ;;  %v1151_v14 = vmul.f32 %v4688_v31, %v5388_v27 }
 0x2f7   :  { %1206 = vadd.xlane.f32.xlu0 %v1205_v42  ;;  %v1202_v28 = vsel %vm976_vm2, %v5472_v61, 0.0  ;;  %v1150_v63 = vmul.f32 %v4690_v37, %v5390_v32 }
 0x2f8   :  { %1203 = vadd.xlane.f32.xlu1 %v1202_v28  ;;  %v5481_v55 = vmul.f32 %v5296_v41, %v1151_v14 }
 0x2f9   :  { %v4692_v56 = vpop.eup %4691  ;;  %v5484_v10 = vmul.f32 %v5284_v30, %v1150_v63 }
 0x2fa   :  { %v1211_v59 = vsel %vm976_vm2, %v5481_v55, 0.0  ;;  %v1152_v49 = vmul.f32 %v4692_v56, %v5396_v26 }
 0x2fb   :  { %1212 = vadd.xlane.f32.xlu0 %v1211_v59  ;;  %v1208_v27 = vsel %vm976_vm2, %v5484_v10, 0.0 }
 0x2fc   :  { %1209 = vadd.xlane.f32.xlu1 %v1208_v27  ;;  %v5492_v32 = vmul.f32 %v5296_v41, %v1152_v49 }
 0x2fe   :  { %v1214_v53 = vsel %vm976_vm2, %v5492_v32, 0.0 }
 0x300   :  { %1215 = vadd.xlane.f32.xlu1 %v1214_v53 }
 0x367   :  { %v1171_v51 = vpop.xlane.xlu0 %1170 }
 0x368   :  { %v1217_v30 = vadd.f32 1e-13, %v1171_v51 }
 0x36a   :  { %4693 = vrcp.f32 %v1217_v30 }
 0x36b   :  { %v1177_v33 = vpop.xlane.xlu0 %1176 }
 0x36c   :  { %v1219_v9 = vadd.f32 1e-13, %v1177_v33  ;;  %v1174_v15 = vpop.xlane.xlu1 %1173 }
 0x36d   :  { %v1218_v0 = vadd.f32 1e-13, %v1174_v15 }
 0x36e   :  { %4695 = vrcp.f32 %v1219_v9 }
 0x36f   :  { %4697 = vrcp.f32 %v1218_v0  ;;  %v1183_v26 = vpop.xlane.xlu0 %1182 }
 0x370   :  { %v1221_v20 = vadd.f32 1e-13, %v1183_v26  ;;  %v1180_v22 = vpop.xlane.xlu1 %1179  ;;  %v4821_v26 = vld [vmem:[%s6525_s1 + $0x10] sm:$0xff]  }
 0x371   :  { %v1220_v17 = vadd.f32 1e-13, %v1180_v22 }
 0x372   :  { %4699 = vrcp.f32 %v1221_v20 }
 0x373   :  { %4701 = vrcp.f32 %v1220_v17  ;;  %v1189_v41 = vpop.xlane.xlu0 %1188 }
 0x374   :  { %v1223_v38 = vadd.f32 1e-13, %v1189_v41  ;;  %v1186_v1 = vpop.xlane.xlu1 %1185 }
 0x375   :  { %v1222_v57 = vadd.f32 1e-13, %v1186_v1 }
 0x376   :  { %4703 = vrcp.f32 %v1223_v38 }
 0x377   :  { %v4694_v21 = vpop.eup %4693  ;;  %4705 = vrcp.f32 %v1222_v57 }
 0x378   :  { %v1195_v45 = vpop.xlane.xlu0 %1194  ;;  %v1249_v48 = vmul.f32 %v4694_v21, %v5402_v60 }
 0x379   :  { %v1225_v58 = vadd.f32 1e-13, %v1195_v45  ;;  %v1192_v4 = vpop.xlane.xlu1 %1191 }
 0x37a   :  { %v1224_v16 = vadd.f32 1e-13, %v1192_v4  ;;  %v4098_v31 = vpack.c.bf16 %v1249_v48, %v1249_v48 }
 0x37b   :  { %v4696_v37 = vpop.eup %4695  ;;  %4707 = vrcp.f32 %v1225_v58 }
 0x37c   :  { %v4698_v42 = vpop.eup %4697  ;;  %4709 = vrcp.f32 %v1224_v16  ;;  %v1201_v14 = vpop.xlane.xlu0 %1200  ;;  %1330 = vst.msk [vmem:[#allocation2] sm:$0xf] %vm1329_vm3, %v4098_v31  ;;  %v1251_v28 = vmul.f32 %v4696_v37, %v5409_v6 }
 0x37d   :  { %v1227_v63 = vadd.f32 1e-13, %v1201_v14  ;;  %v1198_v56 = vpop.xlane.xlu1 %1197  ;;  %v1250_v59 = vmul.f32 %v4698_v42, %v5412_v34 }
 0x37e   :  { %v1226_v49 = vadd.f32 1e-13, %v1198_v56  ;;  %v4100_v60 = vpack.c.bf16 %v1251_v28, %v1251_v28 }
 0x37f   :  { %v4700_v27 = vpop.eup %4699  ;;  %4711 = vrcp.f32 %v1227_v63  ;;  %v1265_v53 = vpack.c.bf16 %v1250_v59, %v1249_v48  ;;  %v4099_v51 = vpack.c.bf16 %v1250_v59, %v1250_v59  ;;  %v4822_v48 = vld [vmem:[%s6525_s1 + $0x18] sm:$0xff]  }
 0x380   :  { %v4702_v30 = vpop.eup %4701  ;;  %4713 = vrcp.f32 %v1226_v49  ;;  %v1207_v33 = vpop.xlane.xlu0 %1206  ;;  %1332 = vst.msk [vmem:[#allocation2 + $0x8] sm:$0xf] %vm1329_vm3, %v4100_v60  ;;  %v1253_v9 = vmul.f32 %v4700_v27, %v5421_v52  ;;  %v4824_v27 = vld [vmem:[%s6525_s1 + $0x28] sm:$0xff]  }
 0x381   :  { %v1229_v15 = vadd.f32 1e-13, %v1207_v33  ;;  %v1204_v0 = vpop.xlane.xlu1 %1203  ;;  %1331 = vst.msk [vmem:[#allocation2 + $0x4] sm:$0xf] %vm1329_vm3, %v4099_v51  ;;  %4355 = vmatmul.mubr.msk.bf16.vlgmr.msra.gmra.mxu0 %vm976_vm2, %v1265_v53  ;;  %v1252_v6 = vmul.f32 %v4702_v30, %v5424_v29 }
 0x382   :  { %v1228_v34 = vadd.f32 1e-13, %v1204_v0  ;;  %4365 = vmatpush3.bf16.msra.mxu0 %v4821_v26  ;;  %4366 = vmatprep.mubr.msk.bf16.mxu0 %vm4898_vm1, %v6542_v18  ;;  %v4102_v20 = vpack.c.bf16 %v1253_v9, %v1253_v9 }
 0x383   :  { %v4704_v22 = vpop.eup %4703  ;;  %4715 = vrcp.f32 %v1229_v15  ;;  %v1266_v52 = vpack.c.bf16 %v1252_v6, %v1251_v28  ;;  %v4101_v17 = vpack.c.bf16 %v1252_v6, %v1252_v6  ;;  %4376 = vmatprep.subr.bf16.mxu0 %v6542_v18  ;;  %v4823_v28 = vld [vmem:[%s6525_s1 + $0x20] sm:$0xff]   ;;  %v4825_v15 = vld [vmem:[%s6525_s1 + $0x30] sm:$0xff]  }
 0x384   :  { %v4706_v41 = vpop.eup %4705  ;;  %4717 = vrcp.f32 %v1228_v34  ;;  %v1213_v38 = vpop.xlane.xlu0 %1212  ;;  %1334 = vst.msk [vmem:[#allocation2 + $0x10] sm:$0xf] %vm1329_vm3, %v4102_v20  ;;  %v1255_v29 = vmul.f32 %v4704_v22, %v5433_v40 }
 0x385   :  { %v1231_v1 = vadd.f32 1e-13, %v1213_v38  ;;  %v1210_v57 = vpop.xlane.xlu1 %1209  ;;  %1333 = vst.msk [vmem:[#allocation2 + $0xc] sm:$0xf] %vm1329_vm3, %v4101_v17  ;;  %4361 = vmatmul.mubr.msk.bf16.vlgmr.msra.gmra.mxu1 %vm976_vm2, %v1266_v52  ;;  %v1254_v21 = vmul.f32 %v4706_v41, %v5436_v25  ;;  %v4826_v52 = vld [vmem:[%s6525_s1 + $0x38] sm:$0xff]  }
 0x386   :  { %v1230_v45 = vadd.f32 1e-13, %v1210_v57  ;;  %4371 = vmatpush3.bf16.msra.mxu1 %v4822_v48  ;;  %4372 = vmatprep.mubr.msk.bf16.mxu1 %vm4898_vm1, %v6542_v18  ;;  %v4104_v58 = vpack.c.bf16 %v1255_v29, %v1255_v29  ;;  %v4626_v57 = vld [vmem:[%s6532_s8] sm:$0xff]   ;;  %v4829_v48 = vld [vmem:[%s6545_s29 + $0x10] sm:$0xff]  }
 0x387   :  { %4719 = vrcp.f32 %v1231_v1  ;;  %v1267_v40 = vpack.c.bf16 %v1254_v21, %v1253_v9  ;;  %v4103_v4 = vpack.c.bf16 %v1254_v21, %v1254_v21  ;;  %4382 = vmatprep.subr.bf16.mxu1 %v6542_v18  ;;  %v5579_v21 = vld [vmem:[%s6545_s29] sm:$0xff]  }
 0x388   :  { %v4708_v16 = vpop.eup %4707  ;;  %4721 = vrcp.f32 %v1230_v45  ;;  %1336 = vst.msk [vmem:[#allocation2 + $0x18] sm:$0xf] %vm1329_vm3, %v4104_v58  ;;  %v584_v45 = vsel %vm196_vm0, %v5098_v62, 0  ;;  %v4830_v58 = vld [vmem:[%s6545_s29 + $0x18] sm:$0xff]   ;;  %v4832_v62 = vld [vmem:[%s6545_s29 + $0x28] sm:$0xff]  }
 0x389   :  { %v4710_v25 = vpop.eup %4709  ;;  %v1216_v31 = vpop.xlane.xlu1 %1215  ;;  %1335 = vst.msk [vmem:[#allocation2 + $0x14] sm:$0xf] %vm1329_vm3, %v4103_v4  ;;  %4367 = vmatmul.mubr.msk.bf16.vlgmr.msra.gmra.mxu0 %vm976_vm2, %v1267_v40  ;;  %v1257_v37 = vmul.f32 %v4708_v16, %v5445_v43  ;;  %v4831_v40 = vld [vmem:[%s6545_s29 + $0x20] sm:$0xff]   ;;  %v4833_v4 = vld [vmem:[%s6545_s29 + $0x30] sm:$0xff]   ;;  %v4834_v16 = vld [vmem:[%s6545_s29 + $0x38] sm:$0xff]  }
 0x38a   :  { %v1232_v42 = vadd.f32 1e-13, %v1216_v31  ;;  %v1256_v14 = vmul.f32 %v4710_v25, %v5448_v19  ;;  %4377 = vmatpush3.bf16.msra.mxu0 %v4823_v28  ;;  %4378 = vmatprep.mubr.msk.bf16.mxu0 %vm4898_vm1, %v6542_v18  ;;  %v4627_v25 = vld [vmem:[%s6533_s9 + $0x8] sm:$0xff]   ;;  %v678_v31 = vsel %vm196_vm0, %v5128_v35, 0  ;;  %v866_v35 = vsel %vm196_vm0, %v5184_v23, 0 }
 0x38b   :  { %v4106_v63 = vpack.c.bf16 %v1257_v37, %v1257_v37  ;;  %4388 = vmatprep.subr.bf16.mxu0 %v6542_v18 }
 0x38c   :  { %v4712_v56 = vpop.eup %4711  ;;  %4723 = vrcp.f32 %v1232_v42  ;;  %v1268_v59 = vpack.c.bf16 %v1256_v14, %v1255_v29  ;;  %v4105_v49 = vpack.c.bf16 %v1256_v14, %v1256_v14 }
 0x38d   :  { %v4714_v60 = vpop.eup %4713  ;;  %1338 = vst.msk [vmem:[#allocation2 + $0x20] sm:$0xf] %vm1329_vm3, %v4106_v63  ;;  %v1259_v43 = vmul.f32 %v4712_v56, %v5457_v54 }
 0x38e   :  { %1337 = vst.msk [vmem:[#allocation2 + $0x1c] sm:$0xf] %vm1329_vm3, %v4105_v49  ;;  %4373 = vmatmul.mubr.msk.bf16.vlgmr.msra.gmra.mxu1 %vm976_vm2, %v1268_v59  ;;  %v1258_v19 = vmul.f32 %v4714_v60, %v5460_v50  ;;  %v537_v60 = vsel %vm196_vm0, %v5105_v11, 0 }
 0x38f   :  { %4383 = vmatpush3.bf16.msra.mxu1 %v4824_v27  ;;  %4384 = vmatprep.mubr.msk.bf16.mxu1 %vm4898_vm1, %v6542_v18  ;;  %v4108_v53 = vpack.c.bf16 %v1259_v43, %v1259_v43 }
 0x390   :  { %v4716_v51 = vpop.eup %4715  ;;  %v1269_v30 = vpack.c.bf16 %v1258_v19, %v1257_v37  ;;  %v4107_v33 = vpack.c.bf16 %v1258_v19, %v1258_v19  ;;  %4394 = vmatprep.subr.bf16.mxu1 %v6542_v18  ;;  %v4628_v37 = vld [vmem:[%s6533_s9] sm:$0xff]  }
 0x391   :  { %v4718_v54 = vpop.eup %4717  ;;  %1340 = vst.msk [vmem:[#allocation2 + $0x28] sm:$0xf] %vm1329_vm3, %v4108_v53  ;;  %v1261_v9 = vmul.f32 %v4716_v51, %v5469_v2  ;;  %v4625_v2 = vld [vmem:[%s6532_s8 + $0x8] sm:$0xff]  }
 0x392   :  { %1339 = vst.msk [vmem:[#allocation2 + $0x24] sm:$0xf] %vm1329_vm3, %v4107_v33  ;;  %4379 = vmatmul.mubr.msk.bf16.vlgmr.msra.gmra.mxu0 %vm976_vm2, %v1269_v30  ;;  %v1260_v50 = vmul.f32 %v4718_v54, %v5472_v61 }
 0x393   :  { %4389 = vmatpush3.bf16.msra.mxu0 %v4825_v15  ;;  %4390 = vmatprep.mubr.msk.bf16.mxu0 %vm4898_vm1, %v6542_v18  ;;  %v4110_v0 = vpack.c.bf16 %v1261_v9, %v1261_v9 }
 0x394   :  { %v4720_v6 = vpop.eup %4719  ;;  %v1270_v34 = vpack.c.bf16 %v1260_v50, %v1259_v43  ;;  %v4109_v26 = vpack.c.bf16 %v1260_v50, %v1260_v50  ;;  %4400 = vmatprep.subr.bf16.mxu0 %v4627_v25 }
 0x395   :  { %v4722_v20 = vpop.eup %4721  ;;  %1342 = vst.msk [vmem:[#allocation2 + $0x30] sm:$0xf] %vm1329_vm3, %v4110_v0  ;;  %v1263_v61 = vmul.f32 %v4720_v6, %v5481_v55 }
 0x396   :  { %1341 = vst.msk [vmem:[#allocation2 + $0x2c] sm:$0xf] %vm1329_vm3, %v4109_v26  ;;  %4385 = vmatmul.mubr.msk.bf16.vlgmr.msra.gmra.mxu1 %vm976_vm2, %v1270_v34  ;;  %v1262_v22 = vmul.f32 %v4722_v20, %v5484_v10 }
 0x397   :  { %4395 = vmatpush3.bf16.msra.mxu1 %v4826_v52  ;;  %4396 = vmatprep.mubr.msk.bf16.mxu1 %vm4898_vm1, %v6542_v18  ;;  %v4112_v17 = vpack.c.bf16 %v1263_v61, %v1263_v61 }
 0x398   :  { %v1271_v41 = vpack.c.bf16 %v1262_v22, %v1261_v9  ;;  %v4111_v38 = vpack.c.bf16 %v1262_v22, %v1262_v22  ;;  %4420 = vmatprep.subr.bf16.mxu1 %v4625_v2 }
 0x399   :  { %v4724_v29 = vpop.eup %4723  ;;  %1344 = vst.msk [vmem:[#allocation2 + $0x38] sm:$0xf] %vm1329_vm3, %v4112_v17 }
 0x39a   :  { %1343 = vst.msk [vmem:[#allocation2 + $0x34] sm:$0xf] %vm1329_vm3, %v4111_v38  ;;  %4391 = vmatmul.mubr.msk.bf16.vlgmr.msra.gmra.mxu0 %vm976_vm2, %v1271_v41  ;;  %v1264_v55 = vmul.f32 %v4724_v29, %v5492_v32  ;;  %v4828_v32 = vld [vmem:[%s6545_s29 + $0x8] sm:$0xff]  }
 0x39b   :  { %4401 = vmatpush3.bf16.msra.mxu0 %v4627_v25 }
 0x39c   :  { %v1272_v10 = vpack.c.bf16 %v1264_v55, %v1263_v61  ;;  %v4113_v1 = vpack.c.bf16 %v1264_v55, %v1264_v55  ;;  %4402 = vmatprep.subr.bf16.mxu0 %v4628_v37 }
 0x39e   :  { %1345 = vst.msk [vmem:[#allocation2 + $0x3c] sm:$0xf] %vm1329_vm3, %v4113_v1  ;;  %4397 = vmatmul.mubr.msk.bf16.vlgmr.msra.gmra.mxu1 %vm976_vm2, %v1272_v10 }
 0x39f   :  { %4421 = vmatpush3.bf16.msra.mxu1 %v4625_v2  ;;  %4424 = vmatprep.mubr.msk.bf16.mxu1 %vm196_vm0, %v5579_v21 }
 0x3a0   :  { %4422 = vmatprep.subr.bf16.mxu1 %v4626_v57  ;;  %4403 = vmatpush3.bf16.msra.mxu0 %v4628_v37 }
 0x3a1   :  { %4440 = vmatprep.subr.bf16.mxu0 %v6542_v18 }
 0x3a3   :  { %4423 = vmatpush3.bf16.msra.mxu1 %v4626_v57 }
 0x3a4   :  { %4446 = vmatprep.subr.bf16.mxu1 %v6542_v18 }
 0x3a6   :  { %4425 = vmatmul.mubr.msk.bf16.vlgmr.msra.gmra.mxu1 %vm196_vm0, %v4828_v32 }
 0x3a7   :  { %4447 = vmatpush3.bf16.xpose.msra.mxu1 %v584_v45  ;;  %4428 = vmatprep.mubr.msk.bf16.mxu1 %vm196_vm0, %v4829_v48 }
 0x3a8   :  { %4458 = vmatprep.subr.bf16.mxu1 %v6542_v18 }
 0x3ae   :  { %4429 = vmatmul.mubr.msk.bf16.gmra.mxu1 %vm196_vm0, %v4830_v58  ;;  %v631_v58 = vsel %vm196_vm0, %v5136_v46, 0 }
 0x3af   :  { %4432 = vmatprep.mubr.msk.bf16.mxu1 %vm196_vm0, %v4831_v40 }
 0x3b6   :  { %4433 = vmatmul.mubr.msk.bf16.gmra.mxu1 %vm196_vm0, %v4832_v62 }
 0x3b7   :  { %4436 = vmatprep.mubr.msk.bf16.mxu1 %vm196_vm0, %v4833_v4 }
 0x3be   :  { %4437 = vmatmul.mubr.msk.bf16.gmra.mxu1 %vm196_vm0, %v4834_v16 }
 0x3bf   :  { %4448 = vmatprep.mubr.msk.bf16.mxu1 %vm4898_vm1, %v6542_v18 }
 0x3c6   :  { %4449 = vmatmul.mubr.msk.bf16.vlgmr.msra.gmra.mxu1 %vm196_vm0, %v5082_v39  ;;  %v772_v39 = vsel %vm196_vm0, %v5160_v7, 0 }
 0x3c7   :  { %4459 = vmatpush3.bf16.xpose.msra.mxu1 %v678_v31  ;;  %4460 = vmatprep.mubr.msk.bf16.mxu1 %vm4898_vm1, %v6542_v18 }
 0x3c8   :  { %4470 = vmatprep.subr.bf16.mxu1 %v6542_v18 }
 0x3ce   :  { %4461 = vmatmul.mubr.msk.bf16.vlgmr.msra.gmra.mxu1 %vm196_vm0, %v5101_v5 }
 0x3cf   :  { %4471 = vmatpush3.bf16.xpose.msra.mxu1 %v772_v39  ;;  %4472 = vmatprep.mubr.msk.bf16.mxu1 %vm4898_vm1, %v6542_v18 }
 0x3d0   :  { %4482 = vmatprep.subr.bf16.mxu1 %v6542_v18 }
 0x3d6   :  { %4473 = vmatmul.mubr.msk.bf16.vlgmr.msra.gmra.mxu1 %vm196_vm0, %v5130_v36 }
 0x3d7   :  { %4483 = vmatpush3.bf16.xpose.msra.mxu1 %v866_v35  ;;  %4484 = vmatprep.mubr.msk.bf16.mxu1 %vm4898_vm1, %v6542_v18 }
 0x3d8   :  { %4494 = vmatprep.subr.bf16.mxu1 %v6542_v18 }
 0x3de   :  { %4485 = vmatmul.mubr.msk.bf16.vlgmr.msra.gmra.mxu1 %vm196_vm0, %v5158_v3 }
 0x3df   :  { %4495 = vmatpush3.bf16.msra.mxu1 %v4828_v32  ;;  %4496 = vmatprep.mubr.msk.bf16.mxu1 %vm4898_vm1, %v6542_v18 }
 0x3e0   :  { %4506 = vmatprep.subr.bf16.mxu1 %v6542_v18 }
 0x441   :  { %v1384_v5 = vpop.f32.mrf.mxu0 }
 0x443   :  { %v4356_v36 = vpop.f32.mrf.mxu0 }
 0x445   :  { %v1387_v7 = vpop.f32.mrf.mxu0  ;;  %v1429_v42 = vpop.f32.mrf.mxu1 }
 0x446   :  { %v1706_v23 = vpack.c.bf16 %v1387_v7, %v1384_v5 }
 0x447   :  { %v4357_v14 = vpop.f32.mrf.mxu0  ;;  %v4362_v28 = vpop.f32.mrf.mxu1 }
 0x448   :  { %4404 = vmatprep.mubr.msk.bf16.mxu0 %vm196_vm0, %v1706_v23 }
 0x449   :  { %v1432_v63 = vpop.f32.mrf.mxu1  ;;  %v1474_v56 = vpop.f32.mrf.mxu0 }
 0x44a   :  { %v1707_v59 = vpack.c.bf16 %v1432_v63, %v1429_v42 }
 0x44b   :  { %v4363_v49 = vpop.f32.mrf.mxu1  ;;  %v4368_v3 = vpop.f32.mrf.mxu0 }
 0x44c   :  { %4405 = vmatmul.mubr.msk.bf16.vlgmr.msra.gmra.mxu0 %vm196_vm0, %v1707_v59 }
 0x44d   :  { %4441 = vmatpush3.bf16.xpose.msra.mxu0 %v537_v60  ;;  %v1477_v43 = vpop.f32.mrf.mxu0 }
 0x44e   :  { %v1708_v19 = vpack.c.bf16 %v1477_v43, %v1474_v56  ;;  %v1519_v27 = vpop.f32.mrf.mxu1  ;;  %4452 = vmatprep.subr.bf16.mxu0 %v6542_v18 }
 0x44f   :  { %v4369_v53 = vpop.f32.mrf.mxu0 }
 0x450   :  { %v4374_v51 = vpop.f32.mrf.mxu1  ;;  %4408 = vmatprep.mubr.msk.bf16.mxu0 %vm196_vm0, %v1708_v19 }
 0x452   :  { %v1522_v30 = vpop.f32.mrf.mxu1  ;;  %v1564_v33 = vpop.f32.mrf.mxu0 }
 0x453   :  { %v1709_v54 = vpack.c.bf16 %v1522_v30, %v1519_v27 }
 0x454   :  { %v4375_v9 = vpop.f32.mrf.mxu1  ;;  %v4380_v50 = vpop.f32.mrf.mxu0 }
 0x455   :  { %4409 = vmatmul.mubr.msk.bf16.gmra.mxu0 %vm196_vm0, %v1709_v54 }
 0x456   :  { %v1567_v15 = vpop.f32.mrf.mxu0  ;;  %v1609_v0 = vpop.f32.mrf.mxu1 }
 0x457   :  { %v1710_v11 = vpack.c.bf16 %v1567_v15, %v1564_v33 }
 0x458   :  { %v4381_v6 = vpop.f32.mrf.mxu0  ;;  %v4386_v34 = vpop.f32.mrf.mxu1 }
 0x459   :  { %4412 = vmatprep.mubr.msk.bf16.mxu0 %vm196_vm0, %v1710_v11 }
 0x45a   :  { %v1612_v26 = vpop.f32.mrf.mxu1  ;;  %v1654_v2 = vpop.f32.mrf.mxu0 }
 0x45b   :  { %v1711_v20 = vpack.c.bf16 %v1612_v26, %v1609_v0 }
 0x45c   :  { %v4387_v61 = vpop.f32.mrf.mxu1  ;;  %v4392_v22 = vpop.f32.mrf.mxu0 }
 0x45d   :  { %4413 = vmatmul.mubr.msk.bf16.gmra.mxu0 %vm196_vm0, %v1711_v20  ;;  %v5770_v20 = vld [vmem:[%s6526_s2 + $0x1] ss:$0 sm:$0xff] }
 0x45e   :  { %v1657_v52 = vpop.f32.mrf.mxu0  ;;  %v1699_v17 = vpop.f32.mrf.mxu1 }
 0x45f   :  { %v1712_v41 = vpack.c.bf16 %v1657_v52, %v1654_v2  ;;  %v5765_v2 = vld [vmem:[%s6526_s2] ss:$0 sm:$0xff] }
 0x460   :  { %v4393_v38 = vpop.f32.mrf.mxu0  ;;  %v4398_v29 = vpop.f32.mrf.mxu1 }
 0x461   :  { %4416 = vmatprep.mubr.msk.bf16.mxu0 %vm196_vm0, %v1712_v41 }
 0x462   :  { %v1702_v55 = vpop.f32.mrf.mxu1 }
 0x463   :  { %v1713_v10 = vpack.c.bf16 %v1702_v55, %v1699_v17 }
 0x464   :  { %v4399_v1 = vpop.f32.mrf.mxu1 }
 0x465   :  { %4417 = vmatmul.mubr.msk.bf16.gmra.mxu0 %vm196_vm0, %v1713_v10  ;;  %v5786_v10 = vld [vmem:[%s6526_s2 + $0x2] ss:$0 sm:$0xff] }
 0x466   :  { %v5661_v57 = vpop.f32.mrf.mxu1  ;;  %4442 = vmatprep.mubr.msk.bf16.mxu0 %vm4898_vm1, %v6542_v18 }
 0x468   :  { %v5665_v32 = vpop.f32.mrf.mxu1 }
 0x46a   :  { %v5667_v45 = vpop.f32.mrf.mxu1 }
 0x46c   :  { %v5669_v48 = vpop.f32.mrf.mxu1 }
 0x46d   :  { %4443 = vmatmul.mubr.msk.bf16.vlgmr.msra.gmra.mxu0 %vm196_vm0, %v5085_v44  ;;  %v725_v44 = vsel %vm196_vm0, %v5162_v8, 0 }
 0x46e   :  { %4453 = vmatpush3.bf16.xpose.msra.mxu0 %v631_v58  ;;  %v5675_v40 = vpop.f32.mrf.mxu1  ;;  %4454 = vmatprep.mubr.msk.bf16.mxu0 %vm4898_vm1, %v6542_v18 }
 0x46f   :  { %4464 = vmatprep.subr.bf16.mxu0 %v6542_v18 }
 0x470   :  { %v5680_v62 = vpop.f32.mrf.mxu1 }
 0x472   :  { %v5682_v4 = vpop.f32.mrf.mxu1 }
 0x474   :  { %v5684_v16 = vpop.f32.mrf.mxu1 }
 0x475   :  { %4455 = vmatmul.mubr.msk.bf16.vlgmr.msra.gmra.mxu0 %vm196_vm0, %v5107_v12  ;;  %v819_v12 = vsel %vm196_vm0, %v5186_v24, 0 }
 0x476   :  { %4465 = vmatpush3.bf16.xpose.msra.mxu0 %v725_v44  ;;  %v5690_v46 = vpop.f32.mrf.mxu1  ;;  %4466 = vmatprep.mubr.msk.bf16.mxu0 %vm4898_vm1, %v6542_v18 }
 0x477   :  { %4476 = vmatprep.subr.bf16.mxu0 %v6542_v18 }
 0x478   :  { %v5695_v25 = vpop.f32.mrf.mxu1 }
 0x47a   :  { %v5697_v31 = vpop.f32.mrf.mxu1 }
 0x47c   :  { %v5699_v37 = vpop.f32.mrf.mxu1 }
 0x47d   :  { %4467 = vmatmul.mubr.msk.bf16.vlgmr.msra.gmra.mxu0 %vm196_vm0, %v5138_v47 }
 0x47e   :  { %4477 = vmatpush3.bf16.xpose.msra.mxu0 %v819_v12  ;;  %v5705_v8 = vpop.f32.mrf.mxu1  ;;  %4478 = vmatprep.mubr.msk.bf16.mxu0 %vm4898_vm1, %v6542_v18  ;;  %v5798_v12 = vld [vmem:[%s6526_s2 + $0x3] ss:$0 sm:$0xff] }
 0x47f   :  { %6546 = vst [vmem:[#allocation8_spill] sm:$0xff] %v5705_v8  ;;  %4488 = vmatprep.subr.bf16.mxu0 %v6542_v18 }
 0x480   :  { %v5710_v39 = vpop.f32.mrf.mxu1 }
 0x481   :  { %6547 = vst [vmem:[#allocation9_spill] sm:$0xff] %v5710_v39 }
 0x482   :  { %v5712_v35 = vpop.f32.mrf.mxu1 }
 0x483   :  { %6548 = vst [vmem:[#allocation10_spill] sm:$0xff] %v5712_v35 }
 0x484   :  { %v5714_v5 = vpop.f32.mrf.mxu1 }
 0x485   :  { %4479 = vmatmul.mubr.msk.bf16.vlgmr.msra.gmra.mxu0 %vm196_vm0, %v5166_v13 }
 0x486   :  { %v2237_v47 = vpop.f32.mrf.mxu1  ;;  %4489 = vmatpush3.bf16.msra.mxu0 %v5579_v21  ;;  %4490 = vmatprep.mubr.msk.bf16.mxu0 %vm4898_vm1, %v6542_v18 }
 0x487   :  { %4500 = vmatprep.subr.bf16.mxu0 %v6542_v18  ;;  %v5776_v17 = vmul.f32 %v5770_v20, %v2237_v47 }
 0x488   :  { %v4450_v24 = vpop.f32.mrf.mxu1 }
 0x489   :  { %v2560_v58 = vsel %vm976_vm2, %v5776_v17, -inf }
 0x48a   :  { %v2240_v36 = vpop.f32.mrf.mxu1 }
 0x48b   :  { %v5789_v1 = vmul.f32 %v5770_v20, %v2240_v36 }
 0x48c   :  { %v4451_v7 = vpop.f32.mrf.mxu1 }
 0x48e   :  { %v2319_v42 = vpop.f32.mrf.mxu1 }
 0x48f   :  { %v5804_v36 = vmul.f32 %v5798_v12, %v2319_v42 }
 0x490   :  { %v4462_v23 = vpop.f32.mrf.mxu1 }
 0x491   :  { %v2563_v23 = vsel %vm976_vm2, %v5789_v1, -inf }
 0x492   :  { %v2322_v14 = vpop.f32.mrf.mxu1 }
 0x493   :  { %v5819_v42 = vmul.f32 %v5798_v12, %v2322_v14 }
 0x494   :  { %v4463_v28 = vpop.f32.mrf.mxu1 }
 0x496   :  { %v5722_v63 = vpop.f32.mrf.mxu1 }
 0x498   :  { %v4474_v56 = vpop.f32.mrf.mxu1 }
 0x49a   :  { %v5724_v59 = vpop.f32.mrf.mxu1 }
 0x49c   :  { %v4475_v13 = vpop.f32.mrf.mxu1 }
 0x49e   :  { %v5726_v49 = vpop.f32.mrf.mxu1 }
 0x4a0   :  { %v4486_v21 = vpop.f32.mrf.mxu1 }
 0x4a2   :  { %v5728_v3 = vpop.f32.mrf.mxu1 }
 0x4a4   :  { %v4487_v60 = vpop.f32.mrf.mxu1 }
 0x4a5   :  { %v5816_v60 = vld [vmem:[%s6526_s2 + $0x4] ss:$0 sm:$0xff] }
 0x50c   :  { %v5730_v43 = vpop.f32.mrf.mxu0 }
 0x50e   :  { %v5732_v19 = vpop.f32.mrf.mxu0 }
 0x510   :  { %v5734_v27 = vpop.f32.mrf.mxu0 }
 0x512   :  { %v5736_v53 = vpop.f32.mrf.mxu0 }
 0x515   :  { %v5738_v51 = vpop.f32.mrf.mxu0 }
 0x517   :  { %v5740_v30 = vpop.f32.mrf.mxu0 }
 0x519   :  { %v5742_v33 = vpop.f32.mrf.mxu0 }
 0x51b   :  { %v5744_v54 = vpop.f32.mrf.mxu0 }
 0x51d   :  { %v5746_v9 = vpop.f32.mrf.mxu0 }
 0x51f   :  { %v5748_v50 = vpop.f32.mrf.mxu0 }
 0x521   :  { %v5750_v15 = vpop.f32.mrf.mxu0 }
 0x523   :  { %v5752_v0 = vpop.f32.mrf.mxu0 }
 0x525   :  { %v5754_v11 = vpop.f32.mrf.mxu0 }
 0x526   :  { %6549 = vst [vmem:[#allocation11_spill] sm:$0xff] %v5754_v11 }
 0x527   :  { %v5756_v6 = vpop.f32.mrf.mxu0 }
 0x528   :  { %6550 = vst [vmem:[#allocation12_spill] sm:$0xff] %v5756_v6 }
 0x529   :  { %v5758_v34 = vpop.f32.mrf.mxu0 }
 0x52a   :  { %6551 = vst [vmem:[#allocation13_spill] sm:$0xff] %v5758_v34 }
 0x52b   :  { %v5760_v26 = vpop.f32.mrf.mxu0 }
 0x52d   :  { %v2196_v61 = vpop.f32.mrf.mxu0 }
 0x52e   :  { %v5773_v22 = vmul.f32 %v5765_v2, %v2196_v61  ;;  %v2572_v61 = vsel %vm976_vm2, %v5804_v36, -inf }
 0x52f   :  { %v4444_v52 = vpop.f32.mrf.mxu0 }
 0x530   :  { %v2554_v41 = vsel %vm976_vm2, %v5773_v22, -inf }
 0x531   :  { %2555 = vmax.xlane.f32.xlu0 %v2554_v41  ;;  %v2199_v38 = vpop.f32.mrf.mxu0  ;;  %v5828_v41 = vld [vmem:[%s6526_s2 + $0x5] ss:$0 sm:$0xff] }
 0x532   :  { %v5781_v29 = vmul.f32 %v5765_v2, %v2199_v38  ;;  %v5835_v14 = vmul.f32 %v5828_v41, %v5722_v63  ;;  %v5851_v63 = vmul.f32 %v5828_v41, %v5724_v59 }
 0x533   :  { %v4445_v55 = vpop.f32.mrf.mxu0 }
 0x534   :  { %v2557_v44 = vsel %vm976_vm2, %v5781_v29, -inf }
 0x535   :  { %2561 = vmax.xlane.f32.xlu0 %v2560_v58  ;;  %2558 = vmax.xlane.f32.xlu1 %v2557_v44  ;;  %v2278_v47 = vpop.f32.mrf.mxu0  ;;  %v2575_v44 = vsel %vm976_vm2, %v5819_v42, -inf }
 0x536   :  { %v5801_v24 = vmul.f32 %v5786_v10, %v2278_v47 }
 0x537   :  { %v4456_v7 = vpop.f32.mrf.mxu0 }
 0x538   :  { %v2566_v28 = vsel %vm976_vm2, %v5801_v24, -inf }
 0x539   :  { %2564 = vmax.xlane.f32.xlu1 %v2563_v23  ;;  %2567 = vmax.xlane.f32.xlu0 %v2566_v28  ;;  %v2281_v56 = vpop.f32.mrf.mxu0 }
 0x53a   :  { %v5811_v13 = vmul.f32 %v5786_v10, %v2281_v56  ;;  %v5847_v56 = vld [vmem:[%s6526_s2 + $0x6] ss:$0 sm:$0xff] }
 0x53b   :  { %v4457_v21 = vpop.f32.mrf.mxu0 }
 0x53c   :  { %v2569_v52 = vsel %vm976_vm2, %v5811_v13, -inf  ;;  %v2584_v21 = vsel %vm976_vm2, %v5835_v14, -inf }
 0x53d   :  { %2573 = vmax.xlane.f32.xlu0 %v2572_v61  ;;  %2570 = vmax.xlane.f32.xlu1 %v2569_v52  ;;  %v2360_v38 = vpop.f32.mrf.mxu0  ;;  %v5860_v52 = vld [vmem:[%s6526_s2 + $0x7] ss:$0 sm:$0xff] }
 0x53e   :  { %v5831_v55 = vmul.f32 %v5816_v60, %v2360_v38  ;;  %v5867_v59 = vmul.f32 %v5860_v52, %v5726_v49 }
 0x53f   :  { %v4468_v58 = vpop.f32.mrf.mxu0 }
 0x540   :  { %v2578_v47 = vsel %vm976_vm2, %v5831_v55, -inf  ;;  %v2596_v49 = vsel %vm976_vm2, %v5867_v59, -inf }
 0x541   :  { %2576 = vmax.xlane.f32.xlu1 %v2575_v44  ;;  %2579 = vmax.xlane.f32.xlu0 %v2578_v47  ;;  %v2363_v7 = vpop.f32.mrf.mxu0  ;;  %v2587_v47 = vsel %vm976_vm2, %v5851_v63, -inf }
 0x542   :  { %v5842_v23 = vmul.f32 %v5816_v60, %v2363_v7 }
 0x543   :  { %v4469_v28 = vpop.f32.mrf.mxu0 }
 0x544   :  { %v2581_v61 = vsel %vm976_vm2, %v5842_v23, -inf }
 0x545   :  { %2585 = vmax.xlane.f32.xlu0 %v2584_v21  ;;  %2582 = vmax.xlane.f32.xlu1 %v2581_v61  ;;  %v2442_v38 = vpop.f32.mrf.mxu0 }
 0x546   :  { %v5863_v58 = vmul.f32 %v5847_v56, %v2442_v38  ;;  %v5878_v38 = vmul.f32 %v5860_v52, %v5728_v3 }
 0x547   :  { %v4480_v44 = vpop.f32.mrf.mxu0 }
 0x548   :  { %v2590_v7 = vsel %vm976_vm2, %v5863_v58, -inf }
 0x549   :  { %2588 = vmax.xlane.f32.xlu1 %v2587_v47  ;;  %2591 = vmax.xlane.f32.xlu0 %v2590_v7  ;;  %v2445_v28 = vpop.f32.mrf.mxu0  ;;  %v2599_v47 = vsel %vm976_vm2, %v5878_v38, -inf }
 0x54a   :  { %v5874_v21 = vmul.f32 %v5847_v56, %v2445_v28 }
 0x54b   :  { %v4481_v61 = vpop.f32.mrf.mxu0 }
 0x54c   :  { %v2593_v44 = vsel %vm976_vm2, %v5874_v21, -inf }
 0x54d   :  { %2597 = vmax.xlane.f32.xlu0 %v2596_v49  ;;  %2594 = vmax.xlane.f32.xlu1 %v2593_v44 }
 0x551   :  { %2600 = vmax.xlane.f32.xlu1 %v2599_v47 }
 0x5ba   :  { %v2556_v7 = vpop.xlane.xlu0 %2555 }
 0x5bb   :  { %v2602_v28 = vsub.f32 %v5773_v22, %v2556_v7 }
 0x5bd   :  { %v2618_v61 = vmul.f32 1.442695, %v2602_v28 }
 0x5be   :  { %v2562_v18 = vpop.xlane.xlu0 %2561  ;;  %v2559_v8 = vpop.xlane.xlu1 %2558 }
 0x5bf   :  { %4725 = vpow2.f32 %v2618_v61  ;;  %v2604_v3 = vsub.f32 %v5776_v17, %v2562_v18  ;;  %v2603_v11 = vsub.f32 %v5781_v29, %v2559_v8 }
 0x5c1   :  { %v2622_v35 = vmul.f32 1.442695, %v2604_v3  ;;  %v2620_v34 = vmul.f32 1.442695, %v2603_v11 }
 0x5c2   :  { %v2565_v39 = vpop.xlane.xlu1 %2564  ;;  %v2568_v49 = vpop.xlane.xlu0 %2567 }
 0x5c3   :  { %4727 = vpow2.f32 %v2622_v35  ;;  %v2605_v44 = vsub.f32 %v5789_v1, %v2565_v39  ;;  %v2606_v47 = vsub.f32 %v5801_v24, %v2568_v49 }
 0x5c4   :  { %4729 = vpow2.f32 %v2620_v34 }
 0x5c5   :  { %v2624_v6 = vmul.f32 1.442695, %v2605_v44  ;;  %v2626_v22 = vmul.f32 1.442695, %v2606_v47 }
 0x5c6   :  { %v2574_v7 = vpop.xlane.xlu0 %2573  ;;  %v2571_v28 = vpop.xlane.xlu1 %2570 }
 0x5c7   :  { %4731 = vpow2.f32 %v2624_v6  ;;  %v2608_v61 = vsub.f32 %v5804_v36, %v2574_v7  ;;  %v2607_v18 = vsub.f32 %v5811_v13, %v2571_v28 }
 0x5c8   :  { %4733 = vpow2.f32 %v2626_v22 }
 0x5c9   :  { %v2630_v8 = vmul.f32 1.442695, %v2608_v61  ;;  %v2628_v11 = vmul.f32 1.442695, %v2607_v18 }
 0x5ca   :  { %v2577_v17 = vpop.xlane.xlu1 %2576  ;;  %v2580_v29 = vpop.xlane.xlu0 %2579 }
 0x5cb   :  { %4735 = vpow2.f32 %v2630_v8  ;;  %v2609_v39 = vsub.f32 %v5819_v42, %v2577_v17  ;;  %v2610_v35 = vsub.f32 %v5831_v55, %v2580_v29 }
 0x5cc   :  { %v5895_v34 = vpop.eup %4725  ;;  %4737 = vpow2.f32 %v2628_v11 }
 0x5cd   :  { %v2632_v1 = vmul.f32 1.442695, %v2609_v39  ;;  %v2634_v24 = vmul.f32 1.442695, %v2610_v35  ;;  %v2650_v6 = vsel %vm976_vm2, %v5895_v34, 0.0 }
 0x5ce   :  { %v2586_v36 = vpop.xlane.xlu0 %2585  ;;  %v2583_v13 = vpop.xlane.xlu1 %2582  ;;  %2651 = vadd.xlane.f32.xlu0 %v2650_v6 }
 0x5cf   :  { %4739 = vpow2.f32 %v2632_v1  ;;  %v2612_v3 = vsub.f32 %v5835_v14, %v2586_v36  ;;  %v2611_v49 = vsub.f32 %v5842_v23, %v2583_v13 }
 0x5d0   :  { %v5901_v44 = vpop.eup %4727  ;;  %4741 = vpow2.f32 %v2634_v24 }
 0x5d1   :  { %v5903_v42 = vpop.eup %4729  ;;  %v2638_v55 = vmul.f32 1.442695, %v2612_v3  ;;  %v2636_v47 = vmul.f32 1.442695, %v2611_v49  ;;  %v2656_v22 = vsel %vm976_vm2, %v5901_v44, 0.0 }
 0x5d2   :  { %v2589_v7 = vpop.xlane.xlu1 %2588  ;;  %2657 = vadd.xlane.f32.xlu0 %v2656_v22  ;;  %v2592_v28 = vpop.xlane.xlu0 %2591  ;;  %v2653_v61 = vsel %vm976_vm2, %v5903_v42, 0.0 }
 0x5d3   :  { %4743 = vpow2.f32 %v2638_v55  ;;  %v2613_v14 = vsub.f32 %v5851_v63, %v2589_v7  ;;  %v2614_v23 = vsub.f32 %v5863_v58, %v2592_v28  ;;  %2654 = vadd.xlane.f32.xlu1 %v2653_v61 }
 0x5d4   :  { %v5911_v18 = vpop.eup %4731  ;;  %4745 = vpow2.f32 %v2636_v47 }
 0x5d5   :  { %v5913_v8 = vpop.eup %4733  ;;  %v2640_v11 = vmul.f32 1.442695, %v2613_v14  ;;  %v2642_v17 = vmul.f32 1.442695, %v2614_v23  ;;  %v2659_v29 = vsel %vm976_vm2, %v5911_v18, 0.0 }
 0x5d6   :  { %v2662_v39 = vsel %vm976_vm2, %v5913_v8, 0.0  ;;  %v2598_v35 = vpop.xlane.xlu0 %2597  ;;  %v2595_v1 = vpop.xlane.xlu1 %2594 }
 0x5d7   :  { %4747 = vpow2.f32 %v2640_v11  ;;  %2663 = vadd.xlane.f32.xlu0 %v2662_v39  ;;  %v2616_v63 = vsub.f32 %v5867_v59, %v2598_v35  ;;  %2660 = vadd.xlane.f32.xlu1 %v2659_v29  ;;  %v2615_v58 = vsub.f32 %v5874_v21, %v2595_v1 }
 0x5d8   :  { %v5921_v24 = vpop.eup %4735  ;;  %4749 = vpow2.f32 %v2642_v17 }
 0x5d9   :  { %v5923_v6 = vpop.eup %4737  ;;  %v2646_v36 = vmul.f32 1.442695, %v2616_v63  ;;  %v2644_v13 = vmul.f32 1.442695, %v2615_v58  ;;  %v2668_v3 = vsel %vm976_vm2, %v5921_v24, 0.0 }
 0x5da   :  { %v2665_v49 = vsel %vm976_vm2, %v5923_v6, 0.0  ;;  %v2601_v55 = vpop.xlane.xlu1 %2600 }
 0x5db   :  { %4751 = vpow2.f32 %v2646_v36  ;;  %2669 = vadd.xlane.f32.xlu0 %v2668_v3  ;;  %2666 = vadd.xlane.f32.xlu1 %v2665_v49  ;;  %v2617_v59 = vsub.f32 %v5878_v38, %v2601_v55  ;;  %v4899_v3 = vmov 0  }
 0x5dc   :  { %v5930_v21 = vpop.eup %4739  ;;  %4753 = vpow2.f32 %v2644_v13  ;;  %4606 = vset.pattern.permute.xlu1 %v4899_v3  ;;  %4605 = vset.pattern.permute.xlu0 %v4899_v3 }
 0x5dd   :  { %v5932_v47 = vpop.eup %4741  ;;  %v2648_v22 = vmul.f32 1.442695, %v2617_v59  ;;  %v2671_v7 = vsel %vm976_vm2, %v5930_v21, 0.0 }
 0x5de   :  { %v2674_v28 = vsel %vm976_vm2, %v5932_v47, 0.0 }
 0x5df   :  { %4755 = vpow2.f32 %v2648_v22  ;;  %2675 = vadd.xlane.f32.xlu0 %v2674_v28  ;;  %2672 = vadd.xlane.f32.xlu1 %v2671_v7 }
 0x5e0   :  { %v5938_v61 = vpop.eup %4743 }
 0x5e1   :  { %v5940_v14 = vpop.eup %4745  ;;  %v2680_v38 = vsel %vm976_vm2, %v5938_v61, 0.0 }
 0x5e2   :  { %v2677_v23 = vsel %vm976_vm2, %v5940_v14, 0.0 }
 0x5e3   :  { %2681 = vadd.xlane.f32.xlu0 %v2680_v38  ;;  %2678 = vadd.xlane.f32.xlu1 %v2677_v23 }
 0x5e4   :  { %v5946_v11 = vpop.eup %4747 }
 0x5e5   :  { %v5948_v17 = vpop.eup %4749  ;;  %v2683_v29 = vsel %vm976_vm2, %v5946_v11, 0.0 }
 0x5e6   :  { %v2686_v39 = vsel %vm976_vm2, %v5948_v17, 0.0 }
 0x5e7   :  { %2687 = vadd.xlane.f32.xlu0 %v2686_v39  ;;  %2684 = vadd.xlane.f32.xlu1 %v2683_v29 }
 0x5e8   :  { %v5954_v35 = vpop.eup %4751 }
 0x5e9   :  { %v5956_v1 = vpop.eup %4753  ;;  %v2692_v63 = vsel %vm976_vm2, %v5954_v35, 0.0 }
 0x5ea   :  { %v2689_v58 = vsel %vm976_vm2, %v5956_v1, 0.0 }
 0x5eb   :  { %2693 = vadd.xlane.f32.xlu0 %v2692_v63  ;;  %2690 = vadd.xlane.f32.xlu1 %v2689_v58 }
 0x5ec   :  { %v5962_v36 = vpop.eup %4755 }
 0x5ed   :  { %v2695_v13 = vsel %vm976_vm2, %v5962_v36, 0.0 }
 0x5ef   :  { %2696 = vadd.xlane.f32.xlu1 %v2695_v13 }
 0x657   :  { %v2652_v49 = vpop.xlane.xlu0 %2651 }
 0x658   :  { %4757 = vrcp.f32 %v2652_v49 }
 0x65b   :  { %v2658_v55 = vpop.xlane.xlu0 %2657 }
 0x65c   :  { %4759 = vrcp.f32 %v2658_v55  ;;  %v2655_v59 = vpop.xlane.xlu1 %2654 }
 0x65d   :  { %4761 = vrcp.f32 %v2655_v59 }
 0x660   :  { %v2664_v22 = vpop.xlane.xlu0 %2663  ;;  %v2661_v7 = vpop.xlane.xlu1 %2660 }
 0x661   :  { %4763 = vrcp.f32 %v2664_v22 }
 0x662   :  { %4765 = vrcp.f32 %v2661_v7 }
 0x664   :  { %v2670_v28 = vpop.xlane.xlu0 %2669  ;;  %v2667_v38 = vpop.xlane.xlu1 %2666 }
 0x665   :  { %v4758_v23 = vpop.eup %4757  ;;  %4767 = vrcp.f32 %v2670_v28 }
 0x666   :  { %4769 = vrcp.f32 %v2667_v38  ;;  %v2714_v29 = vmul.f32 %v4758_v23, %v5895_v34 }
 0x668   :  { %v2676_v39 = vpop.xlane.xlu0 %2675  ;;  %v2673_v63 = vpop.xlane.xlu1 %2672  ;;  %v5968_v58 = vmul.f32 %v5765_v2, %v2714_v29 }
 0x669   :  { %v4760_v13 = vpop.eup %4759  ;;  %4771 = vrcp.f32 %v2676_v39 }
 0x66a   :  { %v4762_v3 = vpop.eup %4761  ;;  %4773 = vrcp.f32 %v2673_v63  ;;  %v2746_v49 = vsel %vm976_vm2, %v5968_v58, 0.0  ;;  %v2716_v55 = vmul.f32 %v4760_v13, %v5901_v44 }
 0x66b   :  { %2747 = vadd.xlane.f32.xlu0 %v2746_v49  ;;  %v2715_v59 = vmul.f32 %v4762_v3, %v5903_v42 }
 0x66c   :  { %v2682_v22 = vpop.xlane.xlu0 %2681  ;;  %v2679_v7 = vpop.xlane.xlu1 %2678  ;;  %v5975_v34 = vmul.f32 %v5770_v20, %v2716_v55 }
 0x66d   :  { %4775 = vrcp.f32 %v2682_v22  ;;  %v5978_v28 = vmul.f32 %v5765_v2, %v2715_v59 }
 0x66e   :  { %v4764_v38 = vpop.eup %4763  ;;  %4777 = vrcp.f32 %v2679_v7  ;;  %v2752_v23 = vsel %vm976_vm2, %v5975_v34, 0.0 }
 0x66f   :  { %v4766_v29 = vpop.eup %4765  ;;  %2753 = vadd.xlane.f32.xlu0 %v2752_v23  ;;  %v2749_v44 = vsel %vm976_vm2, %v5978_v28, 0.0  ;;  %v2718_v42 = vmul.f32 %v4764_v38, %v5913_v8 }
 0x670   :  { %v2688_v39 = vpop.xlane.xlu0 %2687  ;;  %2750 = vadd.xlane.f32.xlu1 %v2749_v44  ;;  %v2685_v63 = vpop.xlane.xlu1 %2684  ;;  %v2717_v13 = vmul.f32 %v4766_v29, %v5911_v18 }
 0x671   :  { %4779 = vrcp.f32 %v2688_v39  ;;  %v5987_v2 = vmul.f32 %v5786_v10, %v2718_v42 }
 0x672   :  { %v4768_v3 = vpop.eup %4767  ;;  %4781 = vrcp.f32 %v2685_v63  ;;  %v5990_v49 = vmul.f32 %v5770_v20, %v2717_v13 }
 0x673   :  { %v4770_v55 = vpop.eup %4769  ;;  %v2758_v59 = vsel %vm976_vm2, %v5987_v2, 0.0  ;;  %v2720_v8 = vmul.f32 %v4768_v3, %v5921_v24 }
 0x674   :  { %2759 = vadd.xlane.f32.xlu0 %v2758_v59  ;;  %v2694_v22 = vpop.xlane.xlu0 %2693  ;;  %v2755_v18 = vsel %vm976_vm2, %v5990_v49, 0.0  ;;  %v2691_v7 = vpop.xlane.xlu1 %2690  ;;  %v2719_v38 = vmul.f32 %v4770_v55, %v5923_v6 }
 0x675   :  { %4783 = vrcp.f32 %v2694_v22  ;;  %2756 = vadd.xlane.f32.xlu1 %v2755_v18  ;;  %v5999_v23 = vmul.f32 %v5798_v12, %v2720_v8 }
 0x676   :  { %v4772_v20 = vpop.eup %4771  ;;  %4785 = vrcp.f32 %v2691_v7  ;;  %v6002_v29 = vmul.f32 %v5786_v10, %v2719_v38 }
 0x677   :  { %v4774_v44 = vpop.eup %4773  ;;  %v2764_v24 = vsel %vm976_vm2, %v5999_v23, 0.0  ;;  %v2722_v42 = vmul.f32 %v4772_v20, %v5932_v47 }
 0x678   :  { %2765 = vadd.xlane.f32.xlu0 %v2764_v24  ;;  %v2761_v6 = vsel %vm976_vm2, %v6002_v29, 0.0  ;;  %v2697_v39 = vpop.xlane.xlu1 %2696  ;;  %v2721_v63 = vmul.f32 %v4774_v44, %v5930_v21 }
 0x679   :  { %2762 = vadd.xlane.f32.xlu1 %v2761_v6  ;;  %4787 = vrcp.f32 %v2697_v39  ;;  %v6011_v13 = vmul.f32 %v5816_v60, %v2722_v42 }
 0x67a   :  { %v4776_v10 = vpop.eup %4775  ;;  %v6014_v3 = vmul.f32 %v5798_v12, %v2721_v63 }
 0x67b   :  { %v4778_v55 = vpop.eup %4777  ;;  %v2770_v47 = vsel %vm976_vm2, %v6011_v13, 0.0  ;;  %v2724_v59 = vmul.f32 %v4776_v10, %v5938_v61 }
 0x67c   :  { %2771 = vadd.xlane.f32.xlu0 %v2770_v47  ;;  %v2767_v8 = vsel %vm976_vm2, %v6014_v3, 0.0  ;;  %v2723_v21 = vmul.f32 %v4778_v55, %v5940_v14 }
 0x67d   :  { %2768 = vadd.xlane.f32.xlu1 %v2767_v8  ;;  %v6023_v22 = vmul.f32 %v5828_v41, %v2724_v59  ;;  %v106_v8 = vld [vmem:[%s6528_s4 + $0x28] sm:$0xff] }
 0x67e   :  { %v4780_v18 = vpop.eup %4779  ;;  %v6026_v12 = vmul.f32 %v5816_v60, %v2723_v21  ;;  %v122_v21 = vld [vmem:[%s6529_s5 + $0x28] sm:$0xff] }
 0x67f   :  { %v4782_v7 = vpop.eup %4781  ;;  %v2776_v38 = vsel %vm976_vm2, %v6023_v22, 0.0  ;;  %v2726_v61 = vmul.f32 %v4780_v18, %v5948_v17  ;;  %v104_v18 = vld [vmem:[%s6528_s4 + $0x18] sm:$0xff] }
 0x680   :  { %2777 = vadd.xlane.f32.xlu0 %v2776_v38  ;;  %v2773_v20 = vsel %vm976_vm2, %v6026_v12, 0.0  ;;  %v2725_v14 = vmul.f32 %v4782_v7, %v5946_v11  ;;  %v108_v7 = vld [vmem:[%s6528_s4 + $0x38] sm:$0xff]  ;;  %v117_v38 = vld [vmem:[%s6529_s5] sm:$0xff] }
 0x681   :  { %2774 = vadd.xlane.f32.xlu1 %v2773_v20  ;;  %v6035_v44 = vmul.f32 %v5847_v56, %v2726_v61  ;;  %v124_v61 = vld [vmem:[%s6529_s5 + $0x38] sm:$0xff]  ;;  %v118_v20 = vld [vmem:[%s6529_s5 + $0x8] sm:$0xff] }
 0x682   :  { %v4784_v24 = vpop.eup %4783  ;;  %v6038_v60 = vmul.f32 %v5828_v41, %v2725_v14  ;;  %v110_v14 = vld [vmem:[%s6528_s4 + $0x48] sm:$0xff] }
 0x683   :  { %v4786_v42 = vpop.eup %4785  ;;  %v2782_v6 = vsel %vm976_vm2, %v6035_v44, 0.0  ;;  %v2728_v17 = vmul.f32 %v4784_v24, %v5954_v35  ;;  %v119_v24 = vld [vmem:[%s6529_s5 + $0x10] sm:$0xff] }
 0x684   :  { %2783 = vadd.xlane.f32.xlu0 %v2782_v6  ;;  %v2779_v39 = vsel %vm976_vm2, %v6038_v60, 0.0  ;;  %v2727_v11 = vmul.f32 %v4786_v42, %v5956_v1  ;;  %v126_v42 = vld [vmem:[%s6529_s5 + $0x48] sm:$0xff]  ;;  %v120_v6 = vld [vmem:[%s6529_s5 + $0x18] sm:$0xff] }
 0x685   :  { %2780 = vadd.xlane.f32.xlu1 %v2779_v39  ;;  %v6047_v63 = vmul.f32 %v5860_v52, %v2728_v17  ;;  %v112_v17 = vld [vmem:[%s6528_s4 + $0x58] sm:$0xff]  ;;  %v105_v39 = vld [vmem:[%s6528_s4 + $0x20] sm:$0xff] }
 0x686   :  { %v4788_v10 = vpop.eup %4787  ;;  %v6050_v41 = vmul.f32 %v5847_v56, %v2727_v11  ;;  %v101_v56 = vld [vmem:[%s6528_s4] sm:$0xff]  ;;  %v128_v11 = vld [vmem:[%s6529_s5 + $0x58] sm:$0xff] }
 0x687   :  { %v2788_v55 = vsel %vm976_vm2, %v6047_v63, 0.0  ;;  %v2729_v47 = vmul.f32 %v4788_v10, %v5962_v36  ;;  %v102_v36 = vld [vmem:[%s6528_s4 + $0x8] sm:$0xff]  ;;  %v121_v10 = vld [vmem:[%s6529_s5 + $0x20] sm:$0xff] }
 0x688   :  { %2789 = vadd.xlane.f32.xlu0 %v2788_v55  ;;  %v2785_v35 = vsel %vm976_vm2, %v6050_v41, 0.0  ;;  %v114_v55 = vld [vmem:[%s6528_s4 + $0x68] sm:$0xff] }
 0x689   :  { %2786 = vadd.xlane.f32.xlu1 %v2785_v35  ;;  %v6058_v1 = vmul.f32 %v5860_v52, %v2729_v47  ;;  %v103_v52 = vld [vmem:[%s6528_s4 + $0x10] sm:$0xff]  ;;  %v130_v35 = vld [vmem:[%s6529_s5 + $0x68] sm:$0xff] }
 0x68a   :  { %v107_v47 = vld [vmem:[%s6528_s4 + $0x30] sm:$0xff] }
 0x68b   :  { %v2791_v59 = vsel %vm976_vm2, %v6058_v1, 0.0 }
 0x68d   :  { %2792 = vadd.xlane.f32.xlu1 %v2791_v59  ;;  %v123_v59 = vld [vmem:[%s6529_s5 + $0x30] sm:$0xff] }
 0x69e   :  { %1996 = vperm.xlu0 %4605, %v101_v56   ;;  %2001 = vperm.xlu1 %4606, %v102_v36   ;;  %v116_v56 = vld [vmem:[%s6528_s4 + $0x78] sm:$0xff]  ;;  %v109_v36 = vld [vmem:[%s6528_s4 + $0x40] sm:$0xff] }
 0x6a2   :  { %2021 = vperm.xlu0 %4605, %v106_v8   ;;  %2006 = vperm.xlu1 %4606, %v103_v52   ;;  %v125_v8 = vld [vmem:[%s6529_s5 + $0x40] sm:$0xff]  ;;  %v111_v52 = vld [vmem:[%s6528_s4 + $0x50] sm:$0xff] }
 0x6a6   :  { %3567 = vperm.xlu0 %4605, %v122_v21   ;;  %2011 = vperm.xlu1 %4606, %v104_v18   ;;  %v127_v21 = vld [vmem:[%s6529_s5 + $0x50] sm:$0xff]  ;;  %v113_v18 = vld [vmem:[%s6528_s4 + $0x60] sm:$0xff] }
 0x6aa   :  { %2031 = vperm.xlu0 %4605, %v108_v7   ;;  %3542 = vperm.xlu1 %4606, %v117_v38   ;;  %v129_v7 = vld [vmem:[%s6529_s5 + $0x60] sm:$0xff]  ;;  %v115_v38 = vld [vmem:[%s6528_s4 + $0x70] sm:$0xff] }
 0x6ae   :  { %3577 = vperm.xlu0 %4605, %v124_v61   ;;  %3547 = vperm.xlu1 %4606, %v118_v20  }
 0x6b2   :  { %2041 = vperm.xlu0 %4605, %v110_v14   ;;  %3552 = vperm.xlu1 %4606, %v119_v24  }
 0x6b6   :  { %3587 = vperm.xlu0 %4605, %v126_v42   ;;  %3557 = vperm.xlu1 %4606, %v120_v6  }
 0x6ba   :  { %2051 = vperm.xlu0 %4605, %v112_v17   ;;  %2016 = vperm.xlu1 %4606, %v105_v39  }
 0x6be   :  { %3597 = vperm.xlu0 %4605, %v128_v11   ;;  %3562 = vperm.xlu1 %4606, %v121_v10  }
 0x6c2   :  { %2061 = vperm.xlu0 %4605, %v114_v55   ;;  %2026 = vperm.xlu1 %4606, %v107_v47  }
 0x6c6   :  { %3607 = vperm.xlu0 %4605, %v130_v35   ;;  %3572 = vperm.xlu1 %4606, %v123_v59  }
 0x6ca   :  { %2071 = vperm.xlu0 %4605, %v116_v56   ;;  %2036 = vperm.xlu1 %4606, %v109_v36  }
 0x6ce   :  { %3582 = vperm.xlu1 %4606, %v125_v8  }
 0x6d2   :  { %2046 = vperm.xlu1 %4606, %v111_v52  }
 0x6d6   :  { %3592 = vperm.xlu1 %4606, %v127_v21  }
 0x6da   :  { %2056 = vperm.xlu1 %4606, %v113_v18  }
 0x6de   :  { %3602 = vperm.xlu1 %4606, %v129_v7  }
 0x6e2   :  { %2066 = vperm.xlu1 %4606, %v115_v38  }
 0x6f4   :  { %v2748_v61 = vpop.xlane.xlu0 %2747 }
 0x6f5   :  { %v2794_v20 = vadd.f32 1e-13, %v2748_v61 }
 0x6f7   :  { %4789 = vrcp.f32 %v2794_v20 }
 0x6f8   :  { %v2754_v14 = vpop.xlane.xlu0 %2753 }
 0x6f9   :  { %v2796_v24 = vadd.f32 1e-13, %v2754_v14  ;;  %v2751_v42 = vpop.xlane.xlu1 %2750 }
 0x6fa   :  { %v2795_v6 = vadd.f32 1e-13, %v2751_v42 }
 0x6fb   :  { %4791 = vrcp.f32 %v2796_v24 }
 0x6fc   :  { %4793 = vrcp.f32 %v2795_v6 }
 0x6fd   :  { %v2760_v17 = vpop.xlane.xlu0 %2759 }
 0x6fe   :  { %v2798_v39 = vadd.f32 1e-13, %v2760_v17  ;;  %v2757_v11 = vpop.xlane.xlu1 %2756 }
 0x6ff   :  { %v2797_v10 = vadd.f32 1e-13, %v2757_v11 }
 0x700   :  { %4795 = vrcp.f32 %v2798_v39 }
 0x701   :  { %4797 = vrcp.f32 %v2797_v10  ;;  %v2766_v55 = vpop.xlane.xlu0 %2765 }
 0x702   :  { %v2800_v47 = vadd.f32 1e-13, %v2766_v55  ;;  %v2763_v35 = vpop.xlane.xlu1 %2762 }
 0x703   :  { %v2799_v59 = vadd.f32 1e-13, %v2763_v35 }
 0x704   :  { %v4790_v56 = vpop.eup %4789  ;;  %4799 = vrcp.f32 %v2800_v47 }
 0x705   :  { %4801 = vrcp.f32 %v2799_v59  ;;  %v2772_v36 = vpop.xlane.xlu0 %2771  ;;  %v2826_v8 = vmul.f32 %v4790_v56, %v5968_v58 }
 0x706   :  { %v2802_v52 = vadd.f32 1e-13, %v2772_v36  ;;  %v2769_v21 = vpop.xlane.xlu1 %2768  ;;  %v4835_v36 = vld [vmem:[%s6545_s29 + $0x10] sm:$0xff]  }
 0x707   :  { %v2801_v18 = vadd.f32 1e-13, %v2769_v21  ;;  %v4114_v7 = vpack.c.bf16 %v2826_v8, %v2826_v8 }
 0x708   :  { %v4792_v38 = vpop.eup %4791  ;;  %4803 = vrcp.f32 %v2802_v52  ;;  %v1894_v52 = vadd.f32 %v5665_v32, %v5732_v19  ;;  %v6176_v32 = vld [vmem:[%s6534_s10] ss:$0 sm:$0xff] }
 0x709   :  { %v4794_v61 = vpop.eup %4793  ;;  %4805 = vrcp.f32 %v2801_v18  ;;  %v2778_v20 = vpop.xlane.xlu0 %2777  ;;  %2906 = vst.msk [vmem:[#allocation4] sm:$0xf] %vm1329_vm3, %v4114_v7  ;;  %v2828_v14 = vmul.f32 %v4792_v38, %v5975_v34 }
 0x70a   :  { %v2804_v24 = vadd.f32 1e-13, %v2778_v20  ;;  %v2775_v42 = vpop.xlane.xlu1 %2774  ;;  %v2827_v6 = vmul.f32 %v4794_v61, %v5978_v28 }
 0x70b   :  { %v2803_v17 = vadd.f32 1e-13, %v2775_v42  ;;  %v4116_v39 = vpack.c.bf16 %v2828_v14, %v2828_v14 }
 0x70c   :  { %4807 = vrcp.f32 %v2804_v24  ;;  %v2842_v58 = vpack.c.bf16 %v2827_v6, %v2826_v8  ;;  %v4115_v11 = vpack.c.bf16 %v2827_v6, %v2827_v6  ;;  %v6552_v8 = vmov 0.0  }
 0x70d   :  { %v4796_v10 = vpop.eup %4795  ;;  %4809 = vrcp.f32 %v2803_v17  ;;  %v2784_v55 = vpop.xlane.xlu0 %2783  ;;  %2908 = vst.msk [vmem:[#allocation4 + $0x8] sm:$0xf] %vm1329_vm3, %v4116_v39 }
 0x70e   :  { %v4798_v47 = vpop.eup %4797  ;;  %v2806_v35 = vadd.f32 1e-13, %v2784_v55  ;;  %v2781_v59 = vpop.xlane.xlu1 %2780  ;;  %2907 = vst.msk [vmem:[#allocation4 + $0x4] sm:$0xf] %vm1329_vm3, %v4115_v11  ;;  %4491 = vmatmul.mubr.msk.bf16.vlgmr.msra.gmra.mxu0 %vm976_vm2, %v2842_v58  ;;  %v2830_v34 = vmul.f32 %v4796_v10, %v5987_v2  ;;  %v1897_v2 = vadd.f32 %v5669_v48, %v5736_v53  ;;  %v1962_v53 = vadd.f32 %v6176_v32, %v1894_v52 }
 0x70f   :  { %v2805_v28 = vadd.f32 1e-13, %v2781_v59  ;;  %v2829_v56 = vmul.f32 %v4798_v47, %v5990_v49  ;;  %4501 = vmatpush3.bf16.msra.mxu0 %v4835_v36  ;;  %4502 = vmatprep.mubr.msk.bf16.mxu0 %vm4898_vm1, %v6552_v8  ;;  %v1902_v55 = vadd.f32 %v5661_v57, %v5730_v43  ;;  %v1905_v59 = vadd.f32 %v5667_v45, %v5734_v27 }
 0x710   :  { %4811 = vrcp.f32 %v2806_v35  ;;  %v4118_v21 = vpack.c.bf16 %v2830_v34, %v2830_v34  ;;  %4512 = vmatprep.subr.bf16.mxu0 %v6552_v8  ;;  %v1963_v17 = vadd.f32 %v6176_v32, %v1897_v2 }
 0x711   :  { %v4800_v18 = vpop.eup %4799  ;;  %4813 = vrcp.f32 %v2805_v28  ;;  %v2790_v49 = vpop.xlane.xlu0 %2789  ;;  %v2843_v7 = vpack.c.bf16 %v2829_v56, %v2828_v14  ;;  %v4117_v38 = vpack.c.bf16 %v2829_v56, %v2829_v56  ;;  %v4836_v14 = vld [vmem:[%s6545_s29 + $0x18] sm:$0xff]   ;;  %v4837_v28 = vld [vmem:[%s6545_s29 + $0x20] sm:$0xff]  }
 0x712   :  { %v4802_v61 = vpop.eup %4801  ;;  %v2808_v20 = vadd.f32 1e-13, %v2790_v49  ;;  %v2787_v24 = vpop.xlane.xlu1 %2786  ;;  %2910 = vst.msk [vmem:[#allocation4 + $0x10] sm:$0xf] %vm1329_vm3, %v4118_v21  ;;  %v2832_v42 = vmul.f32 %v4800_v18, %v5999_v23  ;;  %v1979_v56 = vmax.f32 %v1963_v17, 0.0  ;;  %v1964_v18 = vadd.f32 %v6176_v32, %v1902_v55 }
 0x713   :  { %v2807_v19 = vadd.f32 1e-13, %v2787_v24  ;;  %2909 = vst.msk [vmem:[#allocation4 + $0xc] sm:$0xf] %vm1329_vm3, %v4117_v38  ;;  %4497 = vmatmul.mubr.msk.bf16.vlgmr.msra.gmra.mxu1 %vm976_vm2, %v2843_v7  ;;  %v2831_v48 = vmul.f32 %v4802_v61, %v6002_v29  ;;  %v4838_v38 = vld [vmem:[%s6545_s29 + $0x28] sm:$0xff]  }
 0x714   :  { %4815 = vrcp.f32 %v2808_v20  ;;  %4507 = vmatpush3.bf16.msra.mxu1 %v4836_v14  ;;  %4508 = vmatprep.mubr.msk.bf16.mxu1 %vm4898_vm1, %v6552_v8  ;;  %v4120_v23 = vpack.c.bf16 %v2832_v42, %v2832_v42  ;;  %v1965_v20 = vadd.f32 %v6176_v32, %v1905_v59 }
 0x715   :  { %v4804_v6 = vpop.eup %4803  ;;  %4817 = vrcp.f32 %v2807_v19  ;;  %v2844_v39 = vpack.c.bf16 %v2831_v48, %v2830_v34  ;;  %v4119_v58 = vpack.c.bf16 %v2831_v48, %v2831_v48  ;;  %4518 = vmatprep.subr.bf16.mxu1 %v6552_v8  ;;  %v1978_v34 = vmax.f32 %v1962_v53, 0.0 }
 0x716   :  { %v4806_v29 = vpop.eup %4805  ;;  %v2793_v11 = vpop.xlane.xlu1 %2792  ;;  %2912 = vst.msk [vmem:[#allocation4 + $0x18] sm:$0xf] %vm1329_vm3, %v4120_v23  ;;  %v2834_v10 = vmul.f32 %v4804_v6, %v6011_v13  ;;  %v1980_v6 = vmax.f32 %v1964_v18, 0.0 }
 0x717   :  { %v2809_v47 = vadd.f32 1e-13, %v2793_v11  ;;  %2911 = vst.msk [vmem:[#allocation4 + $0x14] sm:$0xf] %vm1329_vm3, %v4119_v58  ;;  %4503 = vmatmul.mubr.msk.bf16.vlgmr.msra.gmra.mxu0 %vm976_vm2, %v2844_v39  ;;  %v2833_v35 = vmul.f32 %v4806_v29, %v6014_v3  ;;  %v4839_v58 = vld [vmem:[%s6545_s29 + $0x30] sm:$0xff]  }
 0x718   :  { %4513 = vmatpush3.bf16.msra.mxu0 %v4837_v28  ;;  %4514 = vmatprep.mubr.msk.bf16.mxu0 %vm4898_vm1, %v6552_v8  ;;  %v4122_v57 = vpack.c.bf16 %v2834_v10, %v2834_v10 }
 0x719   :  { %v4808_v43 = vpop.eup %4807  ;;  %4819 = vrcp.f32 %v2809_v47  ;;  %v1997_v13 = vpop.permute.xlu0 %1996  ;;  %v2845_v36 = vpack.c.bf16 %v2833_v35, %v2832_v42  ;;  %v4121_v52 = vpack.c.bf16 %v2833_v35, %v2833_v35  ;;  %4524 = vmatprep.subr.bf16.mxu0 %v6552_v8  ;;  %v4840_v35 = vld [vmem:[%s6533_s9 + $0x8] sm:$0xff]  }
 0x71a   :  { %v4810_v3 = vpop.eup %4809  ;;  %v2074_v45 = vmul.f32 %v1997_v13, %v1978_v34  ;;  %v2002_v27 = vpop.permute.xlu1 %2001  ;;  %2914 = vst.msk [vmem:[#allocation4 + $0x20] sm:$0xf] %vm1329_vm3, %v4122_v57  ;;  %v2836_v21 = vmul.f32 %v4808_v43, %v6023_v22 }
 0x71b   :  { %v2075_v2 = vmul.f32 %v2002_v27, %v1979_v56  ;;  %2913 = vst.msk [vmem:[#allocation4 + $0x1c] sm:$0xf] %vm1329_vm3, %v4121_v52  ;;  %4509 = vmatmul.mubr.msk.bf16.vlgmr.msra.gmra.mxu1 %vm976_vm2, %v2845_v36  ;;  %v2835_v49 = vmul.f32 %v4810_v3, %v6026_v12  ;;  %v4841_v56 = vld [vmem:[%s6545_s29 + $0x38] sm:$0xff]  }
 0x71c   :  { %v2090_v7 = vsel %vm196_vm0, %v2074_v45, 0.0  ;;  %4519 = vmatpush3.bf16.msra.mxu1 %v4838_v38  ;;  %4520 = vmatprep.mubr.msk.bf16.mxu1 %vm4898_vm1, %v6552_v8  ;;  %v4124_v22 = vpack.c.bf16 %v2836_v21, %v2836_v21 }
 0x71d   :  { %v4812_v61 = vpop.eup %4811  ;;  %v2091_v24 = vsel %vm196_vm0, %v2075_v2, 0.0  ;;  %v2846_v42 = vpack.c.bf16 %v2835_v49, %v2834_v10  ;;  %v4123_v19 = vpack.c.bf16 %v2835_v49, %v2835_v49  ;;  %4530 = vmatprep.subr.bf16.mxu1 %v6552_v8  ;;  %v6219_v53 = vpop.permute.xlu0 %2021 }
 0x71e   :  { %v4814_v12 = vpop.eup %4813  ;;  %v2092_v48 = vadd.f32 %v2091_v24, %v2090_v7  ;;  %v2007_v14 = vpop.permute.xlu1 %2006  ;;  %2916 = vst.msk [vmem:[#allocation4 + $0x28] sm:$0xf] %vm1329_vm3, %v4124_v22  ;;  %v2838_v23 = vmul.f32 %v4812_v61, %v6035_v44  ;;  %v1981_v44 = vmax.f32 %v1965_v20, 0.0  ;;  %v4843_v61 = vld [vmem:[%s6533_s9] sm:$0xff]  }
 0x71f   :  { %2915 = vst.msk [vmem:[#allocation4 + $0x24] sm:$0xf] %vm1329_vm3, %v4123_v19  ;;  %4515 = vmatmul.mubr.msk.bf16.vlgmr.msra.gmra.mxu0 %vm976_vm2, %v2846_v42  ;;  %v2837_v17 = vmul.f32 %v4814_v12, %v6038_v60  ;;  %v2076_v10 = vmul.f32 %v2007_v14, %v1980_v6  ;;  %v1913_v12 = vadd.f32 %v5684_v16, %v5744_v54 }
 0x720   :  { %v2093_v39 = vrot.slane %v2092_v48, 4  ;;  %4525 = vmatpush3.bf16.msra.mxu0 %v4839_v58  ;;  %4526 = vmatprep.mubr.msk.bf16.mxu0 %vm4898_vm1, %v6552_v8  ;;  %v4126_v29 = vpack.c.bf16 %v2838_v23, %v2838_v23  ;;  %v1910_v14 = vadd.f32 %v5680_v62, %v5740_v30  ;;  %v3711_v30 = vld [vmem:[%s6535_s11 + $0x18] sm:$0xff] }
 0x721   :  { %v4816_v11 = vpop.eup %4815  ;;  %v2847_v55 = vpack.c.bf16 %v2837_v17, %v2836_v21  ;;  %v4125_v47 = vpack.c.bf16 %v2837_v17, %v2837_v17  ;;  %4536 = vmatprep.subr.bf16.mxu0 %v4840_v35  ;;  %v6239_v13 = vpop.permute.xlu0 %3567  ;;  %v1967_v17 = vadd.f32 %v6176_v32, %v1913_v12 }
 0x722   :  { %v4818_v60 = vpop.eup %4817  ;;  %v2094_v59 = vadd.f32 %v2093_v39, %v2092_v48  ;;  %v2012_v34 = vpop.permute.xlu1 %2011  ;;  %2918 = vst.msk [vmem:[#allocation4 + $0x30] sm:$0xf] %vm1329_vm3, %v4126_v29  ;;  %v2840_v28 = vmul.f32 %v4816_v11, %v6047_v63  ;;  %v2099_v63 = vsel %vm196_vm0, %v2076_v10, 0.0  ;;  %v4844_v48 = vld [vmem:[%s6525_s1] sm:$0xff]   ;;  %v1966_v62 = vadd.f32 %v6176_v32, %v1910_v14 }
 0x723   :  { %v2077_v57 = vmul.f32 %v2012_v34, %v1981_v44  ;;  %2917 = vst.msk [vmem:[#allocation4 + $0x2c] sm:$0xf] %vm1329_vm3, %v4125_v47  ;;  %4521 = vmatmul.mubr.msk.bf16.vlgmr.msra.gmra.mxu1 %vm976_vm2, %v2847_v55  ;;  %v2839_v43 = vmul.f32 %v4818_v60, %v6050_v41  ;;  %v4842_v41 = vld [vmem:[%s6532_s8 + $0x8] sm:$0xff]   ;;  %v1921_v44 = vadd.f32 %v5682_v4, %v5742_v33  ;;  %v1983_v55 = vmax.f32 %v1967_v17, 0.0 }
 0x724   :  { %4531 = vmatpush3.bf16.msra.mxu1 %v4841_v56  ;;  %4532 = vmatprep.mubr.msk.bf16.mxu1 %vm4898_vm1, %v6552_v8  ;;  %v4128_v36 = vpack.c.bf16 %v2840_v28, %v2840_v28  ;;  %v2095_v21 = vrot.slane %v2094_v59, 2  ;;  %v4846_v47 = vld [vmem:[%s6525_s1 + $0x8] sm:$0xff]   ;;  %v1918_v4 = vadd.f32 %v5675_v40, %v5738_v51  ;;  %v1982_v34 = vmax.f32 %v1966_v62, 0.0  ;;  %v3708_v40 = vld [vmem:[%s6535_s11] sm:$0xff]  ;;  %v4851_v62 = vld [vmem:[%s6525_s1 + $0x30] sm:$0xff]  }
 0x725   :  { %v2100_v52 = vsel %vm196_vm0, %v2077_v57, 0.0  ;;  %v2848_v3 = vpack.c.bf16 %v2839_v43, %v2838_v23  ;;  %v4127_v45 = vpack.c.bf16 %v2839_v43, %v2839_v43  ;;  %4556 = vmatprep.subr.bf16.mxu1 %v4842_v41  ;;  %v6260_v42 = vpop.permute.xlu0 %2031  ;;  %v4845_v23 = vld [vmem:[%s6532_s8] sm:$0xff]   ;;  %v2079_v33 = vmul.f32 %v6219_v53, %v1983_v55 }
 0x726   :  { %v4820_v27 = vpop.eup %4819  ;;  %v2101_v18 = vadd.f32 %v2100_v52, %v2099_v63  ;;  %v6251_v2 = vpop.permute.xlu1 %3542  ;;  %2920 = vst.msk [vmem:[#allocation4 + $0x38] sm:$0xf] %vm1329_vm3, %v4128_v36  ;;  %v2096_v20 = vadd.f32 %v2095_v21, %v2094_v59  ;;  %v4847_v59 = vld [vmem:[%s6525_s1 + $0x10] sm:$0xff]   ;;  %v1969_v56 = vadd.f32 %v6176_v32, %v1921_v44  ;;  %v1968_v51 = vadd.f32 %v6176_v32, %v1918_v4 }
 0x727   :  { %2919 = vst.msk [vmem:[#allocation4 + $0x34] sm:$0xf] %vm1329_vm3, %v4127_v45  ;;  %4527 = vmatmul.mubr.msk.bf16.vlgmr.msra.gmra.mxu0 %vm976_vm2, %v2848_v3  ;;  %v2841_v49 = vmul.f32 %v4820_v27, %v6058_v1  ;;  %v2109_v53 = vsel %vm196_vm0, %v2079_v33, 0.0  ;;  %v1929_v45 = vadd.f32 %v5699_v37, %v5752_v0  ;;  %v4848_v27 = vld [vmem:[%s6525_s1 + $0x18] sm:$0xff]  }
 0x728   :  { %v2102_v7 = vrot.slane %v2101_v18, 4  ;;  %4537 = vmatpush3.bf16.msra.mxu0 %v4840_v35  ;;  %v2097_v16 = vrot.slane %v2096_v20, 1  ;;  %v3710_v35 = vld [vmem:[%s6535_s11 + $0x10] sm:$0xff]  ;;  %v1984_v0 = vmax.f32 %v1968_v51, 0.0  ;;  %v6553_v51 = vld [vmem:[#allocation12_spill] sm:$0xff] }
 0x729   :  { %v2849_v38 = vpack.c.bf16 %v2841_v49, %v2840_v28  ;;  %v4129_v22 = vpack.c.bf16 %v2841_v49, %v2841_v49  ;;  %4538 = vmatprep.subr.bf16.mxu0 %v4843_v61  ;;  %v6281_v58 = vpop.permute.xlu0 %3577  ;;  %v3709_v28 = vld [vmem:[%s6535_s11 + $0x8] sm:$0xff]  ;;  %v4849_v49 = vld [vmem:[%s6525_s1 + $0x20] sm:$0xff]  }
 0x72a   :  { %v2103_v24 = vadd.f32 %v2102_v7, %v2101_v18  ;;  %v6262_v19 = vpop.permute.xlu1 %3547  ;;  %v2098_v29 = vadd.f32 %v2097_v16, %v2096_v20  ;;  %v1926_v7 = vadd.f32 %v5695_v25, %v5748_v50  ;;  %v1937_v25 = vadd.f32 %v5697_v31, %v5750_v15 }
 0x72b   :  { %2921 = vst.msk [vmem:[#allocation4 + $0x3c] sm:$0xf] %vm1329_vm3, %v4129_v22  ;;  %4533 = vmatmul.mubr.msk.bf16.vlgmr.msra.gmra.mxu1 %vm976_vm2, %v2849_v38 }
 0x72c   :  { %v2104_v1 = vrot.slane %v2103_v24, 2  ;;  %4557 = vmatpush3.bf16.msra.mxu1 %v4842_v41  ;;  %4560 = vmatprep.mubr.msk.bf16.mxu1 %vm196_vm0, %v4844_v48  ;;  %v1985_v41 = vmax.f32 %v1969_v56, 0.0  ;;  %v1970_v12 = vadd.f32 %v6176_v32, %v1926_v7  ;;  %v1973_v55 = vadd.f32 %v6176_v32, %v1937_v25 }
 0x72d   :  { %4558 = vmatprep.subr.bf16.mxu1 %v4845_v23  ;;  %4539 = vmatpush3.bf16.msra.mxu0 %v4843_v61  ;;  %v2042_v57 = vpop.permute.xlu0 %2041  ;;  %v1971_v61 = vadd.f32 %v6176_v32, %v1929_v45 }
 0x72e   :  { %v2105_v54 = vadd.f32 %v2104_v1, %v2103_v24  ;;  %v6277_v6 = vpop.permute.xlu1 %3552  ;;  %4576 = vmatprep.subr.mxu0 %v6552_v8  ;;  %v2081_v37 = vmul.f32 %v6260_v42, %v1985_v41  ;;  %v4850_v42 = vld [vmem:[%s6525_s1 + $0x28] sm:$0xff]   ;;  %v1986_v31 = vmax.f32 %v1970_v12, 0.0  ;;  %v1989_v56 = vmax.f32 %v1973_v55, 0.0 }
 0x72f   :  { %v1987_v50 = vmax.f32 %v1971_v61, 0.0  ;;  %v6555_v12 = vld [vmem:[#allocation13_spill] sm:$0xff] }
 0x730   :  { %v2106_v39 = vrot.slane %v2105_v54, 1  ;;  %4559 = vmatpush3.bf16.msra.mxu1 %v4845_v23  ;;  %v2118_v1 = vsel %vm196_vm0, %v2081_v37, 0.0 }
 0x731   :  { %4587 = vmatprep.subr.mxu1 %v6552_v8  ;;  %v6330_v21 = vpop.permute.xlu0 %3587 }
 0x732   :  { %v2107_v11 = vadd.f32 %v2106_v39, %v2105_v54  ;;  %v6288_v10 = vpop.permute.xlu1 %3557 }
 0x733   :  { %4561 = vmatmul.mubr.msk.bf16.vlgmr.msra.gmra.mxu1 %vm196_vm0, %v4846_v47 }
 0x734   :  { %v6300_v60 = vsel %vm3724_vm4, %v2107_v11, %v2098_v29  ;;  %4564 = vmatprep.mubr.msk.bf16.mxu1 %vm196_vm0, %v4847_v59  ;;  %4588 = vmatpush3.msra.mxu1 %v3711_v30  ;;  %v1934_v30 = vadd.f32 %v5690_v46, %v5746_v9  ;;  %v2083_v29 = vmul.f32 %v2042_v57, %v1987_v50  ;;  %v6557_v50 = vld [vmem:[#allocation11_spill] sm:$0xff] }
 0x735   :  { %4589 = vmatprep.subr.mxu1 %v6552_v8  ;;  %v2052_v14 = vpop.permute.xlu0 %2051 }
 0x736   :  { %v2017_v43 = vpop.permute.xlu1 %2016  ;;  %4590 = vmatpush3.msra.mxu1 %v3710_v35  ;;  %v1972_v33 = vadd.f32 %v6176_v32, %v1934_v30 }
 0x737   :  { %v2078_v36 = vmul.f32 %v2017_v43, %v1982_v34  ;;  %4591 = vmatprep.subr.mxu1 %v6552_v8  ;;  %v2127_v34 = vsel %vm196_vm0, %v2083_v29, 0.0  ;;  %v1945_v43 = vadd.f32 %v5714_v5, %v5760_v26 }
 0x738   :  { %4592 = vmatpush3.msra.mxu1 %v3709_v28  ;;  %v1988_v45 = vmax.f32 %v1972_v33, 0.0 }
 0x739   :  { %v2108_v63 = vsel %vm196_vm0, %v2078_v36, 0.0  ;;  %4593 = vmatprep.subr.mxu1 %v6552_v8  ;;  %v6360_v59 = vpop.permute.xlu0 %3597 }
 0x73a   :  { %v2110_v52 = vadd.f32 %v2109_v53, %v2108_v63  ;;  %v6322_v3 = vpop.permute.xlu1 %3562  ;;  %4594 = vmatpush3.msra.mxu1 %v3708_v40  ;;  %v6554_v53 = vld [vmem:[#allocation9_spill] sm:$0xff] }
 0x73b   :  { %4565 = vmatmul.mubr.msk.bf16.gmra.mxu1 %vm196_vm0, %v4848_v27  ;;  %v1942_v63 = vadd.f32 %v6554_v53, %v6553_v51 }
 0x73c   :  { %v2111_v18 = vrot.slane %v2110_v52, 4  ;;  %4568 = vmatprep.mubr.msk.bf16.mxu1 %vm196_vm0, %v4849_v49 }
 0x73d   :  { %v2062_v41 = vpop.permute.xlu0 %2061 }
 0x73e   :  { %v2112_v38 = vadd.f32 %v2111_v18, %v2110_v52  ;;  %v2027_v22 = vpop.permute.xlu1 %2026  ;;  %v2085_v52 = vmul.f32 %v2052_v14, %v1989_v56  ;;  %v1975_v18 = vadd.f32 %v6176_v32, %v1945_v43 }
 0x73f   :  { %v2080_v20 = vmul.f32 %v2027_v22, %v1984_v0  ;;  %v1974_v0 = vadd.f32 %v6176_v32, %v1942_v63 }
 0x740   :  { %v2113_v24 = vrot.slane %v2112_v38, 2  ;;  %v1991_v14 = vmax.f32 %v1975_v18, 0.0 }
 0x741   :  { %v2117_v48 = vsel %vm196_vm0, %v2080_v20, 0.0 }
 0x742   :  { %v2114_v23 = vadd.f32 %v2113_v24, %v2112_v38  ;;  %v2119_v16 = vadd.f32 %v2118_v1, %v2117_v48  ;;  %v6343_v54 = vpop.permute.xlu1 %3572  ;;  %v2136_v38 = vsel %vm196_vm0, %v2085_v52, 0.0  ;;  %v6556_v1 = vld [vmem:[#allocation10_spill] sm:$0xff] }
 0x743   :  { %4569 = vmatmul.mubr.msk.bf16.gmra.mxu1 %vm196_vm0, %v4850_v42  ;;  %v1953_v48 = vadd.f32 %v6556_v1, %v6555_v12  ;;  %v6558_v42 = vld [vmem:[#allocation8_spill] sm:$0xff]  ;;  %v131_v1 = vld [vmem:[%s6529_s5 + $0x70] sm:$0xff] }
 0x744   :  { %v2115_v17 = vrot.slane %v2114_v23, 1  ;;  %v2120_v39 = vrot.slane %v2119_v16, 4  ;;  %4572 = vmatprep.mubr.msk.bf16.mxu1 %vm196_vm0, %v4851_v62  ;;  %v1990_v62 = vmax.f32 %v1974_v0, 0.0  ;;  %3612 = vperm.xlu1 %4606, %v131_v1  }
 0x746   :  { %v2116_v15 = vadd.f32 %v2115_v17, %v2114_v23  ;;  %v2121_v11 = vadd.f32 %v2120_v39, %v2119_v16  ;;  %v2037_v44 = vpop.permute.xlu1 %2036  ;;  %v6386_v23 = vpop.permute.xlu0 %3607  ;;  %v1950_v17 = vadd.f32 %v6558_v42, %v6557_v50  ;;  %v2087_v39 = vmul.f32 %v2062_v41, %v1991_v14 }
 0x747   :  { %v2082_v47 = vmul.f32 %v2037_v44, %v1986_v31 }
 0x748   :  { %v3819_v35 = vsel %vm3726_vm5, %v2116_v15, %v6300_v60  ;;  %v2122_v4 = vrot.slane %v2121_v11, 2  ;;  %v4852_v60 = vld [vmem:[%s6525_s1 + $0x38] sm:$0xff]   ;;  %v1977_v15 = vadd.f32 %v6176_v32, %v1953_v48 }
 0x749   :  { %v2126_v46 = vsel %vm196_vm0, %v2082_v47, 0.0  ;;  %v1976_v47 = vadd.f32 %v6176_v32, %v1950_v17  ;;  %v132_v48 = vld [vmem:[%s6529_s5 + $0x78] sm:$0xff] }
 0x74a   :  { %v2123_v9 = vadd.f32 %v2122_v4, %v2121_v11  ;;  %v2128_v28 = vadd.f32 %v2127_v34, %v2126_v46  ;;  %v6365_v57 = vpop.permute.xlu1 %3582  ;;  %v2072_v33 = vpop.permute.xlu0 %2071  ;;  %3617 = vperm.xlu0 %4605, %v132_v48  }
 0x74b   :  { %4573 = vmatmul.mubr.msk.bf16.gmra.mxu1 %vm196_vm0, %v4852_v60 }
 0x74c   :  { %v2124_v36 = vrot.slane %v2123_v9, 1  ;;  %v2129_v40 = vrot.slane %v2128_v28, 4  ;;  %4595 = vmatprep.mubr.msk.f32.mxu1 %vm4898_vm1, %v6552_v8 }
 0x74e   :  { %v2125_v5 = vadd.f32 %v2124_v36, %v2123_v9  ;;  %v2130_v26 = vadd.f32 %v2129_v40, %v2128_v28  ;;  %v2047_v27 = vpop.permute.xlu1 %2046  ;;  %v1993_v28 = vmax.f32 %v1977_v15, 0.0  ;;  %v1992_v36 = vmax.f32 %v1976_v47, 0.0 }
 0x74f   :  { %v2084_v49 = vmul.f32 %v2047_v27, %v1988_v45 }
 0x750   :  { %v3820_v7 = vsel %vm3728_vm6, %v2125_v5, %v3819_v35  ;;  %v2131_v37 = vrot.slane %v2130_v26, 2  ;;  %v2145_v35 = vsel %vm196_vm0, %v2087_v39, 0.0  ;;  %v2089_v60 = vmul.f32 %v2072_v33, %v1993_v28 }
 0x751   :  { %v2135_v22 = vsel %vm196_vm0, %v2084_v49, 0.0 }
 0x752   :  { %v2132_v61 = vadd.f32 %v2131_v37, %v2130_v26  ;;  %v2137_v20 = vadd.f32 %v2136_v38, %v2135_v22  ;;  %v6382_v24 = vpop.permute.xlu1 %3592  ;;  %v2154_v41 = vsel %vm196_vm0, %v2089_v60, 0.0 }
 0x754   :  { %v2133_v16 = vrot.slane %v2132_v61, 1  ;;  %v2138_v25 = vrot.slane %v2137_v20, 4 }
 0x756   :  { %v2134_v30 = vadd.f32 %v2133_v16, %v2132_v61  ;;  %v2139_v29 = vadd.f32 %v2138_v25, %v2137_v20  ;;  %v2057_v31 = vpop.permute.xlu1 %2056 }
 0x757   :  { %v2086_v11 = vmul.f32 %v2057_v31, %v1990_v62 }
 0x758   :  { %v3821_v44 = vsel %vm3730_vm7, %v2134_v30, %v3820_v7  ;;  %v2140_v55 = vrot.slane %v2139_v29, 2 }
 0x759   :  { %v2144_v4 = vsel %vm196_vm0, %v2086_v11, 0.0 }
 0x75a   :  { %v2141_v34 = vadd.f32 %v2140_v55, %v2139_v29  ;;  %v2146_v46 = vadd.f32 %v2145_v35, %v2144_v4  ;;  %v6395_v9 = vpop.permute.xlu1 %3602 }
 0x75c   :  { %v2142_v43 = vrot.slane %v2141_v34, 1  ;;  %v2147_v56 = vrot.slane %v2146_v46, 4 }
 0x75e   :  { %v2143_v40 = vadd.f32 %v2142_v43, %v2141_v34  ;;  %v2148_v51 = vadd.f32 %v2147_v56, %v2146_v46  ;;  %v2067_v53 = vpop.permute.xlu1 %2066 }
 0x75f   :  { %v2088_v63 = vmul.f32 %v2067_v53, %v1992_v36 }
 0x760   :  { %v3822_v52 = vsel %vm3732_vm8, %v2143_v40, %v3821_v44  ;;  %v2149_v45 = vrot.slane %v2148_v51, 2 }
 0x761   :  { %v2153_v5 = vsel %vm196_vm0, %v2088_v63, 0.0 }
 0x762   :  { %v2150_v26 = vadd.f32 %v2149_v45, %v2148_v51  ;;  %v2155_v27 = vadd.f32 %v2154_v41, %v2153_v5 }
 0x764   :  { %v2151_v18 = vrot.slane %v2150_v26, 1  ;;  %v2156_v49 = vrot.slane %v2155_v27, 4 }
 0x766   :  { %v2152_v7 = vadd.f32 %v2151_v18, %v2150_v26  ;;  %v2157_v37 = vadd.f32 %v2156_v49, %v2155_v27 }
 0x768   :  { %v2158_v0 = vrot.slane %v2157_v37, 2  ;;  %v3823_v38 = vsel %vm3734_vm9, %v2152_v7, %v3822_v52 }
 0x76a   :  { %v2159_v22 = vadd.f32 %v2158_v0, %v2157_v37 }
 0x76c   :  { %v2160_v61 = vrot.slane %v2159_v22, 1 }
 0x76e   :  { %v2161_v20 = vadd.f32 %v2160_v61, %v2159_v22 }
 0x770   :  { %v3824_v12 = vsel %vm3736_vm10, %v2161_v20, %v3823_v38 }
 0x771   :  { %4596 = vmatmul.mubr.msk.f32.vlgmr.msra.gmra.mxu1 %vm196_vm0, %v3824_v12 }
 0x7ce   :  { %v2960_v14 = vpop.f32.mrf.mxu0 }
 0x7d0   :  { %v4492_v16 = vpop.f32.mrf.mxu0 }
 0x7d2   :  { %v2963_v25 = vpop.f32.mrf.mxu0 }
 0x7d3   :  { %v3282_v50 = vpack.c.bf16 %v2963_v25, %v2960_v14  ;;  %v3005_v42 = vpop.f32.mrf.mxu1 }
 0x7d4   :  { %v4493_v17 = vpop.f32.mrf.mxu0 }
 0x7d5   :  { %v4498_v39 = vpop.f32.mrf.mxu1  ;;  %4540 = vmatprep.mubr.msk.bf16.mxu0 %vm196_vm0, %v3282_v50 }
 0x7d7   :  { %v3008_v62 = vpop.f32.mrf.mxu1  ;;  %v3050_v30 = vpop.f32.mrf.mxu0 }
 0x7d8   :  { %v3283_v29 = vpack.c.bf16 %v3008_v62, %v3005_v42 }
 0x7d9   :  { %v4499_v31 = vpop.f32.mrf.mxu1  ;;  %v4504_v15 = vpop.f32.mrf.mxu0 }
 0x7da   :  { %4541 = vmatmul.mubr.msk.bf16.vlgmr.msra.gmra.mxu0 %vm196_vm0, %v3283_v29  ;;  %v3715_v31 = vld [vmem:[%s6536_s12 + $0x18] sm:$0xff]  ;;  %v3714_v15 = vld [vmem:[%s6536_s12 + $0x10] sm:$0xff] }
 0x7db   :  { %v3053_v11 = vpop.f32.mrf.mxu0  ;;  %v3095_v44 = vpop.f32.mrf.mxu1  ;;  %4577 = vmatpush3.msra.mxu0 %v3715_v31 }
 0x7dc   :  { %v3284_v55 = vpack.c.bf16 %v3053_v11, %v3050_v30  ;;  %4578 = vmatprep.subr.mxu0 %v6552_v8  ;;  %v3713_v11 = vld [vmem:[%s6536_s12 + $0x8] sm:$0xff] }
 0x7dd   :  { %v4505_v47 = vpop.f32.mrf.mxu0  ;;  %v4510_v35 = vpop.f32.mrf.mxu1  ;;  %4579 = vmatpush3.msra.mxu0 %v3714_v15 }
 0x7de   :  { %4544 = vmatprep.mubr.msk.bf16.mxu0 %vm196_vm0, %v3284_v55  ;;  %4580 = vmatprep.subr.mxu0 %v6552_v8 }
 0x7df   :  { %v3098_v4 = vpop.f32.mrf.mxu1  ;;  %v3140_v33 = vpop.f32.mrf.mxu0  ;;  %4581 = vmatpush3.msra.mxu0 %v3713_v11 }
 0x7e0   :  { %v3285_v34 = vpack.c.bf16 %v3098_v4, %v3095_v44  ;;  %v3712_v44 = vld [vmem:[%s6536_s12] sm:$0xff]  ;;  %4582 = vmatprep.subr.mxu0 %v6552_v8  ;;  %s4900_s12 = smov [#allocation2]  }
 0x7e1   :  { %v4511_v46 = vpop.f32.mrf.mxu1  ;;  %v4516_v28 = vpop.f32.mrf.mxu0  ;;  %4583 = vmatpush3.msra.mxu0 %v3712_v44  ;;  %s3914_s25 = sshll.u32 %s4900_s12, 4  ;;  %s3915_s25 = int_to_ptr.vmem [resolvable:$true] %s3914_s25 }
 0x7e2   :  { %4545 = vmatmul.mubr.msk.bf16.gmra.mxu0 %vm196_vm0, %v3285_v34  ;;  %s4853_s28 = scalar_lea.vmem %s3915_s25, 1024  ;;  %p4858_p1 = scmp.lt.s32.totalorder %s3915_s25, %s3915_s25 }
 0x7e3   :  { %v3143_v43 = vpop.f32.mrf.mxu0  ;;  %v3185_v56 = vpop.f32.mrf.mxu1  ;;  %p4854_p0 = scmp.ne.s32.totalorder %s3915_s25, %s4853_s28  ;;  %p4859_p2 = scmp.lt.s32.totalorder %s4853_s28, %s4853_s28 }
 0x7e4   :  { %v3286_v60 = vpack.c.bf16 %v3143_v43, %v3140_v33 }
 0x7e5   :  { %v4517_v36 = vpop.f32.mrf.mxu0  ;;  %v4522_v40 = vpop.f32.mrf.mxu1  ;;  %p4860_p3 = por %p4859_p2, %p4858_p1 }
 0x7e6   :  { %4548 = vmatprep.mubr.msk.bf16.mxu0 %vm196_vm0, %v3286_v60 }
 0x7e7   :  { %v3188_v51 = vpop.f32.mrf.mxu1  ;;  %v3230_v53 = vpop.f32.mrf.mxu0  ;;  %p4861_p4 = pnand %p4860_p3, %p4854_p0 }
 0x7e8   :  { %v3287_v63 = vpack.c.bf16 %v3188_v51, %v3185_v56 }
 0x7e9   :  { %v4523_v52 = vpop.f32.mrf.mxu1  ;;  %v4528_v45 = vpop.f32.mrf.mxu0 }
 0x7ea   :  { %4549 = vmatmul.mubr.msk.bf16.gmra.mxu0 %vm196_vm0, %v3287_v63 }
 0x7eb   :  { %v3233_v41 = vpop.f32.mrf.mxu0  ;;  %v3275_v5 = vpop.f32.mrf.mxu1 }
 0x7ec   :  { %v3288_v26 = vpack.c.bf16 %v3233_v41, %v3230_v53 }
 0x7ed   :  { %v4529_v27 = vpop.f32.mrf.mxu0  ;;  %v4534_v18 = vpop.f32.mrf.mxu1 }
 0x7ee   :  { %4552 = vmatprep.mubr.msk.bf16.mxu0 %vm196_vm0, %v3288_v26 }
 0x7ef   :  { %v3278_v49 = vpop.f32.mrf.mxu1 }
 0x7f0   :  { %v3289_v7 = vpack.c.bf16 %v3278_v49, %v3275_v5 }
 0x7f1   :  { %v4535_v37 = vpop.f32.mrf.mxu1 }
 0x7f2   :  { %4553 = vmatmul.mubr.msk.bf16.gmra.mxu0 %vm196_vm0, %v3289_v7 }
 0x7f3   :  { %v4562_v0 = vpop.f32.mrf.mxu1  ;;  %4584 = vmatprep.mubr.msk.f32.mxu0 %vm4898_vm1, %v6552_v8 }
 0x7f5   :  { %v3445_v38 = vpop.f32.mrf.mxu1 }
 0x7f7   :  { %v4563_v22 = vpop.f32.mrf.mxu1 }
 0x7f9   :  { %v3448_v61 = vpop.f32.mrf.mxu1 }
 0x7fb   :  { %v4566_v20 = vpop.f32.mrf.mxu1 }
 0x7fd   :  { %v3461_v12 = vpop.f32.mrf.mxu1 }
 0x7ff   :  { %v4567_v1 = vpop.f32.mrf.mxu1 }
 0x801   :  { %v3464_v48 = vpop.f32.mrf.mxu1 }
 0x803   :  { %v4570_v14 = vpop.f32.mrf.mxu1 }
 0x805   :  { %v6419_v16 = vpop.f32.mrf.mxu1 }
 0x807   :  { %v6421_v25 = vpop.f32.mrf.mxu1 }
 0x809   :  { %v6423_v50 = vpop.f32.mrf.mxu1 }
 0x80b   :  { %v6425_v42 = vpop.f32.mrf.mxu1 }
 0x80d   :  { %v6427_v17 = vpop.f32.mrf.mxu1 }
 0x80f   :  { %v6429_v39 = vpop.f32.mrf.mxu1 }
 0x811   :  { %v6431_v62 = vpop.f32.mrf.mxu1 }
 0x831   :  { %v6433_v30 = vpop.f32.mrf.mxu1 }
 0x833   :  { %v4597_v29 = vpop.f32.mrf.mxu1 }
 0x89a   :  { %v4542_v55 = vpop.f32.mrf.mxu0 }
 0x89b   :  { %v3454_v47 = vadd.f32 %v4562_v0, %v4542_v55 }
 0x89c   :  { %v3348_v35 = vpop.f32.mrf.mxu0 }
 0x89d   :  { %v3446_v4 = vadd.f32 %v3445_v38, %v3348_v35  ;;  %v3510_v28 = vadd.f32 %v6176_v32, %v3454_v47 }
 0x89e   :  { %v4543_v33 = vpop.f32.mrf.mxu0 }
 0x89f   :  { %v3508_v34 = vadd.f32 %v6176_v32, %v3446_v4  ;;  %v3457_v46 = vadd.f32 %v4563_v22, %v4543_v33  ;;  %v3526_v53 = vmax.f32 %v3510_v28, 0.0 }
 0x8a0   :  { %v3351_v43 = vpop.f32.mrf.mxu0 }
 0x8a1   :  { %v3511_v56 = vadd.f32 %v6176_v32, %v3457_v46  ;;  %v3449_v60 = vadd.f32 %v3448_v61, %v3351_v43  ;;  %v3524_v36 = vmax.f32 %v3508_v34, 0.0  ;;  %v3622_v0 = vmul.f32 %v6277_v6, %v3526_v53 }
 0x8a2   :  { %v4546_v40 = vpop.f32.mrf.mxu0 }
 0x8a3   :  { %v3527_v51 = vmax.f32 %v3511_v56, 0.0  ;;  %v3509_v8 = vadd.f32 %v6176_v32, %v3449_v60  ;;  %v3470_v63 = vadd.f32 %v4566_v20, %v4546_v40  ;;  %v3620_v5 = vmul.f32 %v6251_v2, %v3524_v36 }
 0x8a4   :  { %v3364_v52 = vpop.f32.mrf.mxu0 }
 0x8a5   :  { %v3525_v45 = vmax.f32 %v3509_v8, 0.0  ;;  %v3462_v41 = vadd.f32 %v3461_v12, %v3364_v52  ;;  %v3514_v26 = vadd.f32 %v6176_v32, %v3470_v63  ;;  %v3623_v18 = vmul.f32 %v6288_v10, %v3527_v51 }
 0x8a6   :  { %v4547_v27 = vpop.f32.mrf.mxu0  ;;  %v3636_v29 = vsel %vm196_vm0, %v3620_v5, 0.0 }
 0x8a7   :  { %v3621_v49 = vmul.f32 %v6262_v19, %v3525_v45  ;;  %v3512_v7 = vadd.f32 %v6176_v32, %v3462_v41  ;;  %v3473_v37 = vadd.f32 %v4567_v1, %v4547_v27  ;;  %v3530_v38 = vmax.f32 %v3514_v26, 0.0 }
 0x8a8   :  { %v3367_v22 = vpop.f32.mrf.mxu0  ;;  %v3646_v10 = vsel %vm196_vm0, %v3623_v18, 0.0  ;;  %v3645_v1 = vsel %vm196_vm0, %v3622_v0, 0.0 }
 0x8a9   :  { %v3637_v61 = vsel %vm196_vm0, %v3621_v49, 0.0  ;;  %v3528_v20 = vmax.f32 %v3512_v7, 0.0  ;;  %v3515_v12 = vadd.f32 %v6176_v32, %v3473_v37  ;;  %v3465_v2 = vadd.f32 %v3464_v48, %v3367_v22 }
 0x8aa   :  { %v4550_v31 = vpop.f32.mrf.mxu0  ;;  %v3638_v6 = vadd.f32 %v3637_v61, %v3636_v29  ;;  %v3626_v44 = vmul.f32 %v6343_v54, %v3530_v38  ;;  %v3647_v33 = vadd.f32 %v3646_v10, %v3645_v1 }
 0x8ab   :  { %v3531_v15 = vmax.f32 %v3515_v12, 0.0  ;;  %v3513_v19 = vadd.f32 %v6176_v32, %v3465_v2  ;;  %v3486_v11 = vadd.f32 %v4570_v14, %v4550_v31  ;;  %v3624_v47 = vmul.f32 %v6322_v3, %v3528_v20 }
 0x8ac   :  { %v3380_v55 = vpop.f32.mrf.mxu0  ;;  %v3639_v54 = vrot.slane %v3638_v6, 4  ;;  %v3663_v60 = vsel %vm196_vm0, %v3626_v44, 0.0  ;;  %v3648_v8 = vrot.slane %v3647_v33, 4 }
 0x8ad   :  { %v3627_v35 = vmul.f32 %v6281_v58, %v3531_v15  ;;  %v3529_v48 = vmax.f32 %v3513_v19, 0.0  ;;  %v3518_v4 = vadd.f32 %v6176_v32, %v3486_v11  ;;  %v3478_v34 = vadd.f32 %v6419_v16, %v3380_v55 }
 0x8ae   :  { %v4551_v46 = vpop.f32.mrf.mxu0  ;;  %v3654_v36 = vsel %vm196_vm0, %v3624_v47, 0.0  ;;  %v3640_v5 = vadd.f32 %v3639_v54, %v3638_v6  ;;  %v3649_v37 = vadd.f32 %v3648_v8, %v3647_v33 }
 0x8af   :  { %v3664_v28 = vsel %vm196_vm0, %v3627_v35, 0.0  ;;  %v3625_v14 = vmul.f32 %v6239_v13, %v3529_v48  ;;  %v3534_v43 = vmax.f32 %v3518_v4, 0.0  ;;  %v3489_v56 = vadd.f32 %v6421_v25, %v4551_v46  ;;  %v3613_v35 = vpop.permute.xlu1 %3612 }
 0x8b0   :  { %v3516_v3 = vadd.f32 %v6176_v32, %v3478_v34  ;;  %v3383_v58 = vpop.f32.mrf.mxu0  ;;  %v3665_v53 = vadd.f32 %v3664_v28, %v3663_v60  ;;  %v3650_v19 = vrot.slane %v3649_v37, 2 }
 0x8b1   :  { %v3655_v40 = vsel %vm196_vm0, %v3625_v14, 0.0  ;;  %v3519_v16 = vadd.f32 %v6176_v32, %v3489_v56  ;;  %v3481_v51 = vadd.f32 %v6423_v50, %v3383_v58  ;;  %v3630_v25 = vmul.f32 %v6382_v24, %v3534_v43 }
 0x8b2   :  { %v3656_v13 = vadd.f32 %v3655_v40, %v3654_v36  ;;  %v4554_v63 = vpop.f32.mrf.mxu0  ;;  %v3532_v52 = vmax.f32 %v3516_v3, 0.0  ;;  %v3666_v0 = vrot.slane %v3665_v53, 4  ;;  %v3651_v28 = vadd.f32 %v3650_v19, %v3649_v37 }
 0x8b3   :  { %v3535_v45 = vmax.f32 %v3519_v16, 0.0  ;;  %v3517_v41 = vadd.f32 %v6176_v32, %v3481_v51  ;;  %v3502_v50 = vadd.f32 %v6425_v42, %v4554_v63  ;;  %v3681_v61 = vsel %vm196_vm0, %v3630_v25, 0.0 }
 0x8b4   :  { %v3657_v26 = vrot.slane %v3656_v13, 4  ;;  %v3396_v27 = vpop.f32.mrf.mxu0  ;;  %v3628_v18 = vmul.f32 %v6365_v57, %v3532_v52  ;;  %v3641_v57 = vrot.slane %v3640_v5, 2  ;;  %v3667_v11 = vadd.f32 %v3666_v0, %v3665_v53 }
 0x8b5   :  { %v3631_v49 = vmul.f32 %v6360_v59, %v3535_v45  ;;  %v3533_v7 = vmax.f32 %v3517_v41, 0.0  ;;  %v3494_v22 = vadd.f32 %v6427_v17, %v3396_v27  ;;  %v3522_v2 = vadd.f32 %v6176_v32, %v3502_v50 }
 0x8b6   :  { %v3658_v38 = vadd.f32 %v3657_v26, %v3656_v13  ;;  %v4555_v24 = vpop.f32.mrf.mxu0  ;;  %v3672_v59 = vsel %vm196_vm0, %v3628_v18, 0.0  ;;  %v3642_v4 = vadd.f32 %v3641_v57, %v3640_v5  ;;  %v3668_v14 = vrot.slane %v3667_v11, 2 }
 0x8b7   :  { %v3682_v20 = vsel %vm196_vm0, %v3631_v49, 0.0  ;;  %v3629_v12 = vmul.f32 %v6330_v21, %v3533_v7  ;;  %v3538_v10 = vmax.f32 %v3522_v2, 0.0  ;;  %v3520_v15 = vadd.f32 %v6176_v32, %v3494_v22 }
 0x8b8   :  { %v3683_v29 = vadd.f32 %v3682_v20, %v3681_v61  ;;  %v3399_v31 = vpop.f32.mrf.mxu0  ;;  %v3505_v17 = vadd.f32 %v6429_v39, %v4555_v24  ;;  %v3659_v1 = vrot.slane %v3658_v38, 2  ;;  %v3618_v39 = vpop.permute.xlu0 %3617  ;;  %v3643_v40 = vrot.slane %v3642_v4, 1 }
 0x8b9   :  { %v3673_v42 = vsel %vm196_vm0, %v3629_v12, 0.0  ;;  %v3536_v21 = vmax.f32 %v3520_v15, 0.0  ;;  %v3497_v47 = vadd.f32 %v6431_v62, %v3399_v31  ;;  %v3634_v33 = vmul.f32 %v3613_v35, %v3538_v10 }
 0x8ba   :  { %v3674_v6 = vadd.f32 %v3673_v42, %v3672_v59  ;;  %v3684_v44 = vrot.slane %v3683_v29, 4  ;;  %v3523_v55 = vadd.f32 %v6176_v32, %v3505_v17  ;;  %v3660_v43 = vadd.f32 %v3659_v1, %v3658_v38 }
 0x8bb   :  { %v3521_v46 = vadd.f32 %v6176_v32, %v3497_v47  ;;  %v3632_v60 = vmul.f32 %v6395_v9, %v3536_v21  ;;  %v3699_v62 = vsel %vm196_vm0, %v3634_v33, 0.0  ;;  %v3652_v8 = vrot.slane %v3651_v28, 1 }
 0x8bc   :  { %v3675_v48 = vrot.slane %v3674_v6, 4  ;;  %v3539_v34 = vmax.f32 %v3523_v55, 0.0  ;;  %v3685_v54 = vadd.f32 %v3684_v44, %v3683_v29  ;;  %v3661_v32 = vrot.slane %v3660_v43, 1 }
 0x8bd   :  { %v3537_v58 = vmax.f32 %v3521_v46, 0.0  ;;  %v3669_v63 = vadd.f32 %v3668_v14, %v3667_v11  ;;  %v3690_v52 = vsel %vm196_vm0, %v3632_v60, 0.0  ;;  %v3644_v5 = vadd.f32 %v3643_v40, %v3642_v4 }
 0x8be   :  { %v3676_v56 = vadd.f32 %v3675_v48, %v3674_v6  ;;  %v3635_v3 = vmul.f32 %v3618_v39, %v3539_v34  ;;  %v3686_v25 = vrot.slane %v3685_v54, 2  ;;  %v3662_v26 = vadd.f32 %v3661_v32, %v3660_v43 }
 0x8bf   :  { %v3633_v51 = vmul.f32 %v6386_v23, %v3537_v58  ;;  %v3653_v7 = vadd.f32 %v3652_v8, %v3651_v28  ;;  %v3670_v50 = vrot.slane %v3669_v63, 1 }
 0x8c0   :  { %v3677_v36 = vrot.slane %v3676_v56, 2  ;;  %v3700_v16 = vsel %vm196_vm0, %v3635_v3, 0.0  ;;  %v3687_v23 = vadd.f32 %v3686_v25, %v3685_v54 }
 0x8c1   :  { %v3701_v13 = vadd.f32 %v3700_v16, %v3699_v62  ;;  %v3691_v9 = vsel %vm196_vm0, %v3633_v51, 0.0  ;;  %v3725_v38 = vsel %vm3724_vm4, %v3653_v7, %v3644_v5  ;;  %v3671_v12 = vadd.f32 %v3670_v50, %v3669_v63 }
 0x8c2   :  { %v3678_v53 = vadd.f32 %v3677_v36, %v3676_v56  ;;  %v3692_v41 = vadd.f32 %v3691_v9, %v3690_v52  ;;  %v3727_v22 = vsel %vm3726_vm5, %v3662_v26, %v3725_v38  ;;  %v3688_v2 = vrot.slane %v3687_v23, 1 }
 0x8c3   :  { %v3702_v45 = vrot.slane %v3701_v13, 4  ;;  %v3729_v29 = vsel %vm3728_vm6, %v3671_v12, %v3727_v22 }
 0x8c4   :  { %v3679_v27 = vrot.slane %v3678_v53, 1  ;;  %v3693_v49 = vrot.slane %v3692_v41, 4  ;;  %v3689_v10 = vadd.f32 %v3688_v2, %v3687_v23 }
 0x8c5   :  { %v3703_v18 = vadd.f32 %v3702_v45, %v3701_v13 }
 0x8c6   :  { %v3694_v0 = vadd.f32 %v3693_v49, %v3692_v41  ;;  %v3680_v24 = vadd.f32 %v3679_v27, %v3678_v53 }
 0x8c7   :  { %v3704_v37 = vrot.slane %v3703_v18, 2 }
 0x8c8   :  { %v3695_v20 = vrot.slane %v3694_v0, 2  ;;  %v3731_v42 = vsel %vm3730_vm7, %v3680_v24, %v3729_v29 }
 0x8c9   :  { %v3705_v61 = vadd.f32 %v3704_v37, %v3703_v18  ;;  %v3733_v19 = vsel %vm3732_vm8, %v3689_v10, %v3731_v42 }
 0x8ca   :  { %v3696_v57 = vadd.f32 %v3695_v20, %v3694_v0 }
 0x8cb   :  { %v3706_v59 = vrot.slane %v3705_v61, 1 }
 0x8cc   :  { %v3697_v31 = vrot.slane %v3696_v57, 1 }
 0x8cd   :  { %v3707_v17 = vadd.f32 %v3706_v59, %v3705_v61 }
 0x8ce   :  { %v3698_v15 = vadd.f32 %v3697_v31, %v3696_v57 }
 0x8d0   :  { %v3735_v11 = vsel %vm3734_vm9, %v3698_v15, %v3733_v19 }
 0x8d1   :  { %v3737_v1 = vsel %vm3736_vm10, %v3707_v17, %v3735_v11 }
 0x8d2   :  { %4585 = vmatmul.mubr.msk.f32.vlgmr.msra.gmra.mxu0 %vm196_vm0, %v3737_v1 }
 0x8d3   :  { %4864 = shalt.err (!%p4861_p4)
}
 0x8d4   :  { %s4902_s3 = smov 64   ;;  %s4903_s2 = smov 4  }
 0x8d5   :  { %3920 = dma.vmem_to_hbm [thread:$0]  %s3915_s25, 1024, %s6539_s15, [#allocation3], %s4902_s3, %s4902_s3, %s4903_s2  }
 0x8d6   :  { %s4873_s30 = scalar_lea.vmem %s3927_s27, 1024  ;;  %p4878_p6 = scmp.lt.s32.totalorder %s3927_s27, %s3927_s27 }
 0x8d7   :  { %p4874_p5 = scmp.ne.s32.totalorder %s3927_s27, %s4873_s30  ;;  %p4879_p7 = scmp.lt.s32.totalorder %s4873_s30, %s4873_s30 }
 0x8d9   :  { %p4880_p8 = por %p4879_p7, %p4878_p6 }
 0x8db   :  { %p4881_p9 = pnand %p4880_p8, %p4874_p5 }
 0x8dd   :  { %4884 = shalt.err (!%p4881_p9)
}
 0x8de   :  { %3932 = dma.vmem_to_hbm [thread:$0]  %s3927_s27, 1024, %s6540_s16, [#allocation5], %s4902_s3, %s4902_s3, %s4903_s2   ;;  %vm3905_vm11 = vcmask 31744  }
 0x8df   :  { %v4097_v44 = vld [vmem:[%s6537_s13] ss:$0 sm:$0xff] }
 0x992   :  { %v3806_v6 = vpop.f32.mrf.mxu0 }
 0x993   :  { %v3894_v21 = vadd.f32 %v6433_v30, %v3806_v6 }
 0x994   :  { %v4586_v55 = vpop.f32.mrf.mxu0 }
 0x995   :  { %v3904_v47 = vadd.f32 %v4097_v44, %v3894_v21 }
 0x997   :  { %3906 = vst.msk [vmem:[%s6538_s14] sm:$0xff] %vm3905_vm11, %v3904_v47 }
 0x998   :  { %4893 = dma.done.wait [#allocation3], 1024  }
 0x999   :  { %4894 = vsyncadd [#allocation3], 4294966272 }
 0x99a   :  { %4895 = dma.done.wait [#allocation5], 1024  }
 0x99b   :  { %4896 = vsyncadd [#allocation5], 4294966272 }
 0x99c   :  { %3941 = vsyncpa [#allocation3], 1 }
 0x99d   :  { %3942 = vsyncpa [#allocation5], 1 }

</bundles_post_ra>
